<compile_context>
chip_gen: v6e
topology: v6e:2x2x1
jax: 0.10.0
libtpu: 0.0.40
codegen_flags: <defaults>
</compile_context>

<pallas_src>
import functools
import math

import numpy as np
import jax
import jax.numpy as jnp
from jax import lax
from jax.experimental import pallas as pl
from jax.experimental.pallas import tpu as pltpu


# ---------------------------------------------------------------------------
# Fused MHA kernel: one grid step == `batch_tile` batch elements, all in VMEM.
# ---------------------------------------------------------------------------
def _mha_kernel(q_ref, k_ref, v_ref, wqkv_ref, wo_ref, out_ref, cls_ref,
                *, batch_tile, num_heads):
    """Ref shapes:
         q_ref/k_ref/v_ref/out_ref : (batch_tile, S, D)
         wqkv_ref : (3H, D, d_h)  rows = [q-heads | k-heads | v-heads],
                    query block pre-scaled by 1/sqrt(d_h)
         wo_ref   : (H, d_h, D)   per-head row blocks of the output projection
         cls_ref  : (batch_tile, H, S)  normalized CLS softmax rows (lane-dense)
    """
    H = num_heads
    for b in range(batch_tile):              # static unroll over folded batches
        x_q = q_ref[b]                       # (S, D) — leading-index reads
        x_k = k_ref[b]
        x_v = v_ref[b]

        out_acc = None
        cls_rows = []
        for h in range(H):                   # static unroll over heads
            # Per-head projections straight from per-head weight slabs: no
            # lane-dim slicing of activations, no concatenates on the data path.
            q_h = jnp.dot(x_q, wqkv_ref[h],
                          preferred_element_type=jnp.float32)            # (S, d_h)
            k_h = jnp.dot(x_k, wqkv_ref[H + h],
                          preferred_element_type=jnp.float32)
            v_h = jnp.dot(x_v, wqkv_ref[2 * H + h],
                          preferred_element_type=jnp.float32)

            # Scores (scale pre-folded into the query weights) + stable softmax.
            s = jnp.dot(q_h, k_h.T, preferred_element_type=jnp.float32)  # (S, S)
            m = jnp.max(s, axis=-1, keepdims=True)
            e = jnp.exp(s - m)
            inv = pl.reciprocal(jnp.sum(e, axis=-1, keepdims=True),
                                approx=True)                             # EUP, (S, 1)

            # CLS (query row 0) softmax over *all* keys, kept lane-dense; the
            # `1:` slice + (P, P) reshape happen in the XLA wrapper.
            cls_rows.append(e[0:1, :] * inv[0:1, :])                     # (1, S)

            # Deferred normalization: (e @ V) * rcp(rowsum) == softmax(s) @ V.
            ctx_h = jnp.dot(e, v_h, preferred_element_type=jnp.float32) * inv  # (S, d_h)

            # Output projection accumulated per head (replaces lane concat):
            #   concat_h(ctx_h) @ Wo == sum_h ctx_h @ Wo[h*d_h:(h+1)*d_h, :]
            contrib = jnp.dot(ctx_h, wo_ref[h],
                              preferred_element_type=jnp.float32)        # (S, D)
            out_acc = contrib if out_acc is None else out_acc + contrib

        out_ref[b] = out_acc.astype(out_ref.dtype)
        # Small sublane-dim stack of the CLS rows (store epilogue only).
        cls_ref[b] = jnp.concatenate(cls_rows, axis=0).astype(cls_ref.dtype)  # (H, S)


# ---------------------------------------------------------------------------
# Module wrapper (weight re-layouts hoisted to __init__, forward jitted).
# ---------------------------------------------------------------------------
class MultiHeadAttentionJAX:
    def __init__(self, key, number_of_heads, embedding_dim,
                 image_size=16, patch_dim=4, dropout=0.1):
        assert embedding_dim % number_of_heads == 0, \
            "Embedding dim must be divisible by number of heads!"
        self.h = number_of_heads
        self.d_model = embedding_dim
        self.d_h = embedding_dim // number_of_heads
        num_patches = (image_size // patch_dim) ** 2
        self.P = int(round(math.sqrt(num_patches)))
        assert self.P * self.P == num_patches, \
            "Number of patches must be a perfect square."
        # TODO(synk): dropout kept for parity only; eval-mode semantics in-kernel.
        self.dropout_p = dropout

        # PyTorch-Linear-like uniform init, stored in (in, out) layout so the
        # kernel computes x @ W with no runtime transposes.
        kq, kk, kv, ko = jax.random.split(key, 4)
        bound = 1.0 / math.sqrt(embedding_dim)

        def init(k):
            return jax.random.uniform(
                k, (embedding_dim, embedding_dim), jnp.float32, -bound, bound)

        self.wq, self.wk, self.wv, self.wo = init(kq), init(kk), init(kv), init(ko)

        # Kernel-side weight layout, built once:
        #  * 1/sqrt(d_h) folded into the query weights,
        #  * per-head column blocks stacked into a single (3H, D, d_h) operand,
        #  * output projection pre-split by rows into (H, d_h, D).
        H, D, dh = self.h, self.d_model, self.d_h
        scale = 1.0 / math.sqrt(dh)

        def split_cols(w):                       # (D, D) -> (H, D, d_h)
            return w.reshape(D, H, dh).transpose(1, 0, 2)

        self.w_qkv_heads = jnp.concatenate(
            [split_cols(self.wq * scale), split_cols(self.wk),
             split_cols(self.wv)], axis=0)       # (3H, D, d_h)
        self.w_out_heads = self.wo.reshape(H, dh, D)   # (H, d_h, D)

        self._forward = jax.jit(self._forward_impl)

    def _forward_impl(self, q, k, v, w_qkv_heads, w_out_heads):
        B, S, D = q.shape
        H, dh, P = self.h, self.d_h, self.P
        assert D == self.d_model and S == P * P + 1, (q.shape, P)

        # Fold batch elements into few grid steps.  Keep 2 "parallel" steps when
        # B is even so both v7x TensorCores get work; single-TC chips (v5e/v6e)
        # only pay one extra ~600-cycle step for that.
        grid_b = 2 if (B >= 2 and B % 2 == 0) else B
        bt = B // grid_b

        kernel = functools.partial(_mha_kernel, batch_tile=bt, num_heads=H)

        x_spec = pl.BlockSpec((bt, S, D), lambda g: (g, 0, 0))
        out, cls_rows = pl.pallas_call(
            kernel,
            out_shape=(jax.ShapeDtypeStruct((B, S, D), jnp.float32),
                       jax.ShapeDtypeStruct((B, H, S), jnp.float32)),
            grid=(grid_b,),
            in_specs=[x_spec, x_spec, x_spec,
                      pl.BlockSpec((3 * H, D, dh), lambda g: (0, 0, 0)),
                      pl.BlockSpec((H, dh, D), lambda g: (0, 0, 0))],
            out_specs=(x_spec,
                       pl.BlockSpec((bt, H, S), lambda g: (g, 0, 0))),
            compiler_params=pltpu.CompilerParams(
                dimension_semantics=("parallel",)),
        )(q, k, v, w_qkv_heads, w_out_heads)

        # CLS-to-patch map: drop the CLS->CLS column and reshape to (P, P) with
        # plain XLA ops (keeps the kernel's store lane-dense).
        cls_map = cls_rows[:, :, 1:].reshape(B, H, P, P)
        return out, cls_map

    def forward(self, q, k, v):
        return self._forward(q, k, v, self.w_qkv_heads, self.w_out_heads)


# ---------------------------------------------------------------------------
# Pure-JAX reference (uses the original unsplit / unscaled weights).
# ---------------------------------------------------------------------------
def mha_reference(q, k, v, wq, wk, wv, wo, num_heads, P):
    B, S, D = q.shape
    dh = D // num_heads
    hp = lax.Precision.HIGHEST

    def proj(x, w):
        return jnp.einsum('bsd,de->bse', x, w, precision=hp)

    Q = proj(q, wq).reshape(B, S, num_heads, dh).transpose(0, 2, 1, 3)
    K = proj(k, wk).reshape(B, S, num_heads, dh).transpose(0, 2, 1, 3)
    V = proj(v, wv).reshape(B, S, num_heads, dh).transpose(0, 2, 1, 3)
    scores = jnp.einsum('bhqd,bhkd->bhqk', Q, K, precision=hp) / math.sqrt(dh)
    probs = jax.nn.softmax(scores, axis=-1)
    cls_map = probs[:, :, 0, 1:].reshape(B, num_heads, P, P)
    ctx = jnp.einsum('bhqk,bhkd->bhqd', probs, V, precision=hp)
    ctx = ctx.transpose(0, 2, 1, 3).reshape(B, S, D)
    out = jnp.einsum('bsd,de->bse', ctx, wo, precision=hp)
    return out, cls_map


if __name__ == "__main__":
    key = jax.random.PRNGKey(0)
    k_mod, k_q, k_k, k_v = jax.random.split(key, 4)

    # Small shapes consistent with the module: P=4 -> 16 patches + 1 CLS token.
    # B=4 exercises the batch-folding path (2 grid steps x 2 batch elements).
    B, heads, d_model = 4, 4, 32
    image_size, patch_dim = 16, 4
    P = image_size // patch_dim
    S = P * P + 1  # 17 tokens (CLS + patches)

    module = MultiHeadAttentionJAX(k_mod, number_of_heads=heads,
                                   embedding_dim=d_model,
                                   image_size=image_size, patch_dim=patch_dim)

    q = jax.random.normal(k_q, (B, S, d_model), jnp.float32)
    k = jax.random.normal(k_k, (B, S, d_model), jnp.float32)
    v = jax.random.normal(k_v, (B, S, d_model), jnp.float32)

    out, cls_map = module.forward(q, k, v)
    jax.block_until_ready((out, cls_map))

    assert out.shape == (B, S, d_model), out.shape
    assert cls_map.shape == (B, heads, P, P), cls_map.shape
    assert out.dtype == jnp.float32 and cls_map.dtype == jnp.float32

    # Tolerance allows for the approximate EUP reciprocal (~1e-3 worst-case
    # relative error) on top of MXU f32 matmul rounding.
    ref_out, ref_cls = mha_reference(q, k, v, module.wq, module.wk,
                                     module.wv, module.wo, heads, P)
    np.testing.assert_allclose(np.asarray(out), np.asarray(ref_out),
                               rtol=3e-3, atol=3e-3)
    np.testing.assert_allclose(np.asarray(cls_map), np.asarray(ref_cls),
                               rtol=3e-3, atol=3e-3)

    print("KERNEL_OK")
</pallas_src>

<mosaic_0001>
module attributes {stable_mosaic.version = 11 : i64} {
  func.func @_mha_kernel(%arg0: i32, %arg1: memref<2x17x32xf32, #tpu.memory_space<vmem>>, %arg2: memref<2x17x32xf32, #tpu.memory_space<vmem>>, %arg3: memref<2x17x32xf32, #tpu.memory_space<vmem>>, %arg4: memref<12x32x8xf32, #tpu.memory_space<vmem>>, %arg5: memref<4x8x32xf32, #tpu.memory_space<vmem>>, %arg6: memref<2x17x32xf32, #tpu.memory_space<vmem>>, %arg7: memref<2x4x17xf32, #tpu.memory_space<vmem>>) attributes {dimension_semantics = [#tpu.dimension_semantics<parallel>], iteration_bounds = array<i64: 2>, scalar_prefetch = 0 : i64, scratch_operands = 0 : i64, tpu.core_type = #tpu.core_type<tc>, window_params = [{transform_indices = @transform_0, window_bounds = array<i64: 2, 17, 32>}, {transform_indices = @transform_1, window_bounds = array<i64: 2, 17, 32>}, {transform_indices = @transform_2, window_bounds = array<i64: 2, 17, 32>}, {pipeline_mode = #tpu.pipeline_mode<synchronous>, transform_indices = @transform_3, window_bounds = array<i64: 12, 32, 8>}, {pipeline_mode = #tpu.pipeline_mode<synchronous>, transform_indices = @transform_4, window_bounds = array<i64: 4, 8, 32>}, {transform_indices = @transform_5, window_bounds = array<i64: 2, 17, 32>}, {transform_indices = @transform_6, window_bounds = array<i64: 2, 4, 17>}]} {
    %c0 = arith.constant 0 : index
    %c0_0 = arith.constant 0 : index
    %c0_1 = arith.constant 0 : index
    %0 = vector.load %arg1[%c0, %c0_0, %c0_1] : memref<2x17x32xf32, #tpu.memory_space<vmem>>, vector<1x17x32xf32>
    %1 = vector.shape_cast %0 : vector<1x17x32xf32> to vector<17x32xf32>
    %c0_2 = arith.constant 0 : index
    %c0_3 = arith.constant 0 : index
    %c0_4 = arith.constant 0 : index
    %2 = vector.load %arg2[%c0_2, %c0_3, %c0_4] : memref<2x17x32xf32, #tpu.memory_space<vmem>>, vector<1x17x32xf32>
    %3 = vector.shape_cast %2 : vector<1x17x32xf32> to vector<17x32xf32>
    %c0_5 = arith.constant 0 : index
    %c0_6 = arith.constant 0 : index
    %c0_7 = arith.constant 0 : index
    %4 = vector.load %arg3[%c0_5, %c0_6, %c0_7] : memref<2x17x32xf32, #tpu.memory_space<vmem>>, vector<1x17x32xf32>
    %5 = vector.shape_cast %4 : vector<1x17x32xf32> to vector<17x32xf32>
    %c0_8 = arith.constant 0 : index
    %c0_9 = arith.constant 0 : index
    %c0_10 = arith.constant 0 : index
    %6 = vector.load %arg4[%c0_8, %c0_9, %c0_10] : memref<12x32x8xf32, #tpu.memory_space<vmem>>, vector<1x32x8xf32>
    %7 = vector.shape_cast %6 : vector<1x32x8xf32> to vector<32x8xf32>
    %cst = arith.constant dense<0.000000e+00> : vector<17x8xf32>
    %8 = tpu.matmul %1, %7, %cst {dimension_numbers = #tpu.dot_dimension_numbers<[1], [0], [0], [1], [0, 0, 1, 1], [], []>} : vector<17x32xf32>, vector<32x8xf32>, vector<17x8xf32> -> vector<17x8xf32>
    %c4 = arith.constant 4 : index
    %c0_11 = arith.constant 0 : index
    %c0_12 = arith.constant 0 : index
    %9 = vector.load %arg4[%c4, %c0_11, %c0_12] : memref<12x32x8xf32, #tpu.memory_space<vmem>>, vector<1x32x8xf32>
    %10 = vector.shape_cast %9 : vector<1x32x8xf32> to vector<32x8xf32>
    %cst_13 = arith.constant dense<0.000000e+00> : vector<17x8xf32>
    %11 = tpu.matmul %3, %10, %cst_13 {dimension_numbers = #tpu.dot_dimension_numbers<[1], [0], [0], [1], [0, 0, 1, 1], [], []>} : vector<17x32xf32>, vector<32x8xf32>, vector<17x8xf32> -> vector<17x8xf32>
    %c8 = arith.constant 8 : index
    %c0_14 = arith.constant 0 : index
    %c0_15 = arith.constant 0 : index
    %12 = vector.load %arg4[%c8, %c0_14, %c0_15] : memref<12x32x8xf32, #tpu.memory_space<vmem>>, vector<1x32x8xf32>
    %13 = vector.shape_cast %12 : vector<1x32x8xf32> to vector<32x8xf32>
    %cst_16 = arith.constant dense<0.000000e+00> : vector<17x8xf32>
    %14 = tpu.matmul %5, %13, %cst_16 {dimension_numbers = #tpu.dot_dimension_numbers<[1], [0], [0], [1], [0, 0, 1, 1], [], []>} : vector<17x32xf32>, vector<32x8xf32>, vector<17x8xf32> -> vector<17x8xf32>
    %15 = tpu.transpose %11, [1, 0] : vector<17x8xf32> -> vector<8x17xf32>
    %cst_17 = arith.constant dense<0.000000e+00> : vector<17x17xf32>
    %16 = tpu.matmul %8, %15, %cst_17 {dimension_numbers = #tpu.dot_dimension_numbers<[1], [0], [0], [1], [0, 0, 1, 1], [], []>} : vector<17x8xf32>, vector<8x17xf32>, vector<17x17xf32> -> vector<17x17xf32>
    %cst_18 = arith.constant dense<0xFF800000> : vector<17xf32>
    %17 = vector.multi_reduction <maximumf>, %16, %cst_18 [1] : vector<17x17xf32> to vector<17xf32>
    %18 = vector.shape_cast %17 : vector<17xf32> to vector<17x1xf32>
    %19 = vector.broadcast %18 : vector<17x1xf32> to vector<17x17xf32>
    %20 = arith.subf %16, %19 : vector<17x17xf32>
    %21 = math.exp %20 : vector<17x17xf32>
    %cst_19 = arith.constant dense<0.000000e+00> : vector<17xf32>
    %22 = vector.multi_reduction <add>, %21, %cst_19 [1] : vector<17x17xf32> to vector<17xf32>
    %23 = vector.shape_cast %22 : vector<17xf32> to vector<17x1xf32>
    %24 = tpu.reciprocal %23 {approx = true} : vector<17x1xf32> -> vector<17x1xf32>
    %25 = vector.extract_strided_slice %21 {offsets = [0, 0], sizes = [1, 17], strides = [1, 1]} : vector<17x17xf32> to vector<1x17xf32>
    %26 = vector.extract_strided_slice %24 {offsets = [0, 0], sizes = [1, 1], strides = [1, 1]} : vector<17x1xf32> to vector<1x1xf32>
    %27 = vector.broadcast %26 : vector<1x1xf32> to vector<1x17xf32>
    %28 = arith.mulf %25, %27 : vector<1x17xf32>
    %cst_20 = arith.constant dense<0.000000e+00> : vector<17x8xf32>
    %29 = tpu.matmul %21, %14, %cst_20 {dimension_numbers = #tpu.dot_dimension_numbers<[1], [0], [0], [1], [0, 0, 1, 1], [], []>} : vector<17x17xf32>, vector<17x8xf32>, vector<17x8xf32> -> vector<17x8xf32>
    %30 = vector.broadcast %24 : vector<17x1xf32> to vector<17x8xf32>
    %31 = arith.mulf %29, %30 : vector<17x8xf32>
    %c0_21 = arith.constant 0 : index
    %c0_22 = arith.constant 0 : index
    %c0_23 = arith.constant 0 : index
    %32 = vector.load %arg5[%c0_21, %c0_22, %c0_23] : memref<4x8x32xf32, #tpu.memory_space<vmem>>, vector<1x8x32xf32>
    %33 = vector.shape_cast %32 : vector<1x8x32xf32> to vector<8x32xf32>
    %cst_24 = arith.constant dense<0.000000e+00> : vector<17x32xf32>
    %34 = tpu.matmul %31, %33, %cst_24 {dimension_numbers = #tpu.dot_dimension_numbers<[1], [0], [0], [1], [0, 0, 1, 1], [], []>} : vector<17x8xf32>, vector<8x32xf32>, vector<17x32xf32> -> vector<17x32xf32>
    %c1 = arith.constant 1 : index
    %c0_25 = arith.constant 0 : index
    %c0_26 = arith.constant 0 : index
    %35 = vector.load %arg4[%c1, %c0_25, %c0_26] : memref<12x32x8xf32, #tpu.memory_space<vmem>>, vector<1x32x8xf32>
    %36 = vector.shape_cast %35 : vector<1x32x8xf32> to vector<32x8xf32>
    %cst_27 = arith.constant dense<0.000000e+00> : vector<17x8xf32>
    %37 = tpu.matmul %1, %36, %cst_27 {dimension_numbers = #tpu.dot_dimension_numbers<[1], [0], [0], [1], [0, 0, 1, 1], [], []>} : vector<17x32xf32>, vector<32x8xf32>, vector<17x8xf32> -> vector<17x8xf32>
    %c5 = arith.constant 5 : index
    %c0_28 = arith.constant 0 : index
    %c0_29 = arith.constant 0 : index
    %38 = vector.load %arg4[%c5, %c0_28, %c0_29] : memref<12x32x8xf32, #tpu.memory_space<vmem>>, vector<1x32x8xf32>
    %39 = vector.shape_cast %38 : vector<1x32x8xf32> to vector<32x8xf32>
    %cst_30 = arith.constant dense<0.000000e+00> : vector<17x8xf32>
    %40 = tpu.matmul %3, %39, %cst_30 {dimension_numbers = #tpu.dot_dimension_numbers<[1], [0], [0], [1], [0, 0, 1, 1], [], []>} : vector<17x32xf32>, vector<32x8xf32>, vector<17x8xf32> -> vector<17x8xf32>
    %c9 = arith.constant 9 : index
    %c0_31 = arith.constant 0 : index
    %c0_32 = arith.constant 0 : index
    %41 = vector.load %arg4[%c9, %c0_31, %c0_32] : memref<12x32x8xf32, #tpu.memory_space<vmem>>, vector<1x32x8xf32>
    %42 = vector.shape_cast %41 : vector<1x32x8xf32> to vector<32x8xf32>
    %cst_33 = arith.constant dense<0.000000e+00> : vector<17x8xf32>
    %43 = tpu.matmul %5, %42, %cst_33 {dimension_numbers = #tpu.dot_dimension_numbers<[1], [0], [0], [1], [0, 0, 1, 1], [], []>} : vector<17x32xf32>, vector<32x8xf32>, vector<17x8xf32> -> vector<17x8xf32>
    %44 = tpu.transpose %40, [1, 0] : vector<17x8xf32> -> vector<8x17xf32>
    %cst_34 = arith.constant dense<0.000000e+00> : vector<17x17xf32>
    %45 = tpu.matmul %37, %44, %cst_34 {dimension_numbers = #tpu.dot_dimension_numbers<[1], [0], [0], [1], [0, 0, 1, 1], [], []>} : vector<17x8xf32>, vector<8x17xf32>, vector<17x17xf32> -> vector<17x17xf32>
    %cst_35 = arith.constant dense<0xFF800000> : vector<17xf32>
    %46 = vector.multi_reduction <maximumf>, %45, %cst_35 [1] : vector<17x17xf32> to vector<17xf32>
    %47 = vector.shape_cast %46 : vector<17xf32> to vector<17x1xf32>
    %48 = vector.broadcast %47 : vector<17x1xf32> to vector<17x17xf32>
    %49 = arith.subf %45, %48 : vector<17x17xf32>
    %50 = math.exp %49 : vector<17x17xf32>
    %cst_36 = arith.constant dense<0.000000e+00> : vector<17xf32>
    %51 = vector.multi_reduction <add>, %50, %cst_36 [1] : vector<17x17xf32> to vector<17xf32>
    %52 = vector.shape_cast %51 : vector<17xf32> to vector<17x1xf32>
    %53 = tpu.reciprocal %52 {approx = true} : vector<17x1xf32> -> vector<17x1xf32>
    %54 = vector.extract_strided_slice %50 {offsets = [0, 0], sizes = [1, 17], strides = [1, 1]} : vector<17x17xf32> to vector<1x17xf32>
    %55 = vector.extract_strided_slice %53 {offsets = [0, 0], sizes = [1, 1], strides = [1, 1]} : vector<17x1xf32> to vector<1x1xf32>
    %56 = vector.broadcast %55 : vector<1x1xf32> to vector<1x17xf32>
    %57 = arith.mulf %54, %56 : vector<1x17xf32>
    %cst_37 = arith.constant dense<0.000000e+00> : vector<17x8xf32>
    %58 = tpu.matmul %50, %43, %cst_37 {dimension_numbers = #tpu.dot_dimension_numbers<[1], [0], [0], [1], [0, 0, 1, 1], [], []>} : vector<17x17xf32>, vector<17x8xf32>, vector<17x8xf32> -> vector<17x8xf32>
    %59 = vector.broadcast %53 : vector<17x1xf32> to vector<17x8xf32>
    %60 = arith.mulf %58, %59 : vector<17x8xf32>
    %c1_38 = arith.constant 1 : index
    %c0_39 = arith.constant 0 : index
    %c0_40 = arith.constant 0 : index
    %61 = vector.load %arg5[%c1_38, %c0_39, %c0_40] : memref<4x8x32xf32, #tpu.memory_space<vmem>>, vector<1x8x32xf32>
    %62 = vector.shape_cast %61 : vector<1x8x32xf32> to vector<8x32xf32>
    %cst_41 = arith.constant dense<0.000000e+00> : vector<17x32xf32>
    %63 = tpu.matmul %60, %62, %cst_41 {dimension_numbers = #tpu.dot_dimension_numbers<[1], [0], [0], [1], [0, 0, 1, 1], [], []>} : vector<17x8xf32>, vector<8x32xf32>, vector<17x32xf32> -> vector<17x32xf32>
    %64 = arith.addf %34, %63 : vector<17x32xf32>
    %c2 = arith.constant 2 : index
    %c0_42 = arith.constant 0 : index
    %c0_43 = arith.constant 0 : index
    %65 = vector.load %arg4[%c2, %c0_42, %c0_43] : memref<12x32x8xf32, #tpu.memory_space<vmem>>, vector<1x32x8xf32>
    %66 = vector.shape_cast %65 : vector<1x32x8xf32> to vector<32x8xf32>
    %cst_44 = arith.constant dense<0.000000e+00> : vector<17x8xf32>
    %67 = tpu.matmul %1, %66, %cst_44 {dimension_numbers = #tpu.dot_dimension_numbers<[1], [0], [0], [1], [0, 0, 1, 1], [], []>} : vector<17x32xf32>, vector<32x8xf32>, vector<17x8xf32> -> vector<17x8xf32>
    %c6 = arith.constant 6 : index
    %c0_45 = arith.constant 0 : index
    %c0_46 = arith.constant 0 : index
    %68 = vector.load %arg4[%c6, %c0_45, %c0_46] : memref<12x32x8xf32, #tpu.memory_space<vmem>>, vector<1x32x8xf32>
    %69 = vector.shape_cast %68 : vector<1x32x8xf32> to vector<32x8xf32>
    %cst_47 = arith.constant dense<0.000000e+00> : vector<17x8xf32>
    %70 = tpu.matmul %3, %69, %cst_47 {dimension_numbers = #tpu.dot_dimension_numbers<[1], [0], [0], [1], [0, 0, 1, 1], [], []>} : vector<17x32xf32>, vector<32x8xf32>, vector<17x8xf32> -> vector<17x8xf32>
    %c10 = arith.constant 10 : index
    %c0_48 = arith.constant 0 : index
    %c0_49 = arith.constant 0 : index
    %71 = vector.load %arg4[%c10, %c0_48, %c0_49] : memref<12x32x8xf32, #tpu.memory_space<vmem>>, vector<1x32x8xf32>
    %72 = vector.shape_cast %71 : vector<1x32x8xf32> to vector<32x8xf32>
    %cst_50 = arith.constant dense<0.000000e+00> : vector<17x8xf32>
    %73 = tpu.matmul %5, %72, %cst_50 {dimension_numbers = #tpu.dot_dimension_numbers<[1], [0], [0], [1], [0, 0, 1, 1], [], []>} : vector<17x32xf32>, vector<32x8xf32>, vector<17x8xf32> -> vector<17x8xf32>
    %74 = tpu.transpose %70, [1, 0] : vector<17x8xf32> -> vector<8x17xf32>
    %cst_51 = arith.constant dense<0.000000e+00> : vector<17x17xf32>
    %75 = tpu.matmul %67, %74, %cst_51 {dimension_numbers = #tpu.dot_dimension_numbers<[1], [0], [0], [1], [0, 0, 1, 1], [], []>} : vector<17x8xf32>, vector<8x17xf32>, vector<17x17xf32> -> vector<17x17xf32>
    %cst_52 = arith.constant dense<0xFF800000> : vector<17xf32>
    %76 = vector.multi_reduction <maximumf>, %75, %cst_52 [1] : vector<17x17xf32> to vector<17xf32>
    %77 = vector.shape_cast %76 : vector<17xf32> to vector<17x1xf32>
    %78 = vector.broadcast %77 : vector<17x1xf32> to vector<17x17xf32>
    %79 = arith.subf %75, %78 : vector<17x17xf32>
    %80 = math.exp %79 : vector<17x17xf32>
    %cst_53 = arith.constant dense<0.000000e+00> : vector<17xf32>
    %81 = vector.multi_reduction <add>, %80, %cst_53 [1] : vector<17x17xf32> to vector<17xf32>
    %82 = vector.shape_cast %81 : vector<17xf32> to vector<17x1xf32>
    %83 = tpu.reciprocal %82 {approx = true} : vector<17x1xf32> -> vector<17x1xf32>
    %84 = vector.extract_strided_slice %80 {offsets = [0, 0], sizes = [1, 17], strides = [1, 1]} : vector<17x17xf32> to vector<1x17xf32>
    %85 = vector.extract_strided_slice %83 {offsets = [0, 0], sizes = [1, 1], strides = [1, 1]} : vector<17x1xf32> to vector<1x1xf32>
    %86 = vector.broadcast %85 : vector<1x1xf32> to vector<1x17xf32>
    %87 = arith.mulf %84, %86 : vector<1x17xf32>
    %cst_54 = arith.constant dense<0.000000e+00> : vector<17x8xf32>
    %88 = tpu.matmul %80, %73, %cst_54 {dimension_numbers = #tpu.dot_dimension_numbers<[1], [0], [0], [1], [0, 0, 1, 1], [], []>} : vector<17x17xf32>, vector<17x8xf32>, vector<17x8xf32> -> vector<17x8xf32>
    %89 = vector.broadcast %83 : vector<17x1xf32> to vector<17x8xf32>
    %90 = arith.mulf %88, %89 : vector<17x8xf32>
    %c2_55 = arith.constant 2 : index
    %c0_56 = arith.constant 0 : index
    %c0_57 = arith.constant 0 : index
    %91 = vector.load %arg5[%c2_55, %c0_56, %c0_57] : memref<4x8x32xf32, #tpu.memory_space<vmem>>, vector<1x8x32xf32>
    %92 = vector.shape_cast %91 : vector<1x8x32xf32> to vector<8x32xf32>
    %cst_58 = arith.constant dense<0.000000e+00> : vector<17x32xf32>
    %93 = tpu.matmul %90, %92, %cst_58 {dimension_numbers = #tpu.dot_dimension_numbers<[1], [0], [0], [1], [0, 0, 1, 1], [], []>} : vector<17x8xf32>, vector<8x32xf32>, vector<17x32xf32> -> vector<17x32xf32>
    %94 = arith.addf %64, %93 : vector<17x32xf32>
    %c3 = arith.constant 3 : index
    %c0_59 = arith.constant 0 : index
    %c0_60 = arith.constant 0 : index
    %95 = vector.load %arg4[%c3, %c0_59, %c0_60] : memref<12x32x8xf32, #tpu.memory_space<vmem>>, vector<1x32x8xf32>
    %96 = vector.shape_cast %95 : vector<1x32x8xf32> to vector<32x8xf32>
    %cst_61 = arith.constant dense<0.000000e+00> : vector<17x8xf32>
    %97 = tpu.matmul %1, %96, %cst_61 {dimension_numbers = #tpu.dot_dimension_numbers<[1], [0], [0], [1], [0, 0, 1, 1], [], []>} : vector<17x32xf32>, vector<32x8xf32>, vector<17x8xf32> -> vector<17x8xf32>
    %c7 = arith.constant 7 : index
    %c0_62 = arith.constant 0 : index
    %c0_63 = arith.constant 0 : index
    %98 = vector.load %arg4[%c7, %c0_62, %c0_63] : memref<12x32x8xf32, #tpu.memory_space<vmem>>, vector<1x32x8xf32>
    %99 = vector.shape_cast %98 : vector<1x32x8xf32> to vector<32x8xf32>
    %cst_64 = arith.constant dense<0.000000e+00> : vector<17x8xf32>
    %100 = tpu.matmul %3, %99, %cst_64 {dimension_numbers = #tpu.dot_dimension_numbers<[1], [0], [0], [1], [0, 0, 1, 1], [], []>} : vector<17x32xf32>, vector<32x8xf32>, vector<17x8xf32> -> vector<17x8xf32>
    %c11 = arith.constant 11 : index
    %c0_65 = arith.constant 0 : index
    %c0_66 = arith.constant 0 : index
    %101 = vector.load %arg4[%c11, %c0_65, %c0_66] : memref<12x32x8xf32, #tpu.memory_space<vmem>>, vector<1x32x8xf32>
    %102 = vector.shape_cast %101 : vector<1x32x8xf32> to vector<32x8xf32>
    %cst_67 = arith.constant dense<0.000000e+00> : vector<17x8xf32>
    %103 = tpu.matmul %5, %102, %cst_67 {dimension_numbers = #tpu.dot_dimension_numbers<[1], [0], [0], [1], [0, 0, 1, 1], [], []>} : vector<17x32xf32>, vector<32x8xf32>, vector<17x8xf32> -> vector<17x8xf32>
    %104 = tpu.transpose %100, [1, 0] : vector<17x8xf32> -> vector<8x17xf32>
    %cst_68 = arith.constant dense<0.000000e+00> : vector<17x17xf32>
    %105 = tpu.matmul %97, %104, %cst_68 {dimension_numbers = #tpu.dot_dimension_numbers<[1], [0], [0], [1], [0, 0, 1, 1], [], []>} : vector<17x8xf32>, vector<8x17xf32>, vector<17x17xf32> -> vector<17x17xf32>
    %cst_69 = arith.constant dense<0xFF800000> : vector<17xf32>
    %106 = vector.multi_reduction <maximumf>, %105, %cst_69 [1] : vector<17x17xf32> to vector<17xf32>
    %107 = vector.shape_cast %106 : vector<17xf32> to vector<17x1xf32>
    %108 = vector.broadcast %107 : vector<17x1xf32> to vector<17x17xf32>
    %109 = arith.subf %105, %108 : vector<17x17xf32>
    %110 = math.exp %109 : vector<17x17xf32>
    %cst_70 = arith.constant dense<0.000000e+00> : vector<17xf32>
    %111 = vector.multi_reduction <add>, %110, %cst_70 [1] : vector<17x17xf32> to vector<17xf32>
    %112 = vector.shape_cast %111 : vector<17xf32> to vector<17x1xf32>
    %113 = tpu.reciprocal %112 {approx = true} : vector<17x1xf32> -> vector<17x1xf32>
    %114 = vector.extract_strided_slice %110 {offsets = [0, 0], sizes = [1, 17], strides = [1, 1]} : vector<17x17xf32> to vector<1x17xf32>
    %115 = vector.extract_strided_slice %113 {offsets = [0, 0], sizes = [1, 1], strides = [1, 1]} : vector<17x1xf32> to vector<1x1xf32>
    %116 = vector.broadcast %115 : vector<1x1xf32> to vector<1x17xf32>
    %117 = arith.mulf %114, %116 : vector<1x17xf32>
    %cst_71 = arith.constant dense<0.000000e+00> : vector<17x8xf32>
    %118 = tpu.matmul %110, %103, %cst_71 {dimension_numbers = #tpu.dot_dimension_numbers<[1], [0], [0], [1], [0, 0, 1, 1], [], []>} : vector<17x17xf32>, vector<17x8xf32>, vector<17x8xf32> -> vector<17x8xf32>
    %119 = vector.broadcast %113 : vector<17x1xf32> to vector<17x8xf32>
    %120 = arith.mulf %118, %119 : vector<17x8xf32>
    %c3_72 = arith.constant 3 : index
    %c0_73 = arith.constant 0 : index
    %c0_74 = arith.constant 0 : index
    %121 = vector.load %arg5[%c3_72, %c0_73, %c0_74] : memref<4x8x32xf32, #tpu.memory_space<vmem>>, vector<1x8x32xf32>
    %122 = vector.shape_cast %121 : vector<1x8x32xf32> to vector<8x32xf32>
    %cst_75 = arith.constant dense<0.000000e+00> : vector<17x32xf32>
    %123 = tpu.matmul %120, %122, %cst_75 {dimension_numbers = #tpu.dot_dimension_numbers<[1], [0], [0], [1], [0, 0, 1, 1], [], []>} : vector<17x8xf32>, vector<8x32xf32>, vector<17x32xf32> -> vector<17x32xf32>
    %124 = arith.addf %94, %123 : vector<17x32xf32>
    %c0_76 = arith.constant 0 : index
    %c0_77 = arith.constant 0 : index
    %c0_78 = arith.constant 0 : index
    %125 = vector.load %arg6[%c0_76, %c0_77, %c0_78] : memref<2x17x32xf32, #tpu.memory_space<vmem>>, vector<1x17x32xf32>
    %126 = vector.shape_cast %125 : vector<1x17x32xf32> to vector<17x32xf32>
    %127 = vector.shape_cast %124 : vector<17x32xf32> to vector<1x17x32xf32>
    tpu.vector_store %arg6[%c0_76, %c0_77, %c0_78], %127 {strides = array<i32>} : memref<2x17x32xf32, #tpu.memory_space<vmem>>, vector<1x17x32xf32>,
    %128 = tpu.concatenate %28, %57, %87, %117 in 0 : vector<1x17xf32>, vector<1x17xf32>, vector<1x17xf32>, vector<1x17xf32> -> vector<4x17xf32>
    %c0_79 = arith.constant 0 : index
    %c0_80 = arith.constant 0 : index
    %c0_81 = arith.constant 0 : index
    %129 = vector.load %arg7[%c0_79, %c0_80, %c0_81] : memref<2x4x17xf32, #tpu.memory_space<vmem>>, vector<1x4x17xf32>
    %130 = vector.shape_cast %129 : vector<1x4x17xf32> to vector<4x17xf32>
    %131 = vector.shape_cast %128 : vector<4x17xf32> to vector<1x4x17xf32>
    tpu.vector_store %arg7[%c0_79, %c0_80, %c0_81], %131 {strides = array<i32>} : memref<2x4x17xf32, #tpu.memory_space<vmem>>, vector<1x4x17xf32>,
    %c1_82 = arith.constant 1 : index
    %c0_83 = arith.constant 0 : index
    %c0_84 = arith.constant 0 : index
    %132 = vector.load %arg1[%c1_82, %c0_83, %c0_84] : memref<2x17x32xf32, #tpu.memory_space<vmem>>, vector<1x17x32xf32>
    %133 = vector.shape_cast %132 : vector<1x17x32xf32> to vector<17x32xf32>
    %c1_85 = arith.constant 1 : index
    %c0_86 = arith.constant 0 : index
    %c0_87 = arith.constant 0 : index
    %134 = vector.load %arg2[%c1_85, %c0_86, %c0_87] : memref<2x17x32xf32, #tpu.memory_space<vmem>>, vector<1x17x32xf32>
    %135 = vector.shape_cast %134 : vector<1x17x32xf32> to vector<17x32xf32>
    %c1_88 = arith.constant 1 : index
    %c0_89 = arith.constant 0 : index
    %c0_90 = arith.constant 0 : index
    %136 = vector.load %arg3[%c1_88, %c0_89, %c0_90] : memref<2x17x32xf32, #tpu.memory_space<vmem>>, vector<1x17x32xf32>
    %137 = vector.shape_cast %136 : vector<1x17x32xf32> to vector<17x32xf32>
    %c0_91 = arith.constant 0 : index
    %c0_92 = arith.constant 0 : index
    %c0_93 = arith.constant 0 : index
    %138 = vector.load %arg4[%c0_91, %c0_92, %c0_93] : memref<12x32x8xf32, #tpu.memory_space<vmem>>, vector<1x32x8xf32>
    %139 = vector.shape_cast %138 : vector<1x32x8xf32> to vector<32x8xf32>
    %cst_94 = arith.constant dense<0.000000e+00> : vector<17x8xf32>
    %140 = tpu.matmul %133, %139, %cst_94 {dimension_numbers = #tpu.dot_dimension_numbers<[1], [0], [0], [1], [0, 0, 1, 1], [], []>} : vector<17x32xf32>, vector<32x8xf32>, vector<17x8xf32> -> vector<17x8xf32>
    %c4_95 = arith.constant 4 : index
    %c0_96 = arith.constant 0 : index
    %c0_97 = arith.constant 0 : index
    %141 = vector.load %arg4[%c4_95, %c0_96, %c0_97] : memref<12x32x8xf32, #tpu.memory_space<vmem>>, vector<1x32x8xf32>
    %142 = vector.shape_cast %141 : vector<1x32x8xf32> to vector<32x8xf32>
    %cst_98 = arith.constant dense<0.000000e+00> : vector<17x8xf32>
    %143 = tpu.matmul %135, %142, %cst_98 {dimension_numbers = #tpu.dot_dimension_numbers<[1], [0], [0], [1], [0, 0, 1, 1], [], []>} : vector<17x32xf32>, vector<32x8xf32>, vector<17x8xf32> -> vector<17x8xf32>
    %c8_99 = arith.constant 8 : index
    %c0_100 = arith.constant 0 : index
    %c0_101 = arith.constant 0 : index
    %144 = vector.load %arg4[%c8_99, %c0_100, %c0_101] : memref<12x32x8xf32, #tpu.memory_space<vmem>>, vector<1x32x8xf32>
    %145 = vector.shape_cast %144 : vector<1x32x8xf32> to vector<32x8xf32>
    %cst_102 = arith.constant dense<0.000000e+00> : vector<17x8xf32>
    %146 = tpu.matmul %137, %145, %cst_102 {dimension_numbers = #tpu.dot_dimension_numbers<[1], [0], [0], [1], [0, 0, 1, 1], [], []>} : vector<17x32xf32>, vector<32x8xf32>, vector<17x8xf32> -> vector<17x8xf32>
    %147 = tpu.transpose %143, [1, 0] : vector<17x8xf32> -> vector<8x17xf32>
    %cst_103 = arith.constant dense<0.000000e+00> : vector<17x17xf32>
    %148 = tpu.matmul %140, %147, %cst_103 {dimension_numbers = #tpu.dot_dimension_numbers<[1], [0], [0], [1], [0, 0, 1, 1], [], []>} : vector<17x8xf32>, vector<8x17xf32>, vector<17x17xf32> -> vector<17x17xf32>
    %cst_104 = arith.constant dense<0xFF800000> : vector<17xf32>
    %149 = vector.multi_reduction <maximumf>, %148, %cst_104 [1] : vector<17x17xf32> to vector<17xf32>
    %150 = vector.shape_cast %149 : vector<17xf32> to vector<17x1xf32>
    %151 = vector.broadcast %150 : vector<17x1xf32> to vector<17x17xf32>
    %152 = arith.subf %148, %151 : vector<17x17xf32>
    %153 = math.exp %152 : vector<17x17xf32>
    %cst_105 = arith.constant dense<0.000000e+00> : vector<17xf32>
    %154 = vector.multi_reduction <add>, %153, %cst_105 [1] : vector<17x17xf32> to vector<17xf32>
    %155 = vector.shape_cast %154 : vector<17xf32> to vector<17x1xf32>
    %156 = tpu.reciprocal %155 {approx = true} : vector<17x1xf32> -> vector<17x1xf32>
    %157 = vector.extract_strided_slice %153 {offsets = [0, 0], sizes = [1, 17], strides = [1, 1]} : vector<17x17xf32> to vector<1x17xf32>
    %158 = vector.extract_strided_slice %156 {offsets = [0, 0], sizes = [1, 1], strides = [1, 1]} : vector<17x1xf32> to vector<1x1xf32>
    %159 = vector.broadcast %158 : vector<1x1xf32> to vector<1x17xf32>
    %160 = arith.mulf %157, %159 : vector<1x17xf32>
    %cst_106 = arith.constant dense<0.000000e+00> : vector<17x8xf32>
    %161 = tpu.matmul %153, %146, %cst_106 {dimension_numbers = #tpu.dot_dimension_numbers<[1], [0], [0], [1], [0, 0, 1, 1], [], []>} : vector<17x17xf32>, vector<17x8xf32>, vector<17x8xf32> -> vector<17x8xf32>
    %162 = vector.broadcast %156 : vector<17x1xf32> to vector<17x8xf32>
    %163 = arith.mulf %161, %162 : vector<17x8xf32>
    %c0_107 = arith.constant 0 : index
    %c0_108 = arith.constant 0 : index
    %c0_109 = arith.constant 0 : index
    %164 = vector.load %arg5[%c0_107, %c0_108, %c0_109] : memref<4x8x32xf32, #tpu.memory_space<vmem>>, vector<1x8x32xf32>
    %165 = vector.shape_cast %164 : vector<1x8x32xf32> to vector<8x32xf32>
    %cst_110 = arith.constant dense<0.000000e+00> : vector<17x32xf32>
    %166 = tpu.matmul %163, %165, %cst_110 {dimension_numbers = #tpu.dot_dimension_numbers<[1], [0], [0], [1], [0, 0, 1, 1], [], []>} : vector<17x8xf32>, vector<8x32xf32>, vector<17x32xf32> -> vector<17x32xf32>
    %c1_111 = arith.constant 1 : index
    %c0_112 = arith.constant 0 : index
    %c0_113 = arith.constant 0 : index
    %167 = vector.load %arg4[%c1_111, %c0_112, %c0_113] : memref<12x32x8xf32, #tpu.memory_space<vmem>>, vector<1x32x8xf32>
    %168 = vector.shape_cast %167 : vector<1x32x8xf32> to vector<32x8xf32>
    %cst_114 = arith.constant dense<0.000000e+00> : vector<17x8xf32>
    %169 = tpu.matmul %133, %168, %cst_114 {dimension_numbers = #tpu.dot_dimension_numbers<[1], [0], [0], [1], [0, 0, 1, 1], [], []>} : vector<17x32xf32>, vector<32x8xf32>, vector<17x8xf32> -> vector<17x8xf32>
    %c5_115 = arith.constant 5 : index
    %c0_116 = arith.constant 0 : index
    %c0_117 = arith.constant 0 : index
    %170 = vector.load %arg4[%c5_115, %c0_116, %c0_117] : memref<12x32x8xf32, #tpu.memory_space<vmem>>, vector<1x32x8xf32>
    %171 = vector.shape_cast %170 : vector<1x32x8xf32> to vector<32x8xf32>
    %cst_118 = arith.constant dense<0.000000e+00> : vector<17x8xf32>
    %172 = tpu.matmul %135, %171, %cst_118 {dimension_numbers = #tpu.dot_dimension_numbers<[1], [0], [0], [1], [0, 0, 1, 1], [], []>} : vector<17x32xf32>, vector<32x8xf32>, vector<17x8xf32> -> vector<17x8xf32>
    %c9_119 = arith.constant 9 : index
    %c0_120 = arith.constant 0 : index
    %c0_121 = arith.constant 0 : index
    %173 = vector.load %arg4[%c9_119, %c0_120, %c0_121] : memref<12x32x8xf32, #tpu.memory_space<vmem>>, vector<1x32x8xf32>
    %174 = vector.shape_cast %173 : vector<1x32x8xf32> to vector<32x8xf32>
    %cst_122 = arith.constant dense<0.000000e+00> : vector<17x8xf32>
    %175 = tpu.matmul %137, %174, %cst_122 {dimension_numbers = #tpu.dot_dimension_numbers<[1], [0], [0], [1], [0, 0, 1, 1], [], []>} : vector<17x32xf32>, vector<32x8xf32>, vector<17x8xf32> -> vector<17x8xf32>
    %176 = tpu.transpose %172, [1, 0] : vector<17x8xf32> -> vector<8x17xf32>
    %cst_123 = arith.constant dense<0.000000e+00> : vector<17x17xf32>
    %177 = tpu.matmul %169, %176, %cst_123 {dimension_numbers = #tpu.dot_dimension_numbers<[1], [0], [0], [1], [0, 0, 1, 1], [], []>} : vector<17x8xf32>, vector<8x17xf32>, vector<17x17xf32> -> vector<17x17xf32>
    %cst_124 = arith.constant dense<0xFF800000> : vector<17xf32>
    %178 = vector.multi_reduction <maximumf>, %177, %cst_124 [1] : vector<17x17xf32> to vector<17xf32>
    %179 = vector.shape_cast %178 : vector<17xf32> to vector<17x1xf32>
    %180 = vector.broadcast %179 : vector<17x1xf32> to vector<17x17xf32>
    %181 = arith.subf %177, %180 : vector<17x17xf32>
    %182 = math.exp %181 : vector<17x17xf32>
    %cst_125 = arith.constant dense<0.000000e+00> : vector<17xf32>
    %183 = vector.multi_reduction <add>, %182, %cst_125 [1] : vector<17x17xf32> to vector<17xf32>
    %184 = vector.shape_cast %183 : vector<17xf32> to vector<17x1xf32>
    %185 = tpu.reciprocal %184 {approx = true} : vector<17x1xf32> -> vector<17x1xf32>
    %186 = vector.extract_strided_slice %182 {offsets = [0, 0], sizes = [1, 17], strides = [1, 1]} : vector<17x17xf32> to vector<1x17xf32>
    %187 = vector.extract_strided_slice %185 {offsets = [0, 0], sizes = [1, 1], strides = [1, 1]} : vector<17x1xf32> to vector<1x1xf32>
    %188 = vector.broadcast %187 : vector<1x1xf32> to vector<1x17xf32>
    %189 = arith.mulf %186, %188 : vector<1x17xf32>
    %cst_126 = arith.constant dense<0.000000e+00> : vector<17x8xf32>
    %190 = tpu.matmul %182, %175, %cst_126 {dimension_numbers = #tpu.dot_dimension_numbers<[1], [0], [0], [1], [0, 0, 1, 1], [], []>} : vector<17x17xf32>, vector<17x8xf32>, vector<17x8xf32> -> vector<17x8xf32>
    %191 = vector.broadcast %185 : vector<17x1xf32> to vector<17x8xf32>
    %192 = arith.mulf %190, %191 : vector<17x8xf32>
    %c1_127 = arith.constant 1 : index
    %c0_128 = arith.constant 0 : index
    %c0_129 = arith.constant 0 : index
    %193 = vector.load %arg5[%c1_127, %c0_128, %c0_129] : memref<4x8x32xf32, #tpu.memory_space<vmem>>, vector<1x8x32xf32>
    %194 = vector.shape_cast %193 : vector<1x8x32xf32> to vector<8x32xf32>
    %cst_130 = arith.constant dense<0.000000e+00> : vector<17x32xf32>
    %195 = tpu.matmul %192, %194, %cst_130 {dimension_numbers = #tpu.dot_dimension_numbers<[1], [0], [0], [1], [0, 0, 1, 1], [], []>} : vector<17x8xf32>, vector<8x32xf32>, vector<17x32xf32> -> vector<17x32xf32>
    %196 = arith.addf %166, %195 : vector<17x32xf32>
    %c2_131 = arith.constant 2 : index
    %c0_132 = arith.constant 0 : index
    %c0_133 = arith.constant 0 : index
    %197 = vector.load %arg4[%c2_131, %c0_132, %c0_133] : memref<12x32x8xf32, #tpu.memory_space<vmem>>, vector<1x32x8xf32>
    %198 = vector.shape_cast %197 : vector<1x32x8xf32> to vector<32x8xf32>
    %cst_134 = arith.constant dense<0.000000e+00> : vector<17x8xf32>
    %199 = tpu.matmul %133, %198, %cst_134 {dimension_numbers = #tpu.dot_dimension_numbers<[1], [0], [0], [1], [0, 0, 1, 1], [], []>} : vector<17x32xf32>, vector<32x8xf32>, vector<17x8xf32> -> vector<17x8xf32>
    %c6_135 = arith.constant 6 : index
    %c0_136 = arith.constant 0 : index
    %c0_137 = arith.constant 0 : index
    %200 = vector.load %arg4[%c6_135, %c0_136, %c0_137] : memref<12x32x8xf32, #tpu.memory_space<vmem>>, vector<1x32x8xf32>
    %201 = vector.shape_cast %200 : vector<1x32x8xf32> to vector<32x8xf32>
    %cst_138 = arith.constant dense<0.000000e+00> : vector<17x8xf32>
    %202 = tpu.matmul %135, %201, %cst_138 {dimension_numbers = #tpu.dot_dimension_numbers<[1], [0], [0], [1], [0, 0, 1, 1], [], []>} : vector<17x32xf32>, vector<32x8xf32>, vector<17x8xf32> -> vector<17x8xf32>
    %c10_139 = arith.constant 10 : index
    %c0_140 = arith.constant 0 : index
    %c0_141 = arith.constant 0 : index
    %203 = vector.load %arg4[%c10_139, %c0_140, %c0_141] : memref<12x32x8xf32, #tpu.memory_space<vmem>>, vector<1x32x8xf32>
    %204 = vector.shape_cast %203 : vector<1x32x8xf32> to vector<32x8xf32>
    %cst_142 = arith.constant dense<0.000000e+00> : vector<17x8xf32>
    %205 = tpu.matmul %137, %204, %cst_142 {dimension_numbers = #tpu.dot_dimension_numbers<[1], [0], [0], [1], [0, 0, 1, 1], [], []>} : vector<17x32xf32>, vector<32x8xf32>, vector<17x8xf32> -> vector<17x8xf32>
    %206 = tpu.transpose %202, [1, 0] : vector<17x8xf32> -> vector<8x17xf32>
    %cst_143 = arith.constant dense<0.000000e+00> : vector<17x17xf32>
    %207 = tpu.matmul %199, %206, %cst_143 {dimension_numbers = #tpu.dot_dimension_numbers<[1], [0], [0], [1], [0, 0, 1, 1], [], []>} : vector<17x8xf32>, vector<8x17xf32>, vector<17x17xf32> -> vector<17x17xf32>
    %cst_144 = arith.constant dense<0xFF800000> : vector<17xf32>
    %208 = vector.multi_reduction <maximumf>, %207, %cst_144 [1] : vector<17x17xf32> to vector<17xf32>
    %209 = vector.shape_cast %208 : vector<17xf32> to vector<17x1xf32>
    %210 = vector.broadcast %209 : vector<17x1xf32> to vector<17x17xf32>
    %211 = arith.subf %207, %210 : vector<17x17xf32>
    %212 = math.exp %211 : vector<17x17xf32>
    %cst_145 = arith.constant dense<0.000000e+00> : vector<17xf32>
    %213 = vector.multi_reduction <add>, %212, %cst_145 [1] : vector<17x17xf32> to vector<17xf32>
    %214 = vector.shape_cast %213 : vector<17xf32> to vector<17x1xf32>
    %215 = tpu.reciprocal %214 {approx = true} : vector<17x1xf32> -> vector<17x1xf32>
    %216 = vector.extract_strided_slice %212 {offsets = [0, 0], sizes = [1, 17], strides = [1, 1]} : vector<17x17xf32> to vector<1x17xf32>
    %217 = vector.extract_strided_slice %215 {offsets = [0, 0], sizes = [1, 1], strides = [1, 1]} : vector<17x1xf32> to vector<1x1xf32>
    %218 = vector.broadcast %217 : vector<1x1xf32> to vector<1x17xf32>
    %219 = arith.mulf %216, %218 : vector<1x17xf32>
    %cst_146 = arith.constant dense<0.000000e+00> : vector<17x8xf32>
    %220 = tpu.matmul %212, %205, %cst_146 {dimension_numbers = #tpu.dot_dimension_numbers<[1], [0], [0], [1], [0, 0, 1, 1], [], []>} : vector<17x17xf32>, vector<17x8xf32>, vector<17x8xf32> -> vector<17x8xf32>
    %221 = vector.broadcast %215 : vector<17x1xf32> to vector<17x8xf32>
    %222 = arith.mulf %220, %221 : vector<17x8xf32>
    %c2_147 = arith.constant 2 : index
    %c0_148 = arith.constant 0 : index
    %c0_149 = arith.constant 0 : index
    %223 = vector.load %arg5[%c2_147, %c0_148, %c0_149] : memref<4x8x32xf32, #tpu.memory_space<vmem>>, vector<1x8x32xf32>
    %224 = vector.shape_cast %223 : vector<1x8x32xf32> to vector<8x32xf32>
    %cst_150 = arith.constant dense<0.000000e+00> : vector<17x32xf32>
    %225 = tpu.matmul %222, %224, %cst_150 {dimension_numbers = #tpu.dot_dimension_numbers<[1], [0], [0], [1], [0, 0, 1, 1], [], []>} : vector<17x8xf32>, vector<8x32xf32>, vector<17x32xf32> -> vector<17x32xf32>
    %226 = arith.addf %196, %225 : vector<17x32xf32>
    %c3_151 = arith.constant 3 : index
    %c0_152 = arith.constant 0 : index
    %c0_153 = arith.constant 0 : index
    %227 = vector.load %arg4[%c3_151, %c0_152, %c0_153] : memref<12x32x8xf32, #tpu.memory_space<vmem>>, vector<1x32x8xf32>
    %228 = vector.shape_cast %227 : vector<1x32x8xf32> to vector<32x8xf32>
    %cst_154 = arith.constant dense<0.000000e+00> : vector<17x8xf32>
    %229 = tpu.matmul %133, %228, %cst_154 {dimension_numbers = #tpu.dot_dimension_numbers<[1], [0], [0], [1], [0, 0, 1, 1], [], []>} : vector<17x32xf32>, vector<32x8xf32>, vector<17x8xf32> -> vector<17x8xf32>
    %c7_155 = arith.constant 7 : index
    %c0_156 = arith.constant 0 : index
    %c0_157 = arith.constant 0 : index
    %230 = vector.load %arg4[%c7_155, %c0_156, %c0_157] : memref<12x32x8xf32, #tpu.memory_space<vmem>>, vector<1x32x8xf32>
    %231 = vector.shape_cast %230 : vector<1x32x8xf32> to vector<32x8xf32>
    %cst_158 = arith.constant dense<0.000000e+00> : vector<17x8xf32>
    %232 = tpu.matmul %135, %231, %cst_158 {dimension_numbers = #tpu.dot_dimension_numbers<[1], [0], [0], [1], [0, 0, 1, 1], [], []>} : vector<17x32xf32>, vector<32x8xf32>, vector<17x8xf32> -> vector<17x8xf32>
    %c11_159 = arith.constant 11 : index
    %c0_160 = arith.constant 0 : index
    %c0_161 = arith.constant 0 : index
    %233 = vector.load %arg4[%c11_159, %c0_160, %c0_161] : memref<12x32x8xf32, #tpu.memory_space<vmem>>, vector<1x32x8xf32>
    %234 = vector.shape_cast %233 : vector<1x32x8xf32> to vector<32x8xf32>
    %cst_162 = arith.constant dense<0.000000e+00> : vector<17x8xf32>
    %235 = tpu.matmul %137, %234, %cst_162 {dimension_numbers = #tpu.dot_dimension_numbers<[1], [0], [0], [1], [0, 0, 1, 1], [], []>} : vector<17x32xf32>, vector<32x8xf32>, vector<17x8xf32> -> vector<17x8xf32>
    %236 = tpu.transpose %232, [1, 0] : vector<17x8xf32> -> vector<8x17xf32>
    %cst_163 = arith.constant dense<0.000000e+00> : vector<17x17xf32>
    %237 = tpu.matmul %229, %236, %cst_163 {dimension_numbers = #tpu.dot_dimension_numbers<[1], [0], [0], [1], [0, 0, 1, 1], [], []>} : vector<17x8xf32>, vector<8x17xf32>, vector<17x17xf32> -> vector<17x17xf32>
    %cst_164 = arith.constant dense<0xFF800000> : vector<17xf32>
    %238 = vector.multi_reduction <maximumf>, %237, %cst_164 [1] : vector<17x17xf32> to vector<17xf32>
    %239 = vector.shape_cast %238 : vector<17xf32> to vector<17x1xf32>
    %240 = vector.broadcast %239 : vector<17x1xf32> to vector<17x17xf32>
    %241 = arith.subf %237, %240 : vector<17x17xf32>
    %242 = math.exp %241 : vector<17x17xf32>
    %cst_165 = arith.constant dense<0.000000e+00> : vector<17xf32>
    %243 = vector.multi_reduction <add>, %242, %cst_165 [1] : vector<17x17xf32> to vector<17xf32>
    %244 = vector.shape_cast %243 : vector<17xf32> to vector<17x1xf32>
    %245 = tpu.reciprocal %244 {approx = true} : vector<17x1xf32> -> vector<17x1xf32>
    %246 = vector.extract_strided_slice %242 {offsets = [0, 0], sizes = [1, 17], strides = [1, 1]} : vector<17x17xf32> to vector<1x17xf32>
    %247 = vector.extract_strided_slice %245 {offsets = [0, 0], sizes = [1, 1], strides = [1, 1]} : vector<17x1xf32> to vector<1x1xf32>
    %248 = vector.broadcast %247 : vector<1x1xf32> to vector<1x17xf32>
    %249 = arith.mulf %246, %248 : vector<1x17xf32>
    %cst_166 = arith.constant dense<0.000000e+00> : vector<17x8xf32>
    %250 = tpu.matmul %242, %235, %cst_166 {dimension_numbers = #tpu.dot_dimension_numbers<[1], [0], [0], [1], [0, 0, 1, 1], [], []>} : vector<17x17xf32>, vector<17x8xf32>, vector<17x8xf32> -> vector<17x8xf32>
    %251 = vector.broadcast %245 : vector<17x1xf32> to vector<17x8xf32>
    %252 = arith.mulf %250, %251 : vector<17x8xf32>
    %c3_167 = arith.constant 3 : index
    %c0_168 = arith.constant 0 : index
    %c0_169 = arith.constant 0 : index
    %253 = vector.load %arg5[%c3_167, %c0_168, %c0_169] : memref<4x8x32xf32, #tpu.memory_space<vmem>>, vector<1x8x32xf32>
    %254 = vector.shape_cast %253 : vector<1x8x32xf32> to vector<8x32xf32>
    %cst_170 = arith.constant dense<0.000000e+00> : vector<17x32xf32>
    %255 = tpu.matmul %252, %254, %cst_170 {dimension_numbers = #tpu.dot_dimension_numbers<[1], [0], [0], [1], [0, 0, 1, 1], [], []>} : vector<17x8xf32>, vector<8x32xf32>, vector<17x32xf32> -> vector<17x32xf32>
    %256 = arith.addf %226, %255 : vector<17x32xf32>
    %c1_171 = arith.constant 1 : index
    %c0_172 = arith.constant 0 : index
    %c0_173 = arith.constant 0 : index
    %257 = vector.load %arg6[%c1_171, %c0_172, %c0_173] : memref<2x17x32xf32, #tpu.memory_space<vmem>>, vector<1x17x32xf32>
    %258 = vector.shape_cast %257 : vector<1x17x32xf32> to vector<17x32xf32>
    %259 = vector.shape_cast %256 : vector<17x32xf32> to vector<1x17x32xf32>
    tpu.vector_store %arg6[%c1_171, %c0_172, %c0_173], %259 {strides = array<i32>} : memref<2x17x32xf32, #tpu.memory_space<vmem>>, vector<1x17x32xf32>,
    %260 = tpu.concatenate %160, %189, %219, %249 in 0 : vector<1x17xf32>, vector<1x17xf32>, vector<1x17xf32>, vector<1x17xf32> -> vector<4x17xf32>
    %c1_174 = arith.constant 1 : index
    %c0_175 = arith.constant 0 : index
    %c0_176 = arith.constant 0 : index
    %261 = vector.load %arg7[%c1_174, %c0_175, %c0_176] : memref<2x4x17xf32, #tpu.memory_space<vmem>>, vector<1x4x17xf32>
    %262 = vector.shape_cast %261 : vector<1x4x17xf32> to vector<4x17xf32>
    %263 = vector.shape_cast %260 : vector<4x17xf32> to vector<1x4x17xf32>
    tpu.vector_store %arg7[%c1_174, %c0_175, %c0_176], %263 {strides = array<i32>} : memref<2x4x17xf32, #tpu.memory_space<vmem>>, vector<1x4x17xf32>,
    return
  }
  func.func @transform_0(%arg0: i32) -> (i32, i32, i32) {
    %c0_i32 = arith.constant 0 : i32
    %c0_i32_0 = arith.constant 0 : i32
    %c0_i32_1 = arith.constant 0 : i32
    return %arg0, %c0_i32, %c0_i32_0 : i32, i32, i32
  }
  func.func @transform_1(%arg0: i32) -> (i32, i32, i32) {
    %c0_i32 = arith.constant 0 : i32
    %c0_i32_0 = arith.constant 0 : i32
    %c0_i32_1 = arith.constant 0 : i32
    return %arg0, %c0_i32, %c0_i32_0 : i32, i32, i32
  }
  func.func @transform_2(%arg0: i32) -> (i32, i32, i32) {
    %c0_i32 = arith.constant 0 : i32
    %c0_i32_0 = arith.constant 0 : i32
    %c0_i32_1 = arith.constant 0 : i32
    return %arg0, %c0_i32, %c0_i32_0 : i32, i32, i32
  }
  func.func @transform_3(%arg0: i32) -> (i32, i32, i32) {
    %c0_i32 = arith.constant 0 : i32
    %c0_i32_0 = arith.constant 0 : i32
    %c0_i32_1 = arith.constant 0 : i32
    %c0_i32_2 = arith.constant 0 : i32
    return %c0_i32, %c0_i32_0, %c0_i32_1 : i32, i32, i32
  }
  func.func @transform_4(%arg0: i32) -> (i32, i32, i32) {
    %c0_i32 = arith.constant 0 : i32
    %c0_i32_0 = arith.constant 0 : i32
    %c0_i32_1 = arith.constant 0 : i32
    %c0_i32_2 = arith.constant 0 : i32
    return %c0_i32, %c0_i32_0, %c0_i32_1 : i32, i32, i32
  }
  func.func @transform_5(%arg0: i32) -> (i32, i32, i32) {
    %c0_i32 = arith.constant 0 : i32
    %c0_i32_0 = arith.constant 0 : i32
    %c0_i32_1 = arith.constant 0 : i32
    return %arg0, %c0_i32, %c0_i32_0 : i32, i32, i32
  }
  func.func @transform_6(%arg0: i32) -> (i32, i32, i32) {
    %c0_i32 = arith.constant 0 : i32
    %c0_i32_0 = arith.constant 0 : i32
    %c0_i32_1 = arith.constant 0 : i32
    return %arg0, %c0_i32, %c0_i32_0 : i32, i32, i32
  }
}

</mosaic_0001>

<bundles_post_ra>
// kernel: _forward_impl.1
= control target key start
LH: loop header
LB: loop body
LE: loop exit
PB: predicated region body
PF: predicated region fallthrough
CT: control target
= control target key end

     0   :  { %s6600_s21 = smov 0   ;;  %s7880_s0 = inlined_call_operand.vmem [shape: f32[4,17,32], index: 0, kind: input, shape index: {}]   ;;  %s7881_s1 = inlined_call_operand.vmem [shape: f32[4,17,32], index: 1, kind: input, shape index: {}]   ;;  %s7882_s2 = inlined_call_operand.vmem [shape: f32[4,17,32], index: 2, kind: input, shape index: {}]   ;;  %s7883_s3 = inlined_call_operand.vmem [shape: f32[12,32,8], index: 3, kind: input, shape index: {}]   ;;  %s7884_s4 = inlined_call_operand.vmem [shape: f32[4,8,32], index: 4, kind: input, shape index: {}]   ;;  %s7885_s5 = inlined_call_operand.vmem [shape: f32[4,17,32], index: 5, kind: output, shape index: {0}]   ;;  %s7886_s6 = inlined_call_operand.vmem [shape: f32[4,4,17], index: 6, kind: output, shape index: {1}]  }
   0x1 LB: > { %s5112_s22 = sadd.s32 4294967295, %s6561_s21   ;;  %p5116_p0 = scmp.ge.s32.totalorder %s6561_s21, 1  ;;  %s6561_s21 = sphi %s6600_s21, %s17_s21  }
   0x2   : > { %p241_p1 = scmp.lt.s32.totalorder %s6561_s21, 3 }
   0x4   : > { %p242_p2 = pnand %p5116_p0, %p241_p1 }
   0x5   : > { %s5117_s25 = sshll.u32 (!%p242_p2), %s5112_s22, 1 }
   0x6   : > { %245 = sbr.rel (%p242_p2) target bundleno = 5936 (0x1730), region = 40  ;;  %p291_p3 = scmp.lt.s32.totalorder (!%p242_p2), %s5117_s25, 3 }
   0xb   : > { %v5133_v0 = vld [vmem:[%s7883_s3 + $0x98] sm:$0xff]  ;;  %v6563_v1 = vmov 0.0   ;;  %v5132_v2 = vld [vmem:[%s7883_s3 + $0x90] sm:$0xff]  ;;  %vm6564_vm0 = vmmov 0   ;;  %v5131_v5 = vld [vmem:[%s7883_s3 + $0x88] sm:$0xff]  ;;  %s7888_s25 = smov (!%p291_p3, %s5117_s25), 3 }
   0xc   : > { %5725 = vmatprep.subr.mxu1 %v6563_v1  ;;  %5733 = vmatprep.mubr.msk.f32.mxu1 %vm6564_vm0, %v6563_v1  ;;  %v336_v3 = vld [vmem:[%s7883_s3 + $0x18] sm:$0xff]  ;;  %v335_v4 = vld [vmem:[%s7883_s3 + $0x10] sm:$0xff]  ;;  %v334_v6 = vld [vmem:[%s7883_s3 + $0x8] sm:$0xff]  ;;  %s6639_s14 = smul.u32 24, %s7888_s25  ;;  %vm337_vm1 = vcmask 261120   ;;  %vm615_vm2 = vcmask 64512  }
   0xd   : > { %5726 = vmatpush3.msra.mxu1 %v5133_v0  ;;  %5708 = vmatprep.subr.mxu0 %v6563_v1  ;;  %v5130_v7 = vld [vmem:[%s7883_s3 + $0x80] sm:$0xff]  ;;  %v5140_v15 = vld [vmem:[%s7883_s3 + $0x118] sm:$0xff]  ;;  %v5139_v16 = vld [vmem:[%s7883_s3 + $0x110] sm:$0xff]  ;;  %vm756_vm3 = vcmask 1040384   ;;  %vm714_vm4 = vcmask 138240   ;;  %vm721_vm5 = vcmask 131072  }
   0xe   : > { %5727 = vmatprep.subr.mxu1 %v6563_v1  ;;  %5709 = vmatpush3.msra.mxu0 %v336_v3  ;;  %v333_v8 = vld [vmem:[%s7883_s3] sm:$0xff]  ;;  %s6650_s19 = scalar_lea.vmem %s7881_s1, %s6639_s14  ;;  %s6656_s23 = scalar_lea.vmem %s7880_s0, %s6639_s14  ;;  %v5138_v17 = vld [vmem:[%s7883_s3 + $0x108] sm:$0xff]  ;;  %v5157_v49 = vld [vmem:[%s7883_s3 + $0x38] sm:$0xff]  ;;  %vm2663_vm6 = vcmask 1041408   ;;  %vm2665_vm7 = vcmask 1042432   ;;  %vm2667_vm8 = vcmask 134144  }
   0xf   : > { %5728 = vmatpush3.msra.mxu1 %v5132_v2  ;;  %5710 = vmatprep.subr.mxu0 %v6563_v1  ;;  %v6659_v9 = vld [vmem:[%s6650_s19] sm:$0xff]  ;;  %v6670_v11 = vld [vmem:[%s6650_s19 + $0x8] sm:$0xff]  ;;  %v6688_v13 = vld [vmem:[%s6650_s19 + $0x10] sm:$0x1]  ;;  %s6719_s9 = scalar_lea.vmem %s7882_s2, %s6639_s14  ;;  %s5126_s10 = sshll.u32 %s7888_s25, 2  ;;  %vm2651_vm9 = vcmask 253952  }
  0x10   : > { %5729 = vmatprep.subr.mxu1 %v6563_v1  ;;  %5711 = vmatpush3.msra.mxu0 %v335_v4  ;;  %v6665_v10 = vld [vmem:[%s6656_s23] sm:$0xff]  ;;  %v6680_v12 = vld [vmem:[%s6656_s23 + $0x8] sm:$0xff]  ;;  %v6695_v14 = vld [vmem:[%s6656_s23 + $0x10] sm:$0x1]  ;;  %s7273_s13 = scalar_lea.vmem %s7886_s6, %s5126_s10  ;;  %s7366_s12 = scalar_lea.vmem %s7885_s5, %s6639_s14 }
  0x11   : > { %5730 = vmatpush3.msra.mxu1 %v5131_v5  ;;  %5712 = vmatprep.subr.mxu0 %v6563_v1  ;;  %v5137_v18 = vld [vmem:[%s7883_s3 + $0x100] sm:$0xff]  ;;  %v6735_v20 = vld [vmem:[%s6719_s9 + $0x8] sm:$0xff]  ;;  %v6742_v21 = vld [vmem:[%s6719_s9 + $0x10] sm:$0x1] }
  0x12   : > { %5731 = vmatprep.subr.mxu1 %v6563_v1  ;;  %5713 = vmatpush3.msra.mxu0 %v334_v6  ;;  %v6726_v19 = vld [vmem:[%s6719_s9] sm:$0xff]  ;;  %v5156_v50 = vld [vmem:[%s7883_s3 + $0x30] sm:$0xff]  ;;  %v5155_v51 = vld [vmem:[%s7883_s3 + $0x28] sm:$0xff] }
  0x13   : > { %5732 = vmatpush3.msra.mxu1 %v5130_v7  ;;  %5714 = vmatprep.subr.mxu0 %v6563_v1  ;;  %v5154_v52 = vld [vmem:[%s7883_s3 + $0x20] sm:$0xff]  ;;  %v5164_v62 = vld [vmem:[%s7883_s3 + $0xb8] sm:$0xff]  ;;  %v5163_v0 = vld [vmem:[%s7883_s3 + $0xb0] sm:$0xff] }
  0x14   : > { %5734 = vmatmul.mubr.msk.f32.vlgmr.msra.gmra.mxu1 %vm337_vm1, %v6659_v9  ;;  %5715 = vmatpush3.msra.mxu0 %v333_v8  ;;  %v5162_v2 = vld [vmem:[%s7883_s3 + $0xa8] sm:$0xff]  ;;  %v5161_v4 = vld [vmem:[%s7883_s3 + $0xa0] sm:$0xff] }
  0x15   : > { %5736 = vmatprep.mubr.msk.f32.mxu1 %vm6564_vm0, %v6563_v1  ;;  %5716 = vmatprep.mubr.msk.f32.mxu0 %vm6564_vm0, %v6563_v1 }
  0x16   : > { %5717 = vmatmul.mubr.msk.f32.vlgmr.msra.gmra.mxu0 %vm337_vm1, %v6665_v10  ;;  %5759 = vmatprep.subr.mxu1 %v6563_v1 }
  0x17   : > { %5719 = vmatprep.mubr.msk.f32.mxu0 %vm6564_vm0, %v6563_v1  ;;  %5742 = vmatprep.subr.mxu0 %v6563_v1 }
  0x18   : > { %5737 = vmatmul.mubr.msk.f32.gmra.mxu1 %vm337_vm1, %v6670_v11  ;;  %5743 = vmatpush3.msra.mxu0 %v5140_v15 }
  0x19   : > { %5739 = vmatprep.mubr.msk.f32.mxu1 %vm6564_vm0, %v6563_v1  ;;  %5744 = vmatprep.subr.mxu0 %v6563_v1 }
  0x1a   : > { %5720 = vmatmul.mubr.msk.f32.gmra.mxu0 %vm337_vm1, %v6680_v12 }
  0x1b   : > { %5722 = vmatprep.mubr.msk.f32.mxu0 %vm6564_vm0, %v6563_v1  ;;  %5745 = vmatpush3.msra.mxu0 %v5139_v16 }
  0x1c   : > { %5740 = vmatmul.mubr.msk.f32.gmra.mxu1 %vm337_vm1, %v6688_v13  ;;  %5746 = vmatprep.subr.mxu0 %v6563_v1 }
  0x1d   : > { %5765 = vmatprep.mubr.msk.f32.mxu1 %vm6564_vm0, %v6563_v1  ;;  %5747 = vmatpush3.msra.mxu0 %v5138_v17 }
  0x1e   : > { %5723 = vmatmul.mubr.msk.f32.gmra.mxu0 %vm337_vm1, %v6695_v14  ;;  %5748 = vmatprep.subr.mxu0 %v6563_v1 }
  0x1f   : > { %5750 = vmatprep.mubr.msk.f32.mxu0 %vm6564_vm0, %v6563_v1  ;;  %5749 = vmatpush3.msra.mxu0 %v5137_v18  ;;  %v5171_v18 = vld [vmem:[%s7883_s3 + $0x138] sm:$0xff] }
  0x20   : > { %5774 = vmatprep.subr.mxu0 %v6563_v1 }
  0x22   : > { %5751 = vmatmul.mubr.msk.f32.vlgmr.msra.gmra.mxu0 %vm337_vm1, %v6726_v19 }
  0x23   : > { %5753 = vmatprep.mubr.msk.f32.mxu0 %vm6564_vm0, %v6563_v1 }
  0x26   : > { %5754 = vmatmul.mubr.msk.f32.gmra.mxu0 %vm337_vm1, %v6735_v20 }
  0x27   : > { %5756 = vmatprep.mubr.msk.f32.mxu0 %vm6564_vm0, %v6563_v1 }
  0x2a   : > { %5757 = vmatmul.mubr.msk.f32.gmra.mxu0 %vm337_vm1, %v6742_v21 }
  0x2b   : > { %5780 = vmatprep.mubr.msk.f32.mxu0 %vm6564_vm0, %v6563_v1 }
  0xd4   : > { %v507_v22 = vpop.f32.mrf.mxu1 }
  0xd6   : > { %v5735_v23 = vpop.f32.mrf.mxu1  ;;  %v413_v24 = vpop.f32.mrf.mxu0 }
  0xd7   : > { %v5169_v23 = vld [vmem:[%s7883_s3 + $0x128] sm:$0xff] }
  0xd8   : > { %v512_v25 = vpop.f32.mrf.mxu1  ;;  %v5718_v26 = vpop.f32.mrf.mxu0 }
  0xda   : > { %v5738_v27 = vpop.f32.mrf.mxu1  ;;  %v418_v28 = vpop.f32.mrf.mxu0 }
  0xdc   : > { %v517_v29 = vpop.f32.mrf.mxu1  ;;  %v5721_v30 = vpop.f32.mrf.mxu0 }
  0xdd   : > { %5760 = vmatpush3.xpose.msk.msra.mxu1 %vm615_vm2, %v517_v29 }
  0xde   : > { %v5741_v31 = vpop.f32.mrf.mxu1  ;;  %5761 = vmatprep.subr.mxu1 %v6563_v1  ;;  %v423_v32 = vpop.f32.mrf.mxu0 }
  0xe0   : > { %v5724_v33 = vpop.f32.mrf.mxu0 }
  0xe1   : > { %5762 = vmatpush3.xpose.msk.msra.mxu1 %vm615_vm2, %v512_v25 }
  0xe2   : > { %5763 = vmatprep.subr.mxu1 %v6563_v1  ;;  %v601_v34 = vpop.f32.mrf.mxu0 }
  0xe4   : > { %v5752_v35 = vpop.f32.mrf.mxu0 }
  0xe5   : > { %5764 = vmatpush3.xpose.msk.msra.mxu1 %vm615_vm2, %v507_v22  ;;  %v5170_v22 = vld [vmem:[%s7883_s3 + $0x130] sm:$0xff] }
  0xe6   : > { %5789 = vmatprep.subr.mxu1 %v6563_v1  ;;  %v606_v36 = vpop.f32.mrf.mxu0 }
  0xe8   : > { %5766 = vmatmul.mubr.msk.f32.vlgmr.msra.gmra.mxu1 %vm615_vm2, %v413_v24  ;;  %v5755_v37 = vpop.f32.mrf.mxu0  ;;  %v5168_v24 = vld [vmem:[%s7883_s3 + $0x120] sm:$0xff] }
  0xe9   : > { %5768 = vmatprep.mubr.msk.f32.mxu1 %vm6564_vm0, %v6563_v1  ;;  %5790 = vmatpush3.msra.mxu1 %v5157_v49 }
  0xea   : > { %v611_v38 = vpop.f32.mrf.mxu0  ;;  %5791 = vmatprep.subr.mxu1 %v6563_v1 }
  0xeb   : > { %5775 = vmatpush3.msk.msra.mxu0 %vm756_vm3, %v611_v38  ;;  %5792 = vmatpush3.msra.mxu1 %v5156_v50 }
  0xec   : > { %5769 = vmatmul.mubr.msk.f32.gmra.mxu1 %vm615_vm2, %v418_v28  ;;  %5776 = vmatprep.subr.mxu0 %v6563_v1  ;;  %v5758_v39 = vpop.f32.mrf.mxu0 }
  0xed   : > { %5771 = vmatprep.mubr.msk.f32.mxu1 %vm6564_vm0, %v6563_v1  ;;  %5777 = vmatpush3.msra.mxu0 %v606_v36 }
  0xee   : > { %5778 = vmatprep.subr.mxu0 %v6563_v1  ;;  %5793 = vmatprep.subr.mxu1 %v6563_v1 }
  0xef   : > { %5779 = vmatpush3.msra.mxu0 %v601_v34  ;;  %5794 = vmatpush3.msra.mxu1 %v5155_v51 }
  0xf0   : > { %5772 = vmatmul.mubr.msk.f32.gmra.mxu1 %vm615_vm2, %v423_v32  ;;  %5806 = vmatprep.subr.mxu0 %v6563_v1 }
  0xf1   : > { %5797 = vmatprep.mubr.msk.f32.mxu1 %vm6564_vm0, %v6563_v1  ;;  %5795 = vmatprep.subr.mxu1 %v6563_v1 }
  0xf2   : > { %5796 = vmatpush3.msra.mxu1 %v5154_v52 }
  0xf3   : > { %5823 = vmatprep.subr.mxu1 %v6563_v1 }
  0xf4   : > { %5798 = vmatmul.mubr.msk.f32.vlgmr.msra.gmra.mxu1 %vm337_vm1, %v6665_v10 }
  0xf5   : > { %5800 = vmatprep.mubr.msk.f32.mxu1 %vm6564_vm0, %v6563_v1  ;;  %5824 = vmatpush3.msra.mxu1 %v5171_v18 }
  0xf6   : > { %5825 = vmatprep.subr.mxu1 %v6563_v1 }
  0xf7   : > { %5826 = vmatpush3.msra.mxu1 %v5170_v22 }
  0xf8   : > { %5801 = vmatmul.mubr.msk.f32.gmra.mxu1 %vm337_vm1, %v6680_v12  ;;  %5827 = vmatprep.subr.mxu1 %v6563_v1 }
  0xf9   : > { %5803 = vmatprep.mubr.msk.f32.mxu1 %vm6564_vm0, %v6563_v1  ;;  %5828 = vmatpush3.msra.mxu1 %v5169_v23 }
  0xfa   : > { %5829 = vmatprep.subr.mxu1 %v6563_v1 }
  0xfb   : > { %5830 = vmatpush3.msra.mxu1 %v5168_v24 }
  0xfc   : > { %5804 = vmatmul.mubr.msk.f32.gmra.mxu1 %vm337_vm1, %v6695_v14  ;;  %5855 = vmatprep.subr.mxu1 %v6563_v1 }
  0xfd   : > { %5831 = vmatprep.mubr.msk.f32.mxu1 %vm6564_vm0, %v6563_v1 }
 0x100   : > { %5832 = vmatmul.mubr.msk.f32.vlgmr.msra.gmra.mxu1 %vm337_vm1, %v6726_v19 }
 0x101   : > { %5834 = vmatprep.mubr.msk.f32.mxu1 %vm6564_vm0, %v6563_v1 }
 0x104   : > { %5835 = vmatmul.mubr.msk.f32.gmra.mxu1 %vm337_vm1, %v6735_v20 }
 0x105   : > { %5837 = vmatprep.mubr.msk.f32.mxu1 %vm6564_vm0, %v6563_v1 }
 0x108   : > { %5838 = vmatmul.mubr.msk.f32.gmra.mxu1 %vm337_vm1, %v6742_v21 }
 0x109   : > { %5861 = vmatprep.mubr.msk.f32.mxu1 %vm6564_vm0, %v6563_v1 }
 0x1a8   : > { %v700_v40 = vpop.f32.mrf.mxu1 }
 0x1a9   : > { %v715_v41 = vsel %vm714_vm4, %v700_v40, -inf }
 0x1aa   : > { %716 = vmax.xlane.f32.xlu0 %v715_v41  ;;  %v5767_v42 = vpop.f32.mrf.mxu1 }
 0x1ac   : > { %v705_v43 = vpop.f32.mrf.mxu1 }
 0x1ad   : > { %v718_v44 = vsel %vm714_vm4, %v705_v43, -inf }
 0x1ae   : > { %719 = vmax.xlane.f32.xlu0 %v718_v44  ;;  %v5770_v45 = vpop.f32.mrf.mxu1 }
 0x1b0   : > { %v710_v46 = vpop.f32.mrf.mxu1 }
 0x1b1   : > { %v722_v47 = vsel %vm721_vm5, %v710_v46, -inf }
 0x1b2   : > { %723 = vmax.xlane.f32.xlu1 %v722_v47  ;;  %v5773_v48 = vpop.f32.mrf.mxu1 }
 0x1b4   : > { %v915_v6 = vpop.f32.mrf.mxu1 }
 0x1b6   : > { %v5799_v7 = vpop.f32.mrf.mxu1 }
 0x1b8   : > { %v920_v8 = vpop.f32.mrf.mxu1 }
 0x1ba   : > { %v5802_v15 = vpop.f32.mrf.mxu1 }
 0x1bc   : > { %v925_v16 = vpop.f32.mrf.mxu1 }
 0x1be   : > { %v5805_v17 = vpop.f32.mrf.mxu1 }
 0x1c0   : > { %v1085_v37 = vpop.f32.mrf.mxu1 }
 0x1c2   : > { %v5833_v38 = vpop.f32.mrf.mxu1 }
 0x1c4   : > { %v1090_v39 = vpop.f32.mrf.mxu1 }
 0x233   : > { %v717_v53 = vpop.xlane.xlu0 %716 }
 0x234   : > { %v725_v54 = vsub.f32 %v700_v40, %v717_v53  ;;  %v5836_v40 = vpop.f32.mrf.mxu1 }
 0x236   : > { %v728_v55 = vmul.f32 1.442695, %v725_v54  ;;  %v1095_v41 = vpop.f32.mrf.mxu1 }
 0x237   : > { %v720_v56 = vpop.xlane.xlu0 %719  ;;  %5856 = vmatpush3.msk.msra.mxu1 %vm756_vm3, %v1095_v41  ;;  %v5195_v41 = vld [vmem:[%s7883_s3 + $0x58] sm:$0xff] }
 0x238   : > { %6455 = vpow2.f32 %v728_v55  ;;  %v726_v57 = vsub.f32 %v705_v43, %v720_v56  ;;  %5857 = vmatprep.subr.mxu1 %v6563_v1  ;;  %v5839_v42 = vpop.f32.mrf.mxu1 }
 0x239   : > { %5858 = vmatpush3.msra.mxu1 %v1090_v39 }
 0x23a   : > { %v730_v58 = vmul.f32 1.442695, %v726_v57  ;;  %5859 = vmatprep.subr.mxu1 %v6563_v1 }
 0x23b   : > { %v724_v59 = vpop.xlane.xlu1 %723  ;;  %5860 = vmatpush3.msra.mxu1 %v1085_v37 }
 0x23c   : > { %6457 = vpow2.f32 %v730_v58  ;;  %v727_v60 = vsub.f32 %v710_v46, %v724_v59  ;;  %5881 = vmatprep.subr.mxu1 %v6563_v1 }
 0x23e   : > { %v732_v61 = vmul.f32 1.442695, %v727_v60 }
 0x240   : > { %6459 = vpow2.f32 %v732_v61 }
 0x245   : > { %v6801_v63 = vpop.eup %6455 }
 0x246   : > { %5781 = vmatmul.mubr.msk.f32.vlgmr.msra.gmra.mxu0 %vm714_vm4, %v6801_v63  ;;  %v734_v50 = vsel %vm714_vm4, %v6801_v63, 0.0 }
 0x247   : > { %5807 = vmatpush3.msra.mxu0 %v5164_v62  ;;  %5783 = vmatprep.mubr.msk.f32.mxu0 %vm6564_vm0, %v6563_v1 }
 0x248   : > { %5808 = vmatprep.subr.mxu0 %v6563_v1 }
 0x249   : > { %v6814_v3 = vpop.eup %6457  ;;  %5809 = vmatpush3.msra.mxu0 %v5163_v0 }
 0x24a   : > { %5784 = vmatmul.mubr.msk.f32.gmra.mxu0 %vm714_vm4, %v6814_v3  ;;  %5810 = vmatprep.subr.mxu0 %v6563_v1  ;;  %v737_v54 = vsel %vm714_vm4, %v6814_v3, 0.0 }
 0x24b   : > { %5786 = vmatprep.mubr.msk.f32.mxu0 %vm6564_vm0, %v6563_v1  ;;  %5811 = vmatpush3.msra.mxu0 %v5162_v2 }
 0x24c   : > { %5812 = vmatprep.subr.mxu0 %v6563_v1 }
 0x24d   : > { %v6825_v5 = vpop.eup %6459  ;;  %5813 = vmatpush3.msra.mxu0 %v5161_v4 }
 0x24e   : > { %5787 = vmatmul.mubr.msk.f32.gmra.mxu0 %vm714_vm4, %v6825_v5  ;;  %5840 = vmatprep.subr.mxu0 %v6563_v1  ;;  %v740_v53 = vsel %vm721_vm5, %v6825_v5, 0.0 }
 0x24f   : > { %5814 = vmatprep.mubr.msk.f32.mxu0 %vm6564_vm0, %v6563_v1 }
 0x252   : > { %5815 = vmatmul.mubr.msk.f32.vlgmr.msra.gmra.mxu0 %vm337_vm1, %v6659_v9 }
 0x253   : > { %5817 = vmatprep.mubr.msk.f32.mxu0 %vm6564_vm0, %v6563_v1 }
 0x256   : > { %5818 = vmatmul.mubr.msk.f32.gmra.mxu0 %vm337_vm1, %v6670_v11 }
 0x257   : > { %5820 = vmatprep.mubr.msk.f32.mxu0 %vm6564_vm0, %v6563_v1 }
 0x25a   : > { %5821 = vmatmul.mubr.msk.f32.gmra.mxu0 %vm337_vm1, %v6688_v13 }
 0x25b   : > { %5846 = vmatprep.mubr.msk.f32.mxu0 %vm6564_vm0, %v6563_v1 }
 0x306   : > { %v6872_v25 = vpop.f32.mrf.mxu0 }
 0x308   : > { %v5782_v26 = vpop.f32.mrf.mxu0 }
 0x30a   : > { %v6874_v27 = vpop.f32.mrf.mxu0 }
 0x30c   : > { %v5785_v28 = vpop.f32.mrf.mxu0 }
 0x30e   : > { %v6876_v29 = vpop.f32.mrf.mxu0 }
 0x310   : > { %v5788_v30 = vpop.f32.mrf.mxu0 }
 0x311   : > { %v5185_v30 = vld [vmem:[%s7884_s4 + $0x8] sm:$0xff] }
 0x312   : > { %v1000_v31 = vpop.f32.mrf.mxu0 }
 0x314   : > { %v5816_v32 = vpop.f32.mrf.mxu0 }
 0x316   : > { %v1005_v33 = vpop.f32.mrf.mxu0 }
 0x318   : > { %v5819_v34 = vpop.f32.mrf.mxu0 }
 0x31a   : > { %v1010_v35 = vpop.f32.mrf.mxu0 }
 0x31b   : > { %5841 = vmatpush3.xpose.msk.msra.mxu0 %vm615_vm2, %v1010_v35 }
 0x31c   : > { %v5822_v36 = vpop.f32.mrf.mxu0  ;;  %5842 = vmatprep.subr.mxu0 %v6563_v1 }
 0x31f   : > { %5843 = vmatpush3.xpose.msk.msra.mxu0 %vm615_vm2, %v1005_v33 }
 0x320   : > { %5844 = vmatprep.subr.mxu0 %v6563_v1 }
 0x323   : > { %5845 = vmatpush3.xpose.msk.msra.mxu0 %vm615_vm2, %v1000_v31  ;;  %v5199_v31 = vld [vmem:[%s7883_s3 + $0xc0] sm:$0xff] }
 0x324   : > { %5870 = vmatprep.subr.mxu0 %v6563_v1 }
 0x326   : > { %5847 = vmatmul.mubr.msk.f32.vlgmr.msra.gmra.mxu0 %vm615_vm2, %v915_v6  ;;  %v843_v6 = vld [vmem:[%s7884_s4] sm:$0xff] }
 0x327   : > { %5849 = vmatprep.mubr.msk.f32.mxu0 %vm6564_vm0, %v6563_v1  ;;  %5871 = vmatpush3.msra.mxu0 %v5185_v30 }
 0x328   : > { %5892 = vmatprep.subr.mxu0 %v6563_v1 }
 0x32a   : > { %5850 = vmatmul.mubr.msk.f32.gmra.mxu0 %vm615_vm2, %v920_v8 }
 0x32b   : > { %5852 = vmatprep.mubr.msk.f32.mxu0 %vm6564_vm0, %v6563_v1 }
 0x32e   : > { %5853 = vmatmul.mubr.msk.f32.gmra.mxu0 %vm615_vm2, %v925_v16 }
 0x32f   : > { %5872 = vmatprep.mubr.msk.f32.mxu0 %vm6564_vm0, %v6563_v1 }
 0x3e6   : > { %v1183_v43 = vpop.f32.mrf.mxu0 }
 0x3e7   : > { %v1197_v44 = vsel %vm714_vm4, %v1183_v43, -inf }
 0x3e8   : > { %1198 = vmax.xlane.f32.xlu1 %v1197_v44  ;;  %v5848_v45 = vpop.f32.mrf.mxu0 }
 0x3ea   : > { %v1188_v46 = vpop.f32.mrf.mxu0 }
 0x3eb   : > { %v1200_v47 = vsel %vm714_vm4, %v1188_v46, -inf }
 0x3ec   : > { %1201 = vmax.xlane.f32.xlu0 %v1200_v47  ;;  %v5851_v48 = vpop.f32.mrf.mxu0 }
 0x3ed   : > { %v5192_v48 = vld [vmem:[%s7883_s3 + $0x40] sm:$0xff] }
 0x3ee   : > { %v1193_v49 = vpop.f32.mrf.mxu0 }
 0x3ef   : > { %v1203_v51 = vsel %vm721_vm5, %v1193_v49, -inf }
 0x3f0   : > { %735 = vadd.xlane.f32.xlu0 %v734_v50  ;;  %1204 = vmax.xlane.f32.xlu1 %v1203_v51  ;;  %v5854_v52 = vpop.f32.mrf.mxu0 }
 0x3f4   : > { %741 = vadd.xlane.f32.xlu0 %v740_v53  ;;  %738 = vadd.xlane.f32.xlu1 %v737_v54 }
 0x471   : > { %v1199_v55 = vpop.xlane.xlu1 %1198 }
 0x472   : > { %v1206_v56 = vsub.f32 %v1183_v43, %v1199_v55 }
 0x474   : > { %v1209_v57 = vmul.f32 1.442695, %v1206_v56 }
 0x475   : > { %v1202_v58 = vpop.xlane.xlu0 %1201 }
 0x476   : > { %6461 = vpow2.f32 %v1209_v57  ;;  %v1207_v59 = vsub.f32 %v1188_v46, %v1202_v58  ;;  %v5193_v46 = vld [vmem:[%s7883_s3 + $0x48] sm:$0xff] }
 0x478   : > { %v1211_v60 = vmul.f32 1.442695, %v1207_v59 }
 0x479   : > { %v1205_v61 = vpop.xlane.xlu1 %1204  ;;  %v736_v62 = vpop.xlane.xlu0 %735 }
 0x47a   : > { %6463 = vpow2.f32 %v1211_v60  ;;  %v1208_v0 = vsub.f32 %v1193_v49, %v1205_v61 }
 0x47b   : > { %6465 = vrcp.f32 %v736_v62 }
 0x47c   : > { %v1213_v2 = vmul.f32 1.442695, %v1208_v0 }
 0x47d   : > { %v739_v4 = vpop.xlane.xlu1 %738  ;;  %v742_v3 = vpop.xlane.xlu0 %741 }
 0x47e   : > { %6467 = vpow2.f32 %v1213_v2 }
 0x47f   : > { %6469 = vrcp.f32 %v739_v4  ;;  %v5209_v4 = vld [vmem:[%s7883_s3 + $0x158] sm:$0xff] }
 0x480   : > { %6471 = vrcp.f32 %v742_v3  ;;  %v5207_v3 = vld [vmem:[%s7883_s3 + $0x148] sm:$0xff] }
 0x483   : > { %v6462_v5 = vpop.eup %6461 }
 0x484   : > { %5862 = vmatmul.mubr.msk.f32.vlgmr.msra.gmra.mxu1 %vm714_vm4, %v6462_v5  ;;  %v1215_v7 = vsel %vm714_vm4, %v6462_v5, 0.0 }
 0x485   : > { %1216 = vadd.xlane.f32.xlu1 %v1215_v7  ;;  %5864 = vmatprep.mubr.msk.f32.mxu1 %vm6564_vm0, %v6563_v1 }
 0x486   : > { %5882 = vmatpush3.msra.mxu1 %v843_v6  ;;  %v5206_v6 = vld [vmem:[%s7883_s3 + $0x140] sm:$0xff] }
 0x487   : > { %v6464_v8 = vpop.eup %6463  ;;  %5909 = vmatprep.subr.mxu1 %v6563_v1 }
 0x488   : > { %5865 = vmatmul.mubr.msk.f32.gmra.mxu1 %vm714_vm4, %v6464_v8  ;;  %v1218_v15 = vsel %vm714_vm4, %v6464_v8, 0.0  ;;  %v6466_v16 = vpop.eup %6465 }
 0x489   : > { %1219 = vadd.xlane.f32.xlu0 %v1218_v15  ;;  %5867 = vmatprep.mubr.msk.f32.mxu1 %vm6564_vm0, %v6563_v1  ;;  %v840_v22 = vmul.f32 %v6466_v16, %v6872_v25  ;;  %v5202_v25 = vld [vmem:[%s7883_s3 + $0xd8] sm:$0xff]  ;;  %v746_v34 = vmul.f32 %v6466_v16, %v6801_v63  ;;  %v5194_v63 = vld [vmem:[%s7883_s3 + $0x50] sm:$0xff] }
 0x48b   : > { %v6468_v17 = vpop.eup %6467 }
 0x48c   : > { %5868 = vmatmul.mubr.msk.f32.gmra.mxu1 %vm714_vm4, %v6468_v17  ;;  %v1221_v18 = vsel %vm721_vm5, %v6468_v17, 0.0  ;;  %v6470_v23 = vpop.eup %6469 }
 0x48d   : > { %1222 = vadd.xlane.f32.xlu1 %v1221_v18  ;;  %5883 = vmatprep.mubr.msk.f32.mxu1 %vm6564_vm0, %v6563_v1  ;;  %v841_v24 = vmul.f32 %v6470_v23, %v6874_v27  ;;  %v6472_v26 = vpop.eup %6471  ;;  %v5201_v27 = vld [vmem:[%s7883_s3 + $0xd0] sm:$0xff] }
 0x48e   : > { %v842_v28 = vmul.f32 %v6472_v26, %v6876_v29  ;;  %v5200_v29 = vld [vmem:[%s7883_s3 + $0xc8] sm:$0xff] }
 0x490   : > { %5884 = vmatmul.mubr.msk.f32.vlgmr.msra.gmra.mxu1 %vm615_vm2, %v840_v22 }
 0x491   : > { %5886 = vmatprep.mubr.msk.f32.mxu1 %vm6564_vm0, %v6563_v1  ;;  %5910 = vmatpush3.msra.mxu1 %v5202_v25 }
 0x492   : > { %5911 = vmatprep.subr.mxu1 %v6563_v1 }
 0x493   : > { %5912 = vmatpush3.msra.mxu1 %v5201_v27 }
 0x494   : > { %5887 = vmatmul.mubr.msk.f32.gmra.mxu1 %vm615_vm2, %v841_v24  ;;  %5913 = vmatprep.subr.mxu1 %v6563_v1 }
 0x495   : > { %5889 = vmatprep.mubr.msk.f32.mxu1 %vm6564_vm0, %v6563_v1  ;;  %5914 = vmatpush3.msra.mxu1 %v5200_v29 }
 0x496   : > { %5915 = vmatprep.subr.mxu1 %v6563_v1 }
 0x497   : > { %5916 = vmatpush3.msra.mxu1 %v5199_v31 }
 0x498   : > { %5890 = vmatmul.mubr.msk.f32.gmra.mxu1 %vm615_vm2, %v842_v28  ;;  %5943 = vmatprep.subr.mxu1 %v6563_v1 }
 0x499   : > { %5917 = vmatprep.mubr.msk.f32.mxu1 %vm6564_vm0, %v6563_v1 }
 0x49c   : > { %5918 = vmatmul.mubr.msk.f32.vlgmr.msra.gmra.mxu1 %vm337_vm1, %v6659_v9 }
 0x49d   : > { %5920 = vmatprep.mubr.msk.f32.mxu1 %vm6564_vm0, %v6563_v1 }
 0x4a0   : > { %5921 = vmatmul.mubr.msk.f32.gmra.mxu1 %vm337_vm1, %v6670_v11 }
 0x4a1   : > { %5923 = vmatprep.mubr.msk.f32.mxu1 %vm6564_vm0, %v6563_v1 }
 0x4a4   : > { %5924 = vmatmul.mubr.msk.f32.gmra.mxu1 %vm337_vm1, %v6688_v13 }
 0x4a5   : > { %5949 = vmatprep.mubr.msk.f32.mxu1 %vm6564_vm0, %v6563_v1 }
 0x50e   : > { %v1217_v32 = vpop.xlane.xlu1 %1216 }
 0x50f   : > { %6473 = vrcp.f32 %v1217_v32 }
 0x512   : > { %v1220_v37 = vpop.xlane.xlu0 %1219 }
 0x513   : > { %6475 = vrcp.f32 %v1220_v37 }
 0x516   : > { %v1223_v38 = vpop.xlane.xlu1 %1222 }
 0x517   : > { %6477 = vrcp.f32 %v1223_v38 }
 0x51c   : > { %v6474_v9 = vpop.eup %6473 }
 0x51d   : > { %v1227_v33 = vmul.f32 %v6474_v9, %v6462_v5  ;;  %v5208_v5 = vld [vmem:[%s7883_s3 + $0x150] sm:$0xff] }
 0x51f   : > { %v2654_v35 = vrot.slane %v1227_v33, 7 }
 0x520   : > { %v6476_v43 = vpop.eup %6475 }
 0x521   : > { %v6968_v36 = vsel %vm756_vm3, %v746_v34, %v2654_v35 }
 0x524   : > { %v6478_v49 = vpop.eup %6477 }
 0x544   : > { %v1306_v39 = vpop.f32.mrf.mxu1 }
 0x545   : > { %v1320_v40 = vmul.f32 %v6474_v9, %v1306_v39 }
 0x546   : > { %v5863_v42 = vpop.f32.mrf.mxu1 }
 0x547   : > { %5873 = vmatmul.mubr.msk.f32.vlgmr.msra.gmra.mxu0 %vm615_vm2, %v1320_v40 }
 0x548   : > { %v1311_v44 = vpop.f32.mrf.mxu1  ;;  %5893 = vmatpush3.msra.mxu0 %v5195_v41  ;;  %5875 = vmatprep.mubr.msk.f32.mxu0 %vm6564_vm0, %v6563_v1 }
 0x549   : > { %v1321_v45 = vmul.f32 %v6476_v43, %v1311_v44  ;;  %5894 = vmatprep.subr.mxu0 %v6563_v1 }
 0x54a   : > { %v5866_v47 = vpop.f32.mrf.mxu1  ;;  %5895 = vmatpush3.msra.mxu0 %v5194_v63 }
 0x54b   : > { %5876 = vmatmul.mubr.msk.f32.gmra.mxu0 %vm615_vm2, %v1321_v45  ;;  %5896 = vmatprep.subr.mxu0 %v6563_v1 }
 0x54c   : > { %v1316_v50 = vpop.f32.mrf.mxu1  ;;  %5878 = vmatprep.mubr.msk.f32.mxu0 %vm6564_vm0, %v6563_v1  ;;  %5897 = vmatpush3.msra.mxu0 %v5193_v46 }
 0x54d   : > { %v1322_v51 = vmul.f32 %v6478_v49, %v1316_v50  ;;  %5898 = vmatprep.subr.mxu0 %v6563_v1 }
 0x54e   : > { %v5869_v52 = vpop.f32.mrf.mxu1  ;;  %5899 = vmatpush3.msra.mxu0 %v5192_v48 }
 0x54f   : > { %5879 = vmatmul.mubr.msk.f32.gmra.mxu0 %vm615_vm2, %v1322_v51  ;;  %5926 = vmatprep.subr.mxu0 %v6563_v1 }
 0x550   : > { %v6993_v53 = vpop.f32.mrf.mxu1  ;;  %5900 = vmatprep.mubr.msk.f32.mxu0 %vm6564_vm0, %v6563_v1 }
 0x552   : > { %v5885_v54 = vpop.f32.mrf.mxu1 }
 0x553   : > { %5901 = vmatmul.mubr.msk.f32.vlgmr.msra.gmra.mxu0 %vm337_vm1, %v6665_v10 }
 0x554   : > { %v6999_v55 = vpop.f32.mrf.mxu1  ;;  %5903 = vmatprep.mubr.msk.f32.mxu0 %vm6564_vm0, %v6563_v1  ;;  %5927 = vmatpush3.msra.mxu0 %v5209_v4 }
 0x555   : > { %5928 = vmatprep.subr.mxu0 %v6563_v1 }
 0x556   : > { %v5888_v56 = vpop.f32.mrf.mxu1  ;;  %5929 = vmatpush3.msra.mxu0 %v5208_v5 }
 0x557   : > { %5904 = vmatmul.mubr.msk.f32.gmra.mxu0 %vm337_vm1, %v6680_v12  ;;  %5930 = vmatprep.subr.mxu0 %v6563_v1 }
 0x558   : > { %v7005_v57 = vpop.f32.mrf.mxu1  ;;  %5906 = vmatprep.mubr.msk.f32.mxu0 %vm6564_vm0, %v6563_v1  ;;  %5931 = vmatpush3.msra.mxu0 %v5207_v3 }
 0x559   : > { %5932 = vmatprep.subr.mxu0 %v6563_v1 }
 0x55a   : > { %v5891_v58 = vpop.f32.mrf.mxu1  ;;  %5933 = vmatpush3.msra.mxu0 %v5206_v6 }
 0x55b   : > { %5907 = vmatmul.mubr.msk.f32.gmra.mxu0 %vm337_vm1, %v6695_v14  ;;  %5958 = vmatprep.subr.mxu0 %v6563_v1 }
 0x55c   : > { %5934 = vmatprep.mubr.msk.f32.mxu0 %vm6564_vm0, %v6563_v1  ;;  %v1659_v59 = vpop.f32.mrf.mxu1 }
 0x55e   : > { %v5919_v60 = vpop.f32.mrf.mxu1 }
 0x55f   : > { %5935 = vmatmul.mubr.msk.f32.vlgmr.msra.gmra.mxu0 %vm337_vm1, %v6726_v19  ;;  %v5223_v60 = vld [vmem:[%s7884_s4 + $0x10] sm:$0xff] }
 0x560   : > { %v1664_v61 = vpop.f32.mrf.mxu1  ;;  %5937 = vmatprep.mubr.msk.f32.mxu0 %vm6564_vm0, %v6563_v1 }
 0x562   : > { %v5922_v62 = vpop.f32.mrf.mxu1 }
 0x563   : > { %5938 = vmatmul.mubr.msk.f32.gmra.mxu0 %vm337_vm1, %v6735_v20  ;;  %v5229_v62 = vld [vmem:[%s7883_s3 + $0x70] sm:$0xff] }
 0x564   : > { %v1669_v0 = vpop.f32.mrf.mxu1  ;;  %5940 = vmatprep.mubr.msk.f32.mxu0 %vm6564_vm0, %v6563_v1 }
 0x565   : > { %5944 = vmatpush3.xpose.msk.msra.mxu1 %vm615_vm2, %v1669_v0  ;;  %v5228_v0 = vld [vmem:[%s7883_s3 + $0x68] sm:$0xff] }
 0x566   : > { %5945 = vmatprep.subr.mxu1 %v6563_v1  ;;  %v5925_v2 = vpop.f32.mrf.mxu1 }
 0x567   : > { %5941 = vmatmul.mubr.msk.f32.gmra.mxu0 %vm337_vm1, %v6742_v21  ;;  %v5227_v2 = vld [vmem:[%s7883_s3 + $0x60] sm:$0xff] }
 0x568   : > { %5964 = vmatprep.mubr.msk.f32.mxu0 %vm6564_vm0, %v6563_v1 }
 0x569   : > { %5946 = vmatpush3.xpose.msk.msra.mxu1 %vm615_vm2, %v1664_v61  ;;  %v5230_v61 = vld [vmem:[%s7883_s3 + $0x78] sm:$0xff] }
 0x56a   : > { %5947 = vmatprep.subr.mxu1 %v6563_v1 }
 0x56d   : > { %5948 = vmatpush3.xpose.msk.msra.mxu1 %vm615_vm2, %v1659_v59 }
 0x56e   : > { %5973 = vmatprep.subr.mxu1 %v6563_v1 }
 0x607   : > { %v7047_v7 = vpop.f32.mrf.mxu0 }
 0x609   : > { %v5874_v8 = vpop.f32.mrf.mxu0 }
 0x60b   : > { %v7049_v15 = vpop.f32.mrf.mxu0 }
 0x60d   : > { %v5877_v16 = vpop.f32.mrf.mxu0 }
 0x60f   : > { %v7051_v17 = vpop.f32.mrf.mxu0 }
 0x611   : > { %v5880_v18 = vpop.f32.mrf.mxu0 }
 0x613   : > { %v1574_v22 = vpop.f32.mrf.mxu0 }
 0x614   : > { %5950 = vmatmul.mubr.msk.f32.vlgmr.msra.gmra.mxu1 %vm615_vm2, %v1574_v22 }
 0x615   : > { %v5902_v23 = vpop.f32.mrf.mxu0  ;;  %5952 = vmatprep.mubr.msk.f32.mxu1 %vm6564_vm0, %v6563_v1  ;;  %5974 = vmatpush3.msra.mxu1 %v5223_v60 }
 0x616   : > { %6001 = vmatprep.subr.mxu1 %v6563_v1  ;;  %v5236_v23 = vld [vmem:[%s7883_s3 + $0xf0] sm:$0xff] }
 0x617   : > { %v1579_v24 = vpop.f32.mrf.mxu0 }
 0x618   : > { %5953 = vmatmul.mubr.msk.f32.gmra.mxu1 %vm615_vm2, %v1579_v24 }
 0x619   : > { %v5905_v26 = vpop.f32.mrf.mxu0  ;;  %5955 = vmatprep.mubr.msk.f32.mxu1 %vm6564_vm0, %v6563_v1 }
 0x61b   : > { %v1584_v28 = vpop.f32.mrf.mxu0 }
 0x61c   : > { %5956 = vmatmul.mubr.msk.f32.gmra.mxu1 %vm615_vm2, %v1584_v28  ;;  %v5235_v28 = vld [vmem:[%s7883_s3 + $0xe8] sm:$0xff] }
 0x61d   : > { %v5908_v25 = vpop.f32.mrf.mxu0  ;;  %5975 = vmatprep.mubr.msk.f32.mxu1 %vm6564_vm0, %v6563_v1 }
 0x61f   : > { %v1744_v27 = vpop.f32.mrf.mxu0 }
 0x621   : > { %v5936_v30 = vpop.f32.mrf.mxu0 }
 0x623   : > { %v1749_v29 = vpop.f32.mrf.mxu0 }
 0x625   : > { %v5939_v31 = vpop.f32.mrf.mxu0 }
 0x627   : > { %v1754_v32 = vpop.f32.mrf.mxu0 }
 0x628   : > { %5959 = vmatpush3.msk.msra.mxu0 %vm756_vm3, %v1754_v32 }
 0x629   : > { %5960 = vmatprep.subr.mxu0 %v6563_v1  ;;  %v5942_v9 = vpop.f32.mrf.mxu0 }
 0x62a   : > { %5961 = vmatpush3.msra.mxu0 %v1749_v29  ;;  %v6551_v9 = vld [vmem:[%s6650_s19] sm:$0xff] }
 0x62b   : > { %5962 = vmatprep.subr.mxu0 %v6563_v1 }
 0x62c   : > { %5963 = vmatpush3.msra.mxu0 %v1744_v27  ;;  %v5234_v27 = vld [vmem:[%s7883_s3 + $0xe0] sm:$0xff] }
 0x62d   : > { %5984 = vmatprep.subr.mxu0 %v6563_v1 }
 0x6d4   : > { %v1842_v33 = vpop.f32.mrf.mxu1 }
 0x6d5   : > { %v1856_v34 = vsel %vm714_vm4, %v1842_v33, -inf }
 0x6d6   : > { %1857 = vmax.xlane.f32.xlu0 %v1856_v34  ;;  %v5951_v35 = vpop.f32.mrf.mxu1 }
 0x6d8   : > { %v1847_v37 = vpop.f32.mrf.mxu1 }
 0x6d9   : > { %v1859_v38 = vsel %vm714_vm4, %v1847_v37, -inf }
 0x6da   : > { %1860 = vmax.xlane.f32.xlu1 %v1859_v38  ;;  %v5954_v39 = vpop.f32.mrf.mxu1 }
 0x6dc   : > { %v1852_v40 = vpop.f32.mrf.mxu1 }
 0x6dd   : > { %v1862_v41 = vsel %vm721_vm5, %v1852_v40, -inf }
 0x6de   : > { %1863 = vmax.xlane.f32.xlu0 %v1862_v41  ;;  %v5957_v42 = vpop.f32.mrf.mxu1  ;;  %v5241_v41 = vld [vmem:[%s7883_s3 + $0x160] sm:$0xff] }
 0x75f   : > { %v1858_v63 = vpop.xlane.xlu0 %1857 }
 0x760   : > { %v1865_v43 = vsub.f32 %v1842_v33, %v1858_v63 }
 0x762   : > { %v1868_v44 = vmul.f32 1.442695, %v1865_v43 }
 0x763   : > { %v1861_v45 = vpop.xlane.xlu1 %1860 }
 0x764   : > { %6479 = vpow2.f32 %v1868_v44  ;;  %v1866_v46 = vsub.f32 %v1847_v37, %v1861_v45  ;;  %v1495_v44 = vadd.f32 %v6999_v55, %v7049_v15 }
 0x766   : > { %v1870_v47 = vmul.f32 1.442695, %v1866_v46 }
 0x767   : > { %v1864_v48 = vpop.xlane.xlu0 %1863 }
 0x768   : > { %6481 = vpow2.f32 %v1870_v47  ;;  %v1867_v49 = vsub.f32 %v1852_v40, %v1864_v48  ;;  %v5244_v40 = vld [vmem:[%s7883_s3 + $0x178] sm:$0xff] }
 0x76a   : > { %v1872_v50 = vmul.f32 1.442695, %v1867_v49 }
 0x76c   : > { %6483 = vpow2.f32 %v1872_v50 }
 0x771   : > { %v6480_v51 = vpop.eup %6479 }
 0x772   : > { %5965 = vmatmul.mubr.msk.f32.vlgmr.msra.gmra.mxu0 %vm714_vm4, %v6480_v51  ;;  %v1874_v52 = vsel %vm714_vm4, %v6480_v51, 0.0 }
 0x773   : > { %1875 = vadd.xlane.f32.xlu1 %v1874_v52  ;;  %5967 = vmatprep.mubr.msk.f32.mxu0 %vm6564_vm0, %v6563_v1 }
 0x774   : > { %5985 = vmatpush3.msra.mxu0 %v5230_v61 }
 0x775   : > { %v6482_v54 = vpop.eup %6481  ;;  %5986 = vmatprep.subr.mxu0 %v6563_v1 }
 0x776   : > { %5968 = vmatmul.mubr.msk.f32.gmra.mxu0 %vm714_vm4, %v6482_v54  ;;  %v1877_v56 = vsel %vm714_vm4, %v6482_v54, 0.0 }
 0x777   : > { %1878 = vadd.xlane.f32.xlu0 %v1877_v56  ;;  %5970 = vmatprep.mubr.msk.f32.mxu0 %vm6564_vm0, %v6563_v1 }
 0x778   : > { %5987 = vmatpush3.msra.mxu0 %v5229_v62 }
 0x779   : > { %v6484_v58 = vpop.eup %6483  ;;  %5988 = vmatprep.subr.mxu0 %v6563_v1 }
 0x77a   : > { %5971 = vmatmul.mubr.msk.f32.gmra.mxu0 %vm714_vm4, %v6484_v58  ;;  %v1880_v59 = vsel %vm721_vm5, %v6484_v58, 0.0 }
 0x77b   : > { %1881 = vadd.xlane.f32.xlu1 %v1880_v59  ;;  %5992 = vmatprep.mubr.msk.f32.mxu0 %vm6564_vm0, %v6563_v1 }
 0x77c   : > { %5989 = vmatpush3.msra.mxu0 %v5228_v0 }
 0x77d   : > { %5990 = vmatprep.subr.mxu0 %v6563_v1 }
 0x77e   : > { %5991 = vmatpush3.msra.mxu0 %v5227_v2 }
 0x77f   : > { %5993 = vmatmul.mubr.msk.f32.vlgmr.msra.gmra.mxu0 %vm337_vm1, %v6665_v10  ;;  %6018 = vmatprep.subr.mxu0 %v6563_v1 }
 0x780   : > { %5995 = vmatprep.mubr.msk.f32.mxu0 %vm6564_vm0, %v6563_v1  ;;  %6019 = vmatpush3.msra.mxu0 %v5244_v40 }
 0x781   : > { %6020 = vmatprep.subr.mxu0 %v6563_v1 }
 0x783   : > { %5996 = vmatmul.mubr.msk.f32.gmra.mxu0 %vm337_vm1, %v6680_v12 }
 0x784   : > { %5998 = vmatprep.mubr.msk.f32.mxu0 %vm6564_vm0, %v6563_v1 }
 0x787   : > { %5999 = vmatmul.mubr.msk.f32.gmra.mxu0 %vm337_vm1, %v6695_v14  ;;  %v5237_v14 = vld [vmem:[%s7883_s3 + $0xf8] sm:$0xff] }
 0x788   : > { %6026 = vmatprep.mubr.msk.f32.mxu0 %vm6564_vm0, %v6563_v1 }
 0x7fc   : > { %v1876_v4 = vpop.xlane.xlu1 %1875 }
 0x7fd   : > { %6485 = vrcp.f32 %v1876_v4 }
 0x800   : > { %v1879_v12 = vpop.xlane.xlu0 %1878 }
 0x801   : > { %6487 = vrcp.f32 %v1879_v12 }
 0x804   : > { %v1882_v8 = vpop.xlane.xlu1 %1881 }
 0x805   : > { %6489 = vrcp.f32 %v1882_v8 }
 0x80a   : > { %v6486_v10 = vpop.eup %6485 }
 0x80b   : > { %v1886_v5 = vmul.f32 %v6486_v10, %v6480_v51 }
 0x80d   : > { %v2657_v3 = vrot.slane %v1886_v5, 6 }
 0x80e   : > { %v6488_v24 = vpop.eup %6487 }
 0x80f   : > { %v7115_v6 = vsel %vm2663_vm6, %v6968_v36, %v2657_v3 }
 0x812   : > { %v6490_v30 = vpop.eup %6489 }
 0x832   : > { %v1965_v16 = vpop.f32.mrf.mxu0 }
 0x833   : > { %v1979_v18 = vmul.f32 %v6486_v10, %v1965_v16 }
 0x834   : > { %v5966_v22 = vpop.f32.mrf.mxu0 }
 0x835   : > { %5976 = vmatmul.mubr.msk.f32.vlgmr.msra.gmra.mxu1 %vm615_vm2, %v1979_v18 }
 0x836   : > { %v1970_v36 = vpop.f32.mrf.mxu0  ;;  %6002 = vmatpush3.msra.mxu1 %v5237_v14  ;;  %5978 = vmatprep.mubr.msk.f32.mxu1 %vm6564_vm0, %v6563_v1 }
 0x837   : > { %v1980_v26 = vmul.f32 %v6488_v24, %v1970_v36  ;;  %6003 = vmatprep.subr.mxu1 %v6563_v1 }
 0x838   : > { %v5969_v25 = vpop.f32.mrf.mxu0  ;;  %6004 = vmatpush3.msra.mxu1 %v5236_v23 }
 0x839   : > { %5979 = vmatmul.mubr.msk.f32.gmra.mxu1 %vm615_vm2, %v1980_v26  ;;  %6005 = vmatprep.subr.mxu1 %v6563_v1 }
 0x83a   : > { %v1975_v29 = vpop.f32.mrf.mxu0  ;;  %5981 = vmatprep.mubr.msk.f32.mxu1 %vm6564_vm0, %v6563_v1  ;;  %6006 = vmatpush3.msra.mxu1 %v5235_v28 }
 0x83b   : > { %v1981_v31 = vmul.f32 %v6490_v30, %v1975_v29  ;;  %6007 = vmatprep.subr.mxu1 %v6563_v1  ;;  %v5258_v29 = vld [vmem:[%s7884_s4 + $0x18] sm:$0xff] }
 0x83c   : > { %v5972_v32 = vpop.f32.mrf.mxu0  ;;  %6008 = vmatpush3.msra.mxu1 %v5234_v27 }
 0x83d   : > { %5982 = vmatmul.mubr.msk.f32.gmra.mxu1 %vm615_vm2, %v1981_v31  ;;  %6035 = vmatprep.subr.mxu1 %v6563_v1  ;;  %v2684_v31 = vld [vmem:[%s7883_s3 + $0x18] sm:$0xff]  ;;  %v2683_v32 = vld [vmem:[%s7883_s3 + $0x10] sm:$0xff] }
 0x83e   : > { %6009 = vmatprep.mubr.msk.f32.mxu1 %vm6564_vm0, %v6563_v1 }
 0x83f   : > { %v2147_v33 = vpop.f32.mrf.mxu0 }
 0x841   : > { %6010 = vmatmul.mubr.msk.f32.vlgmr.msra.gmra.mxu1 %vm337_vm1, %v6551_v9  ;;  %v5994_v34 = vpop.f32.mrf.mxu0  ;;  %v2682_v9 = vld [vmem:[%s7883_s3 + $0x8] sm:$0xff] }
 0x842   : > { %6012 = vmatprep.mubr.msk.f32.mxu1 %vm6564_vm0, %v6563_v1  ;;  %v7247_v34 = vld [vmem:[%s6656_s23 + $0x18] sm:$0xff] }
 0x843   : > { %v2152_v35 = vpop.f32.mrf.mxu0 }
 0x845   : > { %6013 = vmatmul.mubr.msk.f32.gmra.mxu1 %vm337_vm1, %v6670_v11  ;;  %v5997_v37 = vpop.f32.mrf.mxu0  ;;  %v5243_v11 = vld [vmem:[%s7883_s3 + $0x170] sm:$0xff] }
 0x846   : > { %6015 = vmatprep.mubr.msk.f32.mxu1 %vm6564_vm0, %v6563_v1  ;;  %6021 = vmatpush3.msra.mxu0 %v5243_v11  ;;  %v7263_v37 = vld [vmem:[%s6656_s23 + $0x28] sm:$0x1] }
 0x847   : > { %v2157_v38 = vpop.f32.mrf.mxu0  ;;  %6022 = vmatprep.subr.mxu0 %v6563_v1 }
 0x849   : > { %6016 = vmatmul.mubr.msk.f32.gmra.mxu1 %vm337_vm1, %v6688_v13  ;;  %v6000_v39 = vpop.f32.mrf.mxu0  ;;  %v5242_v13 = vld [vmem:[%s7883_s3 + $0x168] sm:$0xff] }
 0x84a   : > { %6041 = vmatprep.mubr.msk.f32.mxu1 %vm6564_vm0, %v6563_v1  ;;  %6023 = vmatpush3.msra.mxu0 %v5242_v13 }
 0x84b   : > { %6024 = vmatprep.subr.mxu0 %v6563_v1 }
 0x84c   : > { %6025 = vmatpush3.msra.mxu0 %v5241_v41 }
 0x84d   : > { %6027 = vmatmul.mubr.msk.f32.vlgmr.msra.gmra.mxu0 %vm337_vm1, %v6726_v19  ;;  %6050 = vmatprep.subr.mxu0 %v6563_v1  ;;  %v1490_v19 = vadd.f32 %v6993_v53, %v7047_v7 }
 0x84e   : > { %6029 = vmatprep.mubr.msk.f32.mxu0 %vm6564_vm0, %v6563_v1 }
 0x851   : > { %6030 = vmatmul.mubr.msk.f32.gmra.mxu0 %vm337_vm1, %v6735_v20 }
 0x852   : > { %6032 = vmatprep.mubr.msk.f32.mxu0 %vm6564_vm0, %v6563_v1 }
 0x855   : > { %6033 = vmatmul.mubr.msk.f32.gmra.mxu0 %vm337_vm1, %v6742_v21  ;;  %v1500_v21 = vadd.f32 %v7005_v57, %v7051_v17 }
 0x856   : > { %6056 = vmatprep.mubr.msk.f32.mxu0 %vm6564_vm0, %v6563_v1 }
 0x8f5   : > { %v2059_v42 = vpop.f32.mrf.mxu1 }
 0x8f6   : > { %v7184_v63 = vadd.f32 %v2059_v42, %v1490_v19 }
 0x8f7   : > { %v5977_v43 = vpop.f32.mrf.mxu1 }
 0x8f9   : > { %v2064_v20 = vpop.f32.mrf.mxu1 }
 0x8fa   : > { %v7188_v45 = vadd.f32 %v2064_v20, %v1495_v44  ;;  %v5277_v44 = vld [vmem:[%s7883_s3 + $0x98] sm:$0xff] }
 0x8fb   : > { %v5980_v46 = vpop.f32.mrf.mxu1 }
 0x8fc   : > { %v5276_v46 = vld [vmem:[%s7883_s3 + $0x90] sm:$0xff] }
 0x8fd   : > { %v2069_v47 = vpop.f32.mrf.mxu1 }
 0x8fe   : > { %v7192_v48 = vadd.f32 %v2069_v47, %v1500_v21 }
 0x8ff   : > { %v5983_v49 = vpop.f32.mrf.mxu1 }
 0x900   : > { %v5275_v49 = vld [vmem:[%s7883_s3 + $0x88] sm:$0xff] }
 0x901   : > { %v2232_v50 = vpop.f32.mrf.mxu1 }
 0x903   : > { %v6011_v53 = vpop.f32.mrf.mxu1 }
 0x904   : > { %v5274_v53 = vld [vmem:[%s7883_s3 + $0x80] sm:$0xff] }
 0x905   : > { %v2237_v7 = vpop.f32.mrf.mxu1 }
 0x907   : > { %v6014_v51 = vpop.f32.mrf.mxu1 }
 0x909   : > { %v2242_v52 = vpop.f32.mrf.mxu1 }
 0x90a   : > { %6036 = vmatpush3.xpose.msk.msra.mxu1 %vm615_vm2, %v2242_v52 }
 0x90b   : > { %v6017_v54 = vpop.f32.mrf.mxu1  ;;  %6037 = vmatprep.subr.mxu1 %v6563_v1 }
 0x90d   : > { %v2317_v55 = vpop.f32.mrf.mxu0 }
 0x90e   : > { %6038 = vmatpush3.xpose.msk.msra.mxu1 %vm615_vm2, %v2237_v7 }
 0x90f   : > { %6039 = vmatprep.subr.mxu1 %v6563_v1  ;;  %v6028_v57 = vpop.f32.mrf.mxu0 }
 0x910   : > { %v7312_v57 = vld [vmem:[%s6650_s19 + $0x20] sm:$0xff] }
 0x911   : > { %v2322_v15 = vpop.f32.mrf.mxu0 }
 0x912   : > { %6040 = vmatpush3.xpose.msk.msra.mxu1 %vm615_vm2, %v2232_v50 }
 0x913   : > { %6065 = vmatprep.subr.mxu1 %v6563_v1  ;;  %v6031_v17 = vpop.f32.mrf.mxu0 }
 0x915   : > { %6042 = vmatmul.mubr.msk.f32.vlgmr.msra.gmra.mxu1 %vm615_vm2, %v2147_v33  ;;  %v2327_v56 = vpop.f32.mrf.mxu0  ;;  %v2681_v33 = vld [vmem:[%s7883_s3] sm:$0xff] }
 0x916   : > { %6044 = vmatprep.mubr.msk.f32.mxu1 %vm6564_vm0, %v6563_v1  ;;  %6051 = vmatpush3.msk.msra.mxu0 %vm756_vm3, %v2327_v56 }
 0x917   : > { %6052 = vmatprep.subr.mxu0 %v6563_v1  ;;  %v6034_v58 = vpop.f32.mrf.mxu0  ;;  %6066 = vmatpush3.msra.mxu1 %v5258_v29 }
 0x918   : > { %6053 = vmatpush3.msra.mxu0 %v2322_v15  ;;  %6093 = vmatprep.subr.mxu1 %v6563_v1  ;;  %v7319_v15 = vld [vmem:[%s6650_s19 + $0x28] sm:$0x1] }
 0x919   : > { %6045 = vmatmul.mubr.msk.f32.gmra.mxu1 %vm615_vm2, %v2152_v35  ;;  %6054 = vmatprep.subr.mxu0 %v6563_v1  ;;  %v7256_v35 = vld [vmem:[%s6656_s23 + $0x20] sm:$0xff] }
 0x91a   : > { %6047 = vmatprep.mubr.msk.f32.mxu1 %vm6564_vm0, %v6563_v1  ;;  %6055 = vmatpush3.msra.mxu0 %v2317_v55  ;;  %v7305_v55 = vld [vmem:[%s6650_s19 + $0x18] sm:$0xff] }
 0x91b   : > { %6076 = vmatprep.subr.mxu0 %v6563_v1 }
 0x91d   : > { %6048 = vmatmul.mubr.msk.f32.gmra.mxu1 %vm615_vm2, %v2157_v38 }
 0x91e   : > { %6067 = vmatprep.mubr.msk.f32.mxu1 %vm6564_vm0, %v6563_v1 }
 0x9d5   : > { %v2415_v59 = vpop.f32.mrf.mxu1 }
 0x9d6   : > { %v2429_v60 = vsel %vm714_vm4, %v2415_v59, -inf }
 0x9d7   : > { %2430 = vmax.xlane.f32.xlu0 %v2429_v60  ;;  %v6043_v61 = vpop.f32.mrf.mxu1 }
 0x9d9   : > { %v2420_v62 = vpop.f32.mrf.mxu1 }
 0x9da   : > { %v2432_v0 = vsel %vm714_vm4, %v2420_v62, -inf }
 0x9db   : > { %2433 = vmax.xlane.f32.xlu1 %v2432_v0  ;;  %v6046_v2 = vpop.f32.mrf.mxu1  ;;  %v5283_v0 = vld [vmem:[%s7883_s3 + $0x110] sm:$0xff] }
 0x9dc   : > { %v5282_v2 = vld [vmem:[%s7883_s3 + $0x108] sm:$0xff] }
 0x9dd   : > { %v2425_v4 = vpop.f32.mrf.mxu1 }
 0x9de   : > { %v2435_v10 = vsel %vm721_vm5, %v2425_v4, -inf }
 0x9df   : > { %2436 = vmax.xlane.f32.xlu0 %v2435_v10  ;;  %v6049_v5 = vpop.f32.mrf.mxu1  ;;  %v7340_v10 = vld [vmem:[%s6719_s9 + $0x18] sm:$0xff] }
 0x9e0   : > { %v7349_v5 = vld [vmem:[%s6719_s9 + $0x20] sm:$0xff] }
 0xa60   : > { %v2431_v3 = vpop.xlane.xlu0 %2430 }
 0xa61   : > { %v2438_v12 = vsub.f32 %v2415_v59, %v2431_v3  ;;  %v7356_v3 = vld [vmem:[%s6719_s9 + $0x28] sm:$0x1] }
 0xa63   : > { %v2441_v8 = vmul.f32 1.442695, %v2438_v12 }
 0xa64   : > { %v2434_v16 = vpop.xlane.xlu1 %2433 }
 0xa65   : > { %6491 = vpow2.f32 %v2441_v8  ;;  %v2439_v18 = vsub.f32 %v2420_v62, %v2434_v16  ;;  %v5284_v62 = vld [vmem:[%s7883_s3 + $0x118] sm:$0xff] }
 0xa67   : > { %v2443_v14 = vmul.f32 1.442695, %v2439_v18 }
 0xa68   : > { %v2437_v22 = vpop.xlane.xlu0 %2436 }
 0xa69   : > { %6493 = vpow2.f32 %v2443_v14  ;;  %v2440_v23 = vsub.f32 %v2425_v4, %v2437_v22  ;;  %v5281_v4 = vld [vmem:[%s7883_s3 + $0x100] sm:$0xff] }
 0xa6b   : > { %v2445_v24 = vmul.f32 1.442695, %v2440_v23 }
 0xa6d   : > { %6495 = vpow2.f32 %v2445_v24 }
 0xa72   : > { %v6492_v36 = vpop.eup %6491 }
 0xa73   : > { %6057 = vmatmul.mubr.msk.f32.vlgmr.msra.gmra.mxu0 %vm714_vm4, %v6492_v36  ;;  %v2447_v26 = vsel %vm714_vm4, %v6492_v36, 0.0 }
 0xa74   : > { %2448 = vadd.xlane.f32.xlu1 %v2447_v26  ;;  %6059 = vmatprep.mubr.msk.f32.mxu0 %vm6564_vm0, %v6563_v1 }
 0xa75   : > { %6077 = vmatpush3.msra.mxu0 %v2684_v31 }
 0xa76   : > { %v6494_v28 = vpop.eup %6493  ;;  %6078 = vmatprep.subr.mxu0 %v6563_v1 }
 0xa77   : > { %6060 = vmatmul.mubr.msk.f32.gmra.mxu0 %vm714_vm4, %v6494_v28  ;;  %v2450_v25 = vsel %vm714_vm4, %v6494_v28, 0.0 }
 0xa78   : > { %2451 = vadd.xlane.f32.xlu0 %v2450_v25  ;;  %6062 = vmatprep.mubr.msk.f32.mxu0 %vm6564_vm0, %v6563_v1 }
 0xa79   : > { %6079 = vmatpush3.msra.mxu0 %v2683_v32 }
 0xa7a   : > { %v6496_v27 = vpop.eup %6495  ;;  %6080 = vmatprep.subr.mxu0 %v6563_v1 }
 0xa7b   : > { %6063 = vmatmul.mubr.msk.f32.gmra.mxu0 %vm714_vm4, %v6496_v27  ;;  %v2453_v30 = vsel %vm721_vm5, %v6496_v27, 0.0 }
 0xa7c   : > { %2454 = vadd.xlane.f32.xlu1 %v2453_v30  ;;  %6084 = vmatprep.mubr.msk.f32.mxu0 %vm6564_vm0, %v6563_v1 }
 0xa7d   : > { %6081 = vmatpush3.msra.mxu0 %v2682_v9 }
 0xa7e   : > { %6082 = vmatprep.subr.mxu0 %v6563_v1 }
 0xa7f   : > { %6083 = vmatpush3.msra.mxu0 %v2681_v33 }
 0xa80   : > { %6085 = vmatmul.mubr.msk.f32.vlgmr.msra.gmra.mxu0 %vm337_vm1, %v7247_v34  ;;  %6110 = vmatprep.subr.mxu0 %v6563_v1 }
 0xa81   : > { %6087 = vmatprep.mubr.msk.f32.mxu0 %vm6564_vm0, %v6563_v1  ;;  %6111 = vmatpush3.msra.mxu0 %v5284_v62 }
 0xa82   : > { %6112 = vmatprep.subr.mxu0 %v6563_v1 }
 0xa83   : > { %6113 = vmatpush3.msra.mxu0 %v5283_v0 }
 0xa84   : > { %6088 = vmatmul.mubr.msk.f32.gmra.mxu0 %vm337_vm1, %v7256_v35  ;;  %6114 = vmatprep.subr.mxu0 %v6563_v1 }
 0xa85   : > { %6090 = vmatprep.mubr.msk.f32.mxu0 %vm6564_vm0, %v6563_v1  ;;  %6115 = vmatpush3.msra.mxu0 %v5282_v2 }
 0xa86   : > { %6116 = vmatprep.subr.mxu0 %v6563_v1 }
 0xa87   : > { %6117 = vmatpush3.msra.mxu0 %v5281_v4 }
 0xa88   : > { %6091 = vmatmul.mubr.msk.f32.gmra.mxu0 %vm337_vm1, %v7263_v37  ;;  %6142 = vmatprep.subr.mxu0 %v6563_v1 }
 0xa89   : > { %6118 = vmatprep.mubr.msk.f32.mxu0 %vm6564_vm0, %v6563_v1 }
 0xa8c   : > { %6119 = vmatmul.mubr.msk.f32.vlgmr.msra.gmra.mxu0 %vm337_vm1, %v7340_v10 }
 0xa8d   : > { %6121 = vmatprep.mubr.msk.f32.mxu0 %vm6564_vm0, %v6563_v1 }
 0xa90   : > { %6122 = vmatmul.mubr.msk.f32.gmra.mxu0 %vm337_vm1, %v7349_v5 }
 0xa91   : > { %6124 = vmatprep.mubr.msk.f32.mxu0 %vm6564_vm0, %v6563_v1 }
 0xa94   : > { %6125 = vmatmul.mubr.msk.f32.gmra.mxu0 %vm337_vm1, %v7356_v3 }
 0xa95   : > { %6148 = vmatprep.mubr.msk.f32.mxu0 %vm6564_vm0, %v6563_v1 }
 0xafd   : > { %v2449_v38 = vpop.xlane.xlu1 %2448 }
 0xafe   : > { %6497 = vrcp.f32 %v2449_v38 }
 0xb01   : > { %v2452_v41 = vpop.xlane.xlu0 %2451 }
 0xb02   : > { %6499 = vrcp.f32 %v2452_v41 }
 0xb05   : > { %v2455_v19 = vpop.xlane.xlu1 %2454 }
 0xb06   : > { %6501 = vrcp.f32 %v2455_v19 }
 0xb0b   : > { %v6498_v39 = vpop.eup %6497 }
 0xb0c   : > { %v2459_v40 = vmul.f32 %v6498_v39, %v6492_v36 }
 0xb0e   : > { %v2660_v11 = vrot.slane %v2459_v40, 5 }
 0xb10   : > { %v2666_v13 = vsel %vm2665_vm7, %v7115_v6, %v2660_v11  ;;  %v6500_v6 = vpop.eup %6499 }
 0xb11   : > { %2668 = vst.msk [vmem:[%s7273_s13] sm:$0xf] %vm2667_vm8, %v2666_v13 }
 0xb13   : > { %v6502_v7 = vpop.eup %6501 }
 0xb33   : > { %v2538_v42 = vpop.f32.mrf.mxu0 }
 0xb34   : > { %v2552_v43 = vmul.f32 %v6498_v39, %v2538_v42 }
 0xb35   : > { %v6058_v20 = vpop.f32.mrf.mxu0 }
 0xb36   : > { %6068 = vmatmul.mubr.msk.f32.vlgmr.msra.gmra.mxu1 %vm615_vm2, %v2552_v43  ;;  %v5301_v43 = vld [vmem:[%s7883_s3 + $0x38] sm:$0xff]  ;;  %v5299_v20 = vld [vmem:[%s7883_s3 + $0x28] sm:$0xff] }
 0xb37   : > { %v2543_v21 = vpop.f32.mrf.mxu0  ;;  %6094 = vmatpush3.msra.mxu1 %v5277_v44  ;;  %6070 = vmatprep.mubr.msk.f32.mxu1 %vm6564_vm0, %v6563_v1  ;;  %v5300_v44 = vld [vmem:[%s7883_s3 + $0x30] sm:$0xff] }
 0xb38   : > { %v2553_v47 = vmul.f32 %v6500_v6, %v2543_v21  ;;  %6095 = vmatprep.subr.mxu1 %v6563_v1 }
 0xb39   : > { %v6061_v50 = vpop.f32.mrf.mxu0  ;;  %6096 = vmatpush3.msra.mxu1 %v5276_v46  ;;  %v5298_v46 = vld [vmem:[%s7883_s3 + $0x20] sm:$0xff] }
 0xb3a   : > { %6071 = vmatmul.mubr.msk.f32.gmra.mxu1 %vm615_vm2, %v2553_v47  ;;  %6097 = vmatprep.subr.mxu1 %v6563_v1 }
 0xb3b   : > { %v2548_v51 = vpop.f32.mrf.mxu0  ;;  %6073 = vmatprep.mubr.msk.f32.mxu1 %vm6564_vm0, %v6563_v1  ;;  %6098 = vmatpush3.msra.mxu1 %v5275_v49 }
 0xb3c   : > { %v2554_v52 = vmul.f32 %v6502_v7, %v2548_v51  ;;  %6099 = vmatprep.subr.mxu1 %v6563_v1 }
 0xb3d   : > { %v6064_v54 = vpop.f32.mrf.mxu0  ;;  %6100 = vmatpush3.msra.mxu1 %v5274_v53 }
 0xb3e   : > { %6074 = vmatmul.mubr.msk.f32.gmra.mxu1 %vm615_vm2, %v2554_v52  ;;  %6127 = vmatprep.subr.mxu1 %v6563_v1  ;;  %v5308_v54 = vld [vmem:[%s7883_s3 + $0xb8] sm:$0xff] }
 0xb3f   : > { %6101 = vmatprep.mubr.msk.f32.mxu1 %vm6564_vm0, %v6563_v1 }
 0xb40   : > { %v2760_v17 = vpop.f32.mrf.mxu0 }
 0xb42   : > { %6102 = vmatmul.mubr.msk.f32.vlgmr.msra.gmra.mxu1 %vm337_vm1, %v7305_v55  ;;  %v6086_v56 = vpop.f32.mrf.mxu0 }
 0xb43   : > { %6104 = vmatprep.mubr.msk.f32.mxu1 %vm6564_vm0, %v6563_v1  ;;  %v5307_v56 = vld [vmem:[%s7883_s3 + $0xb0] sm:$0xff] }
 0xb44   : > { %v2765_v58 = vpop.f32.mrf.mxu0 }
 0xb46   : > { %6105 = vmatmul.mubr.msk.f32.gmra.mxu1 %vm337_vm1, %v7312_v57  ;;  %v6089_v59 = vpop.f32.mrf.mxu0 }
 0xb47   : > { %6107 = vmatprep.mubr.msk.f32.mxu1 %vm6564_vm0, %v6563_v1 }
 0xb48   : > { %v2770_v60 = vpop.f32.mrf.mxu0 }
 0xb4a   : > { %6108 = vmatmul.mubr.msk.f32.gmra.mxu1 %vm337_vm1, %v7319_v15  ;;  %v6092_v61 = vpop.f32.mrf.mxu0 }
 0xb4b   : > { %6133 = vmatprep.mubr.msk.f32.mxu1 %vm6564_vm0, %v6563_v1 }
 0xbf6   : > { %v2632_v12 = vpop.f32.mrf.mxu1 }
 0xbf7   : > { %v2646_v8 = vadd.f32 %v2632_v12, %v7184_v63 }
 0xbf8   : > { %v6069_v16 = vpop.f32.mrf.mxu1 }
 0xbf9   : > { %2649 = vst.msk [vmem:[%s7366_s12] sm:$0xff] %vm337_vm1, %v2646_v8  ;;  %v5315_v16 = vld [vmem:[%s7883_s3 + $0x138] sm:$0xff] }
 0xbfa   : > { %v2637_v18 = vpop.f32.mrf.mxu1 }
 0xbfb   : > { %v2647_v14 = vadd.f32 %v2637_v18, %v7188_v45  ;;  %v2946_v45 = vpop.f32.mrf.mxu0  ;;  %v5314_v18 = vld [vmem:[%s7883_s3 + $0x130] sm:$0xff] }
 0xbfc   : > { %v6072_v22 = vpop.f32.mrf.mxu1 }
 0xbfd   : > { %2650 = vst.msk [vmem:[%s7366_s12 + $0x8] sm:$0xff] %vm337_vm1, %v2647_v14  ;;  %v5313_v14 = vld [vmem:[%s7883_s3 + $0x128] sm:$0xff]  ;;  %v5312_v22 = vld [vmem:[%s7883_s3 + $0x120] sm:$0xff] }
 0xbfe   : > { %v2642_v23 = vpop.f32.mrf.mxu1 }
 0xbff   : > { %v2648_v24 = vadd.f32 %v2642_v23, %v7192_v48  ;;  %v6120_v48 = vpop.f32.mrf.mxu0 }
 0xc00   : > { %v6075_v36 = vpop.f32.mrf.mxu1 }
 0xc01   : > { %2652 = vst.msk [vmem:[%s7366_s12 + $0x10] sm:$0x1] %vm2651_vm9, %v2648_v24  ;;  %v2951_v29 = vpop.f32.mrf.mxu0 }
 0xc02   : > { %v2853_v26 = vpop.f32.mrf.mxu1 }
 0xc03   : > { %v6123_v31 = vpop.f32.mrf.mxu0 }
 0xc04   : > { %v6103_v28 = vpop.f32.mrf.mxu1 }
 0xc05   : > { %v2956_v32 = vpop.f32.mrf.mxu0 }
 0xc06   : > { %v2858_v25 = vpop.f32.mrf.mxu1  ;;  %6143 = vmatpush3.msk.msra.mxu0 %vm756_vm3, %v2956_v32 }
 0xc07   : > { %6144 = vmatprep.subr.mxu0 %v6563_v1  ;;  %v6126_v9 = vpop.f32.mrf.mxu0 }
 0xc08   : > { %v6106_v63 = vpop.f32.mrf.mxu1  ;;  %6145 = vmatpush3.msra.mxu0 %v2951_v29 }
 0xc09   : > { %6146 = vmatprep.subr.mxu0 %v6563_v1 }
 0xc0a   : > { %v2863_v27 = vpop.f32.mrf.mxu1  ;;  %6147 = vmatpush3.msra.mxu0 %v2946_v45 }
 0xc0b   : > { %6128 = vmatpush3.xpose.msk.msra.mxu1 %vm615_vm2, %v2863_v27  ;;  %6174 = vmatprep.subr.mxu0 %v6563_v1 }
 0xc0c   : > { %v6109_v30 = vpop.f32.mrf.mxu1  ;;  %6129 = vmatprep.subr.mxu1 %v6563_v1 }
 0xc0f   : > { %6130 = vmatpush3.xpose.msk.msra.mxu1 %vm615_vm2, %v2858_v25 }
 0xc10   : > { %6131 = vmatprep.subr.mxu1 %v6563_v1 }
 0xc13   : > { %6132 = vmatpush3.xpose.msk.msra.mxu1 %vm615_vm2, %v2853_v26 }
 0xc14   : > { %6157 = vmatprep.subr.mxu1 %v6563_v1 }
 0xc16   : > { %6134 = vmatmul.mubr.msk.f32.vlgmr.msra.gmra.mxu1 %vm615_vm2, %v2760_v17 }
 0xc17   : > { %6136 = vmatprep.mubr.msk.f32.mxu1 %vm6564_vm0, %v6563_v1  ;;  %6158 = vmatpush3.msra.mxu1 %v5301_v43 }
 0xc18   : > { %6159 = vmatprep.subr.mxu1 %v6563_v1 }
 0xc19   : > { %6160 = vmatpush3.msra.mxu1 %v5300_v44 }
 0xc1a   : > { %6137 = vmatmul.mubr.msk.f32.gmra.mxu1 %vm615_vm2, %v2765_v58  ;;  %6161 = vmatprep.subr.mxu1 %v6563_v1  ;;  %v5306_v58 = vld [vmem:[%s7883_s3 + $0xa8] sm:$0xff] }
 0xc1b   : > { %6139 = vmatprep.mubr.msk.f32.mxu1 %vm6564_vm0, %v6563_v1  ;;  %6162 = vmatpush3.msra.mxu1 %v5299_v20 }
 0xc1c   : > { %6163 = vmatprep.subr.mxu1 %v6563_v1 }
 0xc1d   : > { %6164 = vmatpush3.msra.mxu1 %v5298_v46 }
 0xc1e   : > { %6140 = vmatmul.mubr.msk.f32.gmra.mxu1 %vm615_vm2, %v2770_v60  ;;  %6191 = vmatprep.subr.mxu1 %v6563_v1  ;;  %v5305_v60 = vld [vmem:[%s7883_s3 + $0xa0] sm:$0xff] }
 0xc1f   : > { %6165 = vmatprep.mubr.msk.f32.mxu1 %vm6564_vm0, %v6563_v1 }
 0xc22   : > { %6166 = vmatmul.mubr.msk.f32.vlgmr.msra.gmra.mxu1 %vm337_vm1, %v7247_v34 }
 0xc23   : > { %6168 = vmatprep.mubr.msk.f32.mxu1 %vm6564_vm0, %v6563_v1  ;;  %6192 = vmatpush3.msra.mxu1 %v5315_v16 }
 0xc24   : > { %6193 = vmatprep.subr.mxu1 %v6563_v1 }
 0xc25   : > { %6194 = vmatpush3.msra.mxu1 %v5314_v18 }
 0xc26   : > { %6169 = vmatmul.mubr.msk.f32.gmra.mxu1 %vm337_vm1, %v7256_v35  ;;  %6195 = vmatprep.subr.mxu1 %v6563_v1 }
 0xc27   : > { %6171 = vmatprep.mubr.msk.f32.mxu1 %vm6564_vm0, %v6563_v1  ;;  %6196 = vmatpush3.msra.mxu1 %v5313_v14 }
 0xc28   : > { %6197 = vmatprep.subr.mxu1 %v6563_v1 }
 0xc29   : > { %6198 = vmatpush3.msra.mxu1 %v5312_v22 }
 0xc2a   : > { %6172 = vmatmul.mubr.msk.f32.gmra.mxu1 %vm337_vm1, %v7263_v37  ;;  %6223 = vmatprep.subr.mxu1 %v6563_v1 }
 0xc2b   : > { %6199 = vmatprep.mubr.msk.f32.mxu1 %vm6564_vm0, %v6563_v1 }
 0xc2e   : > { %6200 = vmatmul.mubr.msk.f32.vlgmr.msra.gmra.mxu1 %vm337_vm1, %v7340_v10 }
 0xc2f   : > { %6202 = vmatprep.mubr.msk.f32.mxu1 %vm6564_vm0, %v6563_v1 }
 0xc32   : > { %6203 = vmatmul.mubr.msk.f32.gmra.mxu1 %vm337_vm1, %v7349_v5 }
 0xc33   : > { %6205 = vmatprep.mubr.msk.f32.mxu1 %vm6564_vm0, %v6563_v1 }
 0xc36   : > { %6206 = vmatmul.mubr.msk.f32.gmra.mxu1 %vm337_vm1, %v7356_v3 }
 0xc37   : > { %6229 = vmatprep.mubr.msk.f32.mxu1 %vm6564_vm0, %v6563_v1 }
 0xcd6   : > { %v3044_v33 = vpop.f32.mrf.mxu1 }
 0xcd7   : > { %v3058_v38 = vsel %vm714_vm4, %v3044_v33, -inf }
 0xcd8   : > { %3059 = vmax.xlane.f32.xlu0 %v3058_v38  ;;  %v6135_v39 = vpop.f32.mrf.mxu1 }
 0xcda   : > { %v3049_v40 = vpop.f32.mrf.mxu1 }
 0xcdb   : > { %v3061_v11 = vsel %vm714_vm4, %v3049_v40, -inf }
 0xcdc   : > { %3062 = vmax.xlane.f32.xlu1 %v3061_v11  ;;  %v6138_v13 = vpop.f32.mrf.mxu1 }
 0xcde   : > { %v3054_v41 = vpop.f32.mrf.mxu1 }
 0xcdf   : > { %v3064_v19 = vsel %vm721_vm5, %v3054_v41, -inf }
 0xce0   : > { %3065 = vmax.xlane.f32.xlu0 %v3064_v19  ;;  %v6141_v42 = vpop.f32.mrf.mxu1 }
 0xce2   : > { %v3255_v62 = vpop.f32.mrf.mxu1 }
 0xce4   : > { %v6167_v0 = vpop.f32.mrf.mxu1 }
 0xce6   : > { %v3260_v2 = vpop.f32.mrf.mxu1 }
 0xce8   : > { %v6170_v4 = vpop.f32.mrf.mxu1 }
 0xcea   : > { %v3265_v12 = vpop.f32.mrf.mxu1 }
 0xcec   : > { %v6173_v8 = vpop.f32.mrf.mxu1 }
 0xcee   : > { %v3423_v31 = vpop.f32.mrf.mxu1 }
 0xcf0   : > { %v6201_v32 = vpop.f32.mrf.mxu1 }
 0xcf2   : > { %v3428_v9 = vpop.f32.mrf.mxu1 }
 0xd61   : > { %v3060_v6 = vpop.xlane.xlu0 %3059 }
 0xd62   : > { %v3067_v21 = vsub.f32 %v3044_v33, %v3060_v6  ;;  %v6204_v33 = vpop.f32.mrf.mxu1 }
 0xd64   : > { %v3070_v47 = vmul.f32 1.442695, %v3067_v21  ;;  %v3433_v38 = vpop.f32.mrf.mxu1 }
 0xd65   : > { %v3063_v49 = vpop.xlane.xlu1 %3062  ;;  %6224 = vmatpush3.msk.msra.mxu1 %vm756_vm3, %v3433_v38 }
 0xd66   : > { %6503 = vpow2.f32 %v3070_v47  ;;  %v3068_v50 = vsub.f32 %v3049_v40, %v3063_v49  ;;  %6225 = vmatprep.subr.mxu1 %v6563_v1  ;;  %v6207_v39 = vpop.f32.mrf.mxu1 }
 0xd67   : > { %6226 = vmatpush3.msra.mxu1 %v3428_v9  ;;  %v5339_v39 = vld [vmem:[%s7883_s3 + $0x58] sm:$0xff] }
 0xd68   : > { %v3072_v53 = vmul.f32 1.442695, %v3068_v50  ;;  %6227 = vmatprep.subr.mxu1 %v6563_v1 }
 0xd69   : > { %v3066_v7 = vpop.xlane.xlu0 %3065  ;;  %6228 = vmatpush3.msra.mxu1 %v3423_v31 }
 0xd6a   : > { %6505 = vpow2.f32 %v3072_v53  ;;  %v3069_v51 = vsub.f32 %v3054_v41, %v3066_v7  ;;  %6249 = vmatprep.subr.mxu1 %v6563_v1 }
 0xd6c   : > { %v3074_v52 = vmul.f32 1.442695, %v3069_v51 }
 0xd6e   : > { %6507 = vpow2.f32 %v3074_v52 }
 0xd73   : > { %v7430_v17 = vpop.eup %6503 }
 0xd74   : > { %6149 = vmatmul.mubr.msk.f32.vlgmr.msra.gmra.mxu0 %vm714_vm4, %v7430_v17  ;;  %v3076_v44 = vsel %vm714_vm4, %v7430_v17, 0.0 }
 0xd75   : > { %6175 = vmatpush3.msra.mxu0 %v5308_v54  ;;  %6151 = vmatprep.mubr.msk.f32.mxu0 %vm6564_vm0, %v6563_v1 }
 0xd76   : > { %6176 = vmatprep.subr.mxu0 %v6563_v1 }
 0xd77   : > { %v7443_v59 = vpop.eup %6505  ;;  %6177 = vmatpush3.msra.mxu0 %v5307_v56 }
 0xd78   : > { %6152 = vmatmul.mubr.msk.f32.gmra.mxu0 %vm714_vm4, %v7443_v59  ;;  %6178 = vmatprep.subr.mxu0 %v6563_v1  ;;  %v3079_v21 = vsel %vm714_vm4, %v7443_v59, 0.0 }
 0xd79   : > { %6154 = vmatprep.mubr.msk.f32.mxu0 %vm6564_vm0, %v6563_v1  ;;  %6179 = vmatpush3.msra.mxu0 %v5306_v58 }
 0xd7a   : > { %6180 = vmatprep.subr.mxu0 %v6563_v1 }
 0xd7b   : > { %v7454_v61 = vpop.eup %6507  ;;  %6181 = vmatpush3.msra.mxu0 %v5305_v60 }
 0xd7c   : > { %6155 = vmatmul.mubr.msk.f32.gmra.mxu0 %vm714_vm4, %v7454_v61  ;;  %6208 = vmatprep.subr.mxu0 %v6563_v1  ;;  %v3082_v6 = vsel %vm721_vm5, %v7454_v61, 0.0 }
 0xd7d   : > { %6182 = vmatprep.mubr.msk.f32.mxu0 %vm6564_vm0, %v6563_v1 }
 0xd80   : > { %6183 = vmatmul.mubr.msk.f32.vlgmr.msra.gmra.mxu0 %vm337_vm1, %v7305_v55 }
 0xd81   : > { %6185 = vmatprep.mubr.msk.f32.mxu0 %vm6564_vm0, %v6563_v1 }
 0xd84   : > { %6186 = vmatmul.mubr.msk.f32.gmra.mxu0 %vm337_vm1, %v7312_v57 }
 0xd85   : > { %6188 = vmatprep.mubr.msk.f32.mxu0 %vm6564_vm0, %v6563_v1 }
 0xd88   : > { %6189 = vmatmul.mubr.msk.f32.gmra.mxu0 %vm337_vm1, %v7319_v15 }
 0xd89   : > { %6214 = vmatprep.mubr.msk.f32.mxu0 %vm6564_vm0, %v6563_v1 }
 0xe34   : > { %v7501_v23 = vpop.f32.mrf.mxu0 }
 0xe36   : > { %v6150_v24 = vpop.f32.mrf.mxu0 }
 0xe38   : > { %v7503_v36 = vpop.f32.mrf.mxu0 }
 0xe3a   : > { %v6153_v26 = vpop.f32.mrf.mxu0 }
 0xe3c   : > { %v7505_v28 = vpop.f32.mrf.mxu0 }
 0xe3e   : > { %v6156_v25 = vpop.f32.mrf.mxu0 }
 0xe3f   : > { %v5329_v25 = vld [vmem:[%s7884_s4 + $0x8] sm:$0xff] }
 0xe40   : > { %v3339_v63 = vpop.f32.mrf.mxu0 }
 0xe42   : > { %v6184_v27 = vpop.f32.mrf.mxu0 }
 0xe44   : > { %v3344_v30 = vpop.f32.mrf.mxu0 }
 0xe46   : > { %v6187_v45 = vpop.f32.mrf.mxu0 }
 0xe48   : > { %v3349_v48 = vpop.f32.mrf.mxu0 }
 0xe49   : > { %6209 = vmatpush3.xpose.msk.msra.mxu0 %vm615_vm2, %v3349_v48 }
 0xe4a   : > { %v6190_v29 = vpop.f32.mrf.mxu0  ;;  %6210 = vmatprep.subr.mxu0 %v6563_v1 }
 0xe4d   : > { %6211 = vmatpush3.xpose.msk.msra.mxu0 %vm615_vm2, %v3344_v30 }
 0xe4e   : > { %6212 = vmatprep.subr.mxu0 %v6563_v1 }
 0xe51   : > { %6213 = vmatpush3.xpose.msk.msra.mxu0 %vm615_vm2, %v3339_v63  ;;  %v5343_v63 = vld [vmem:[%s7883_s3 + $0xc0] sm:$0xff] }
 0xe52   : > { %6238 = vmatprep.subr.mxu0 %v6563_v1 }
 0xe54   : > { %6215 = vmatmul.mubr.msk.f32.vlgmr.msra.gmra.mxu0 %vm615_vm2, %v3255_v62  ;;  %v3184_v62 = vld [vmem:[%s7884_s4] sm:$0xff] }
 0xe55   : > { %6217 = vmatprep.mubr.msk.f32.mxu0 %vm6564_vm0, %v6563_v1  ;;  %6239 = vmatpush3.msra.mxu0 %v5329_v25 }
 0xe56   : > { %6260 = vmatprep.subr.mxu0 %v6563_v1 }
 0xe58   : > { %6218 = vmatmul.mubr.msk.f32.gmra.mxu0 %vm615_vm2, %v3260_v2 }
 0xe59   : > { %6220 = vmatprep.mubr.msk.f32.mxu0 %vm6564_vm0, %v6563_v1 }
 0xe5c   : > { %6221 = vmatmul.mubr.msk.f32.gmra.mxu0 %vm615_vm2, %v3265_v12 }
 0xe5d   : > { %6240 = vmatprep.mubr.msk.f32.mxu0 %vm6564_vm0, %v6563_v1 }
 0xf14   : > { %v3521_v40 = vpop.f32.mrf.mxu0 }
 0xf15   : > { %v3535_v11 = vsel %vm714_vm4, %v3521_v40, -inf }
 0xf16   : > { %3536 = vmax.xlane.f32.xlu1 %v3535_v11  ;;  %v6216_v13 = vpop.f32.mrf.mxu0 }
 0xf18   : > { %v3526_v41 = vpop.f32.mrf.mxu0 }
 0xf19   : > { %v3538_v19 = vsel %vm714_vm4, %v3526_v41, -inf }
 0xf1a   : > { %3539 = vmax.xlane.f32.xlu0 %v3538_v19  ;;  %v6219_v42 = vpop.f32.mrf.mxu0  ;;  %v5337_v19 = vld [vmem:[%s7883_s3 + $0x48] sm:$0xff] }
 0xf1c   : > { %v3531_v43 = vpop.f32.mrf.mxu0 }
 0xf1d   : > { %v3541_v20 = vsel %vm721_vm5, %v3531_v43, -inf }
 0xf1e   : > { %3077 = vadd.xlane.f32.xlu0 %v3076_v44  ;;  %3542 = vmax.xlane.f32.xlu1 %v3541_v20  ;;  %v6222_v46 = vpop.f32.mrf.mxu0 }
 0xf22   : > { %3083 = vadd.xlane.f32.xlu0 %v3082_v6  ;;  %3080 = vadd.xlane.f32.xlu1 %v3079_v21 }
 0xf9f   : > { %v3537_v47 = vpop.xlane.xlu1 %3536 }
 0xfa0   : > { %v3544_v49 = vsub.f32 %v3521_v40, %v3537_v47 }
 0xfa2   : > { %v3547_v50 = vmul.f32 1.442695, %v3544_v49 }
 0xfa3   : > { %v3540_v53 = vpop.xlane.xlu0 %3539 }
 0xfa4   : > { %6509 = vpow2.f32 %v3547_v50  ;;  %v3545_v7 = vsub.f32 %v3526_v41, %v3540_v53 }
 0xfa6   : > { %v3549_v51 = vmul.f32 1.442695, %v3545_v7 }
 0xfa7   : > { %v3543_v52 = vpop.xlane.xlu1 %3542  ;;  %v3078_v54 = vpop.xlane.xlu0 %3077 }
 0xfa8   : > { %6511 = vpow2.f32 %v3549_v51  ;;  %v3546_v56 = vsub.f32 %v3531_v43, %v3543_v52  ;;  %v5336_v43 = vld [vmem:[%s7883_s3 + $0x40] sm:$0xff] }
 0xfa9   : > { %6513 = vrcp.f32 %v3078_v54 }
 0xfaa   : > { %v3551_v58 = vmul.f32 1.442695, %v3546_v56 }
 0xfab   : > { %v3081_v60 = vpop.xlane.xlu1 %3080  ;;  %v3084_v59 = vpop.xlane.xlu0 %3083 }
 0xfac   : > { %6515 = vpow2.f32 %v3551_v58  ;;  %v5352_v58 = vld [vmem:[%s7883_s3 + $0x150] sm:$0xff] }
 0xfad   : > { %6517 = vrcp.f32 %v3081_v60  ;;  %v5351_v60 = vld [vmem:[%s7883_s3 + $0x148] sm:$0xff] }
 0xfae   : > { %6519 = vrcp.f32 %v3084_v59 }
 0xfb1   : > { %v6510_v61 = vpop.eup %6509 }
 0xfb2   : > { %6230 = vmatmul.mubr.msk.f32.vlgmr.msra.gmra.mxu1 %vm714_vm4, %v6510_v61  ;;  %v3553_v0 = vsel %vm714_vm4, %v6510_v61, 0.0 }
 0xfb3   : > { %3554 = vadd.xlane.f32.xlu1 %v3553_v0  ;;  %6232 = vmatprep.mubr.msk.f32.mxu1 %vm6564_vm0, %v6563_v1 }
 0xfb4   : > { %6250 = vmatpush3.msra.mxu1 %v3184_v62 }
 0xfb5   : > { %v6512_v2 = vpop.eup %6511  ;;  %6277 = vmatprep.subr.mxu1 %v6563_v1 }
 0xfb6   : > { %6233 = vmatmul.mubr.msk.f32.gmra.mxu1 %vm714_vm4, %v6512_v2  ;;  %v3556_v4 = vsel %vm714_vm4, %v6512_v2, 0.0  ;;  %v6514_v12 = vpop.eup %6513 }
 0xfb7   : > { %3557 = vadd.xlane.f32.xlu0 %v3556_v4  ;;  %6235 = vmatprep.mubr.msk.f32.mxu1 %vm6564_vm0, %v6563_v1  ;;  %v3181_v18 = vmul.f32 %v6514_v12, %v7501_v23  ;;  %v5346_v23 = vld [vmem:[%s7883_s3 + $0xd8] sm:$0xff]  ;;  %v3088_v48 = vmul.f32 %v6514_v12, %v7430_v17  ;;  %v5338_v17 = vld [vmem:[%s7883_s3 + $0x50] sm:$0xff] }
 0xfb9   : > { %v6516_v8 = vpop.eup %6515 }
 0xfba   : > { %6236 = vmatmul.mubr.msk.f32.gmra.mxu1 %vm714_vm4, %v6516_v8  ;;  %v3559_v16 = vsel %vm721_vm5, %v6516_v8, 0.0  ;;  %v6518_v14 = vpop.eup %6517 }
 0xfbb   : > { %3560 = vadd.xlane.f32.xlu1 %v3559_v16  ;;  %6251 = vmatprep.mubr.msk.f32.mxu1 %vm6564_vm0, %v6563_v1  ;;  %v3182_v22 = vmul.f32 %v6518_v14, %v7503_v36  ;;  %v6520_v24 = vpop.eup %6519  ;;  %v5345_v36 = vld [vmem:[%s7883_s3 + $0xd0] sm:$0xff] }
 0xfbc   : > { %v3183_v26 = vmul.f32 %v6520_v24, %v7505_v28  ;;  %v5344_v28 = vld [vmem:[%s7883_s3 + $0xc8] sm:$0xff] }
 0xfbe   : > { %6252 = vmatmul.mubr.msk.f32.vlgmr.msra.gmra.mxu1 %vm615_vm2, %v3181_v18 }
 0xfbf   : > { %6254 = vmatprep.mubr.msk.f32.mxu1 %vm6564_vm0, %v6563_v1  ;;  %6278 = vmatpush3.msra.mxu1 %v5346_v23 }
 0xfc0   : > { %6279 = vmatprep.subr.mxu1 %v6563_v1 }
 0xfc1   : > { %6280 = vmatpush3.msra.mxu1 %v5345_v36 }
 0xfc2   : > { %6255 = vmatmul.mubr.msk.f32.gmra.mxu1 %vm615_vm2, %v3182_v22  ;;  %6281 = vmatprep.subr.mxu1 %v6563_v1 }
 0xfc3   : > { %6257 = vmatprep.mubr.msk.f32.mxu1 %vm6564_vm0, %v6563_v1  ;;  %6282 = vmatpush3.msra.mxu1 %v5344_v28 }
 0xfc4   : > { %6283 = vmatprep.subr.mxu1 %v6563_v1 }
 0xfc5   : > { %6284 = vmatpush3.msra.mxu1 %v5343_v63 }
 0xfc6   : > { %6258 = vmatmul.mubr.msk.f32.gmra.mxu1 %vm615_vm2, %v3183_v26  ;;  %6311 = vmatprep.subr.mxu1 %v6563_v1 }
 0xfc7   : > { %6285 = vmatprep.mubr.msk.f32.mxu1 %vm6564_vm0, %v6563_v1 }
 0xfca   : > { %6286 = vmatmul.mubr.msk.f32.vlgmr.msra.gmra.mxu1 %vm337_vm1, %v7305_v55 }
 0xfcb   : > { %6288 = vmatprep.mubr.msk.f32.mxu1 %vm6564_vm0, %v6563_v1 }
 0xfce   : > { %6289 = vmatmul.mubr.msk.f32.gmra.mxu1 %vm337_vm1, %v7312_v57 }
 0xfcf   : > { %6291 = vmatprep.mubr.msk.f32.mxu1 %vm6564_vm0, %v6563_v1 }
 0xfd2   : > { %6292 = vmatmul.mubr.msk.f32.gmra.mxu1 %vm337_vm1, %v7319_v15 }
 0xfd3   : > { %6317 = vmatprep.mubr.msk.f32.mxu1 %vm6564_vm0, %v6563_v1 }
0x103c   : > { %v3555_v27 = vpop.xlane.xlu1 %3554 }
0x103d   : > { %6521 = vrcp.f32 %v3555_v27 }
0x1040   : > { %v3558_v32 = vpop.xlane.xlu0 %3557 }
0x1041   : > { %6523 = vrcp.f32 %v3558_v32 }
0x1044   : > { %v3561_v9 = vpop.xlane.xlu1 %3560 }
0x1045   : > { %6525 = vrcp.f32 %v3561_v9 }
0x104a   : > { %v6522_v30 = vpop.eup %6521 }
0x104b   : > { %v3565_v45 = vmul.f32 %v6522_v30, %v6510_v61  ;;  %v5350_v61 = vld [vmem:[%s7883_s3 + $0x140] sm:$0xff] }
0x104d   : > { %v4983_v29 = vrot.slane %v3565_v45, 7 }
0x104e   : > { %v6524_v11 = vpop.eup %6523 }
0x104f   : > { %v7597_v31 = vsel %vm756_vm3, %v3088_v48, %v4983_v29 }
0x1052   : > { %v6526_v44 = vpop.eup %6525 }
0x1072   : > { %v3644_v33 = vpop.f32.mrf.mxu1 }
0x1073   : > { %v3658_v38 = vmul.f32 %v6522_v30, %v3644_v33 }
0x1074   : > { %v6231_v40 = vpop.f32.mrf.mxu1 }
0x1075   : > { %6241 = vmatmul.mubr.msk.f32.vlgmr.msra.gmra.mxu0 %vm615_vm2, %v3658_v38 }
0x1076   : > { %v3649_v13 = vpop.f32.mrf.mxu1  ;;  %6261 = vmatpush3.msra.mxu0 %v5339_v39  ;;  %6243 = vmatprep.mubr.msk.f32.mxu0 %vm6564_vm0, %v6563_v1 }
0x1077   : > { %v3659_v41 = vmul.f32 %v6524_v11, %v3649_v13  ;;  %6262 = vmatprep.subr.mxu0 %v6563_v1 }
0x1078   : > { %v6234_v42 = vpop.f32.mrf.mxu1  ;;  %6263 = vmatpush3.msra.mxu0 %v5338_v17 }
0x1079   : > { %6244 = vmatmul.mubr.msk.f32.gmra.mxu0 %vm615_vm2, %v3659_v41  ;;  %6264 = vmatprep.subr.mxu0 %v6563_v1 }
0x107a   : > { %v3654_v20 = vpop.f32.mrf.mxu1  ;;  %6246 = vmatprep.mubr.msk.f32.mxu0 %vm6564_vm0, %v6563_v1  ;;  %6265 = vmatpush3.msra.mxu0 %v5337_v19 }
0x107b   : > { %v3660_v46 = vmul.f32 %v6526_v44, %v3654_v20  ;;  %6266 = vmatprep.subr.mxu0 %v6563_v1 }
0x107c   : > { %v6237_v6 = vpop.f32.mrf.mxu1  ;;  %6267 = vmatpush3.msra.mxu0 %v5336_v43 }
0x107d   : > { %6247 = vmatmul.mubr.msk.f32.gmra.mxu0 %vm615_vm2, %v3660_v46  ;;  %6294 = vmatprep.subr.mxu0 %v6563_v1 }
0x107e   : > { %v7622_v21 = vpop.f32.mrf.mxu1  ;;  %6268 = vmatprep.mubr.msk.f32.mxu0 %vm6564_vm0, %v6563_v1 }
0x1080   : > { %v6253_v47 = vpop.f32.mrf.mxu1 }
0x1081   : > { %6269 = vmatmul.mubr.msk.f32.vlgmr.msra.gmra.mxu0 %vm337_vm1, %v7247_v34 }
0x1082   : > { %v7628_v49 = vpop.f32.mrf.mxu1  ;;  %6271 = vmatprep.mubr.msk.f32.mxu0 %vm6564_vm0, %v6563_v1 }
0x1084   : > { %v6256_v50 = vpop.f32.mrf.mxu1 }
0x1085   : > { %6272 = vmatmul.mubr.msk.f32.gmra.mxu0 %vm337_vm1, %v7256_v35 }
0x1086   : > { %v7634_v53 = vpop.f32.mrf.mxu1  ;;  %6274 = vmatprep.mubr.msk.f32.mxu0 %vm6564_vm0, %v6563_v1 }
0x1088   : > { %v6259_v7 = vpop.f32.mrf.mxu1 }
0x1089   : > { %6275 = vmatmul.mubr.msk.f32.gmra.mxu0 %vm337_vm1, %v7263_v37  ;;  %v5353_v37 = vld [vmem:[%s7883_s3 + $0x158] sm:$0xff]  ;;  %v5367_v7 = vld [vmem:[%s7884_s4 + $0x10] sm:$0xff] }
0x108a   : > { %6302 = vmatprep.mubr.msk.f32.mxu0 %vm6564_vm0, %v6563_v1  ;;  %v3994_v34 = vpop.f32.mrf.mxu1  ;;  %6295 = vmatpush3.msra.mxu0 %v5353_v37  ;;  %v6554_v37 = vld [vmem:[%s6656_s23 + $0x28] sm:$0x1] }
0x108b   : > { %6296 = vmatprep.subr.mxu0 %v6563_v1 }
0x108c   : > { %v6287_v51 = vpop.f32.mrf.mxu1  ;;  %6297 = vmatpush3.msra.mxu0 %v5352_v58 }
0x108d   : > { %6298 = vmatprep.subr.mxu0 %v6563_v1  ;;  %v5373_v51 = vld [vmem:[%s7883_s3 + $0x70] sm:$0xff] }
0x108e   : > { %v3999_v52 = vpop.f32.mrf.mxu1  ;;  %6299 = vmatpush3.msra.mxu0 %v5351_v60 }
0x108f   : > { %6300 = vmatprep.subr.mxu0 %v6563_v1 }
0x1090   : > { %v6290_v54 = vpop.f32.mrf.mxu1  ;;  %6301 = vmatpush3.msra.mxu0 %v5350_v61 }
0x1091   : > { %6303 = vmatmul.mubr.msk.f32.vlgmr.msra.gmra.mxu0 %vm337_vm1, %v7340_v10  ;;  %6326 = vmatprep.subr.mxu0 %v6563_v1  ;;  %v5371_v54 = vld [vmem:[%s7883_s3 + $0x60] sm:$0xff] }
0x1092   : > { %v4004_v56 = vpop.f32.mrf.mxu1  ;;  %6305 = vmatprep.mubr.msk.f32.mxu0 %vm6564_vm0, %v6563_v1 }
0x1093   : > { %6312 = vmatpush3.xpose.msk.msra.mxu1 %vm615_vm2, %v4004_v56  ;;  %v6552_v56 = vld [vmem:[%s6656_s23 + $0x18] sm:$0xff] }
0x1094   : > { %6313 = vmatprep.subr.mxu1 %v6563_v1  ;;  %v6293_v35 = vpop.f32.mrf.mxu1 }
0x1095   : > { %6306 = vmatmul.mubr.msk.f32.gmra.mxu0 %vm337_vm1, %v7349_v5  ;;  %v6553_v35 = vld [vmem:[%s6656_s23 + $0x20] sm:$0xff] }
0x1096   : > { %6308 = vmatprep.mubr.msk.f32.mxu0 %vm6564_vm0, %v6563_v1 }
0x1097   : > { %6314 = vmatpush3.xpose.msk.msra.mxu1 %vm615_vm2, %v3999_v52  ;;  %v5372_v52 = vld [vmem:[%s7883_s3 + $0x68] sm:$0xff] }
0x1098   : > { %6315 = vmatprep.subr.mxu1 %v6563_v1 }
0x1099   : > { %6309 = vmatmul.mubr.msk.f32.gmra.mxu0 %vm337_vm1, %v7356_v3 }
0x109a   : > { %6332 = vmatprep.mubr.msk.f32.mxu0 %vm6564_vm0, %v6563_v1 }
0x109b   : > { %6316 = vmatpush3.xpose.msk.msra.mxu1 %vm615_vm2, %v3994_v34  ;;  %v5374_v34 = vld [vmem:[%s7883_s3 + $0x78] sm:$0xff] }
0x109c   : > { %6341 = vmatprep.subr.mxu1 %v6563_v1 }
0x1135   : > { %v7676_v59 = vpop.f32.mrf.mxu0 }
0x1137   : > { %v6242_v62 = vpop.f32.mrf.mxu0 }
0x1139   : > { %v7678_v0 = vpop.f32.mrf.mxu0 }
0x113b   : > { %v6245_v2 = vpop.f32.mrf.mxu0 }
0x113d   : > { %v7680_v4 = vpop.f32.mrf.mxu0 }
0x113f   : > { %v6248_v12 = vpop.f32.mrf.mxu0 }
0x1141   : > { %v3910_v8 = vpop.f32.mrf.mxu0 }
0x1142   : > { %6318 = vmatmul.mubr.msk.f32.vlgmr.msra.gmra.mxu1 %vm615_vm2, %v3910_v8 }
0x1143   : > { %v6270_v16 = vpop.f32.mrf.mxu0  ;;  %6320 = vmatprep.mubr.msk.f32.mxu1 %vm6564_vm0, %v6563_v1  ;;  %6342 = vmatpush3.msra.mxu1 %v5367_v7 }
0x1144   : > { %6369 = vmatprep.subr.mxu1 %v6563_v1 }
0x1145   : > { %v3915_v18 = vpop.f32.mrf.mxu0 }
0x1146   : > { %6321 = vmatmul.mubr.msk.f32.gmra.mxu1 %vm615_vm2, %v3915_v18 }
0x1147   : > { %v6273_v14 = vpop.f32.mrf.mxu0  ;;  %6323 = vmatprep.mubr.msk.f32.mxu1 %vm6564_vm0, %v6563_v1 }
0x1148   : > { %v5381_v14 = vld [vmem:[%s7883_s3 + $0xf8] sm:$0xff] }
0x1149   : > { %v3920_v22 = vpop.f32.mrf.mxu0 }
0x114a   : > { %6324 = vmatmul.mubr.msk.f32.gmra.mxu1 %vm615_vm2, %v3920_v22 }
0x114b   : > { %v6276_v24 = vpop.f32.mrf.mxu0  ;;  %6343 = vmatprep.mubr.msk.f32.mxu1 %vm6564_vm0, %v6563_v1 }
0x114c   : > { %v5380_v24 = vld [vmem:[%s7883_s3 + $0xf0] sm:$0xff] }
0x1151   : > { %v4078_v26 = vpop.f32.mrf.mxu0 }
0x1153   : > { %v6304_v23 = vpop.f32.mrf.mxu0 }
0x1155   : > { %v4083_v36 = vpop.f32.mrf.mxu0 }
0x1157   : > { %v6307_v25 = vpop.f32.mrf.mxu0 }
0x1159   : > { %v4088_v28 = vpop.f32.mrf.mxu0 }
0x115a   : > { %6327 = vmatpush3.msk.msra.mxu0 %vm756_vm3, %v4088_v28  ;;  %v5378_v28 = vld [vmem:[%s7883_s3 + $0xe0] sm:$0xff] }
0x115b   : > { %6328 = vmatprep.subr.mxu0 %v6563_v1  ;;  %v6310_v63 = vpop.f32.mrf.mxu0 }
0x115c   : > { %6329 = vmatpush3.msra.mxu0 %v4083_v36  ;;  %v5379_v36 = vld [vmem:[%s7883_s3 + $0xe8] sm:$0xff] }
0x115d   : > { %6330 = vmatprep.subr.mxu0 %v6563_v1 }
0x115e   : > { %6331 = vmatpush3.msra.mxu0 %v4078_v26 }
0x115f   : > { %6352 = vmatprep.subr.mxu0 %v6563_v1 }
0x1202   : > { %v4176_v27 = vpop.f32.mrf.mxu1 }
0x1203   : > { %v4190_v30 = vsel %vm714_vm4, %v4176_v27, -inf }
0x1204   : > { %4191 = vmax.xlane.f32.xlu0 %v4190_v30  ;;  %v6319_v45 = vpop.f32.mrf.mxu1 }
0x1206   : > { %v4181_v48 = vpop.f32.mrf.mxu1 }
0x1207   : > { %v4193_v29 = vsel %vm714_vm4, %v4181_v48, -inf }
0x1208   : > { %4194 = vmax.xlane.f32.xlu1 %v4193_v29  ;;  %v6322_v32 = vpop.f32.mrf.mxu1 }
0x120a   : > { %v4186_v9 = vpop.f32.mrf.mxu1 }
0x120b   : > { %v4196_v33 = vsel %vm721_vm5, %v4186_v9, -inf }
0x120c   : > { %4197 = vmax.xlane.f32.xlu0 %v4196_v33  ;;  %v6325_v38 = vpop.f32.mrf.mxu1 }
0x120d   : > { %v5388_v38 = vld [vmem:[%s7883_s3 + $0x178] sm:$0xff] }
0x128d   : > { %v4192_v39 = vpop.xlane.xlu0 %4191 }
0x128e   : > { %v4199_v40 = vsub.f32 %v4176_v27, %v4192_v39  ;;  %v5385_v39 = vld [vmem:[%s7883_s3 + $0x160] sm:$0xff] }
0x1290   : > { %v4202_v17 = vmul.f32 1.442695, %v4199_v40 }
0x1291   : > { %v4195_v11 = vpop.xlane.xlu1 %4194 }
0x1292   : > { %6527 = vpow2.f32 %v4202_v17  ;;  %v4200_v13 = vsub.f32 %v4181_v48, %v4195_v11 }
0x1294   : > { %v4204_v41 = vmul.f32 1.442695, %v4200_v13  ;;  %v3832_v13 = vadd.f32 %v7628_v49, %v7678_v0 }
0x1295   : > { %v4198_v19 = vpop.xlane.xlu0 %4197 }
0x1296   : > { %6529 = vpow2.f32 %v4204_v41  ;;  %v4201_v42 = vsub.f32 %v4186_v9, %v4198_v19 }
0x1298   : > { %v4206_v43 = vmul.f32 1.442695, %v4201_v42 }
0x129a   : > { %6531 = vpow2.f32 %v4206_v43 }
0x129f   : > { %v6528_v44 = vpop.eup %6527 }
0x12a0   : > { %6333 = vmatmul.mubr.msk.f32.vlgmr.msra.gmra.mxu0 %vm714_vm4, %v6528_v44  ;;  %v4208_v20 = vsel %vm714_vm4, %v6528_v44, 0.0 }
0x12a1   : > { %4209 = vadd.xlane.f32.xlu1 %v4208_v20  ;;  %6335 = vmatprep.mubr.msk.f32.mxu0 %vm6564_vm0, %v6563_v1 }
0x12a2   : > { %6353 = vmatpush3.msra.mxu0 %v5374_v34 }
0x12a3   : > { %v6530_v46 = vpop.eup %6529  ;;  %6354 = vmatprep.subr.mxu0 %v6563_v1 }
0x12a4   : > { %6336 = vmatmul.mubr.msk.f32.gmra.mxu0 %vm714_vm4, %v6530_v46  ;;  %v4211_v6 = vsel %vm714_vm4, %v6530_v46, 0.0 }
0x12a5   : > { %4212 = vadd.xlane.f32.xlu0 %v4211_v6  ;;  %6338 = vmatprep.mubr.msk.f32.mxu0 %vm6564_vm0, %v6563_v1 }
0x12a6   : > { %6355 = vmatpush3.msra.mxu0 %v5373_v51 }
0x12a7   : > { %v6532_v47 = vpop.eup %6531  ;;  %6356 = vmatprep.subr.mxu0 %v6563_v1 }
0x12a8   : > { %6339 = vmatmul.mubr.msk.f32.gmra.mxu0 %vm714_vm4, %v6532_v47  ;;  %v4214_v50 = vsel %vm721_vm5, %v6532_v47, 0.0 }
0x12a9   : > { %4215 = vadd.xlane.f32.xlu1 %v4214_v50  ;;  %6360 = vmatprep.mubr.msk.f32.mxu0 %vm6564_vm0, %v6563_v1 }
0x12aa   : > { %6357 = vmatpush3.msra.mxu0 %v5372_v52 }
0x12ab   : > { %6358 = vmatprep.subr.mxu0 %v6563_v1 }
0x12ac   : > { %6359 = vmatpush3.msra.mxu0 %v5371_v54 }
0x12ad   : > { %6361 = vmatmul.mubr.msk.f32.vlgmr.msra.gmra.mxu0 %vm337_vm1, %v6552_v56  ;;  %6386 = vmatprep.subr.mxu0 %v6563_v1 }
0x12ae   : > { %6363 = vmatprep.mubr.msk.f32.mxu0 %vm6564_vm0, %v6563_v1  ;;  %6387 = vmatpush3.msra.mxu0 %v5388_v38 }
0x12af   : > { %6388 = vmatprep.subr.mxu0 %v6563_v1 }
0x12b1   : > { %6364 = vmatmul.mubr.msk.f32.gmra.mxu0 %vm337_vm1, %v6553_v35 }
0x12b2   : > { %6366 = vmatprep.mubr.msk.f32.mxu0 %vm6564_vm0, %v6563_v1 }
0x12b5   : > { %6367 = vmatmul.mubr.msk.f32.gmra.mxu0 %vm337_vm1, %v6554_v37 }
0x12b6   : > { %6394 = vmatprep.mubr.msk.f32.mxu0 %vm6564_vm0, %v6563_v1 }
0x132a   : > { %v4210_v58 = vpop.xlane.xlu1 %4209 }
0x132b   : > { %6533 = vrcp.f32 %v4210_v58 }
0x132e   : > { %v4213_v12 = vpop.xlane.xlu0 %4212 }
0x132f   : > { %6535 = vrcp.f32 %v4213_v12 }
0x1332   : > { %v4216_v8 = vpop.xlane.xlu1 %4215 }
0x1333   : > { %6537 = vrcp.f32 %v4216_v8 }
0x1338   : > { %v6534_v60 = vpop.eup %6533 }
0x1339   : > { %v4220_v61 = vmul.f32 %v6534_v60, %v6528_v44 }
0x133b   : > { %v4986_v62 = vrot.slane %v4220_v61, 6 }
0x133c   : > { %v6536_v26 = vpop.eup %6535 }
0x133d   : > { %v7744_v2 = vsel %vm2663_vm6, %v7597_v31, %v4986_v62 }
0x1340   : > { %v6538_v63 = vpop.eup %6537 }
0x1360   : > { %v4299_v16 = vpop.f32.mrf.mxu0 }
0x1361   : > { %v4313_v18 = vmul.f32 %v6534_v60, %v4299_v16 }
0x1362   : > { %v6334_v22 = vpop.f32.mrf.mxu0 }
0x1363   : > { %6344 = vmatmul.mubr.msk.f32.vlgmr.msra.gmra.mxu1 %vm615_vm2, %v4313_v18 }
0x1364   : > { %v4304_v31 = vpop.f32.mrf.mxu0  ;;  %6370 = vmatpush3.msra.mxu1 %v5381_v14  ;;  %6346 = vmatprep.mubr.msk.f32.mxu1 %vm6564_vm0, %v6563_v1 }
0x1365   : > { %v4314_v23 = vmul.f32 %v6536_v26, %v4304_v31  ;;  %6371 = vmatprep.subr.mxu1 %v6563_v1 }
0x1366   : > { %v6337_v25 = vpop.f32.mrf.mxu0  ;;  %6372 = vmatpush3.msra.mxu1 %v5380_v24 }
0x1367   : > { %6347 = vmatmul.mubr.msk.f32.gmra.mxu1 %vm615_vm2, %v4314_v23  ;;  %6373 = vmatprep.subr.mxu1 %v6563_v1 }
0x1368   : > { %v4309_v27 = vpop.f32.mrf.mxu0  ;;  %6349 = vmatprep.mubr.msk.f32.mxu1 %vm6564_vm0, %v6563_v1  ;;  %6374 = vmatpush3.msra.mxu1 %v5379_v36 }
0x1369   : > { %v4315_v30 = vmul.f32 %v6538_v63, %v4309_v27  ;;  %6375 = vmatprep.subr.mxu1 %v6563_v1  ;;  %v5402_v63 = vld [vmem:[%s7884_s4 + $0x18] sm:$0xff] }
0x136a   : > { %v6340_v45 = vpop.f32.mrf.mxu0  ;;  %6376 = vmatpush3.msra.mxu1 %v5378_v28 }
0x136b   : > { %6350 = vmatmul.mubr.msk.f32.gmra.mxu1 %vm615_vm2, %v4315_v30  ;;  %6403 = vmatprep.subr.mxu1 %v6563_v1 }
0x136c   : > { %6377 = vmatprep.mubr.msk.f32.mxu1 %vm6564_vm0, %v6563_v1 }
0x136d   : > { %v4479_v48 = vpop.f32.mrf.mxu0 }
0x136f   : > { %6378 = vmatmul.mubr.msk.f32.vlgmr.msra.gmra.mxu1 %vm337_vm1, %v7305_v55  ;;  %v6362_v29 = vpop.f32.mrf.mxu0 }
0x1370   : > { %6380 = vmatprep.mubr.msk.f32.mxu1 %vm6564_vm0, %v6563_v1 }
0x1371   : > { %v4484_v32 = vpop.f32.mrf.mxu0 }
0x1373   : > { %6381 = vmatmul.mubr.msk.f32.gmra.mxu1 %vm337_vm1, %v7312_v57  ;;  %v6365_v9 = vpop.f32.mrf.mxu0  ;;  %v5387_v57 = vld [vmem:[%s7883_s3 + $0x170] sm:$0xff] }
0x1374   : > { %6383 = vmatprep.mubr.msk.f32.mxu1 %vm6564_vm0, %v6563_v1  ;;  %6389 = vmatpush3.msra.mxu0 %v5387_v57 }
0x1375   : > { %v4489_v55 = vpop.f32.mrf.mxu0  ;;  %6390 = vmatprep.subr.mxu0 %v6563_v1 }
0x1377   : > { %6384 = vmatmul.mubr.msk.f32.gmra.mxu1 %vm337_vm1, %v7319_v15  ;;  %v6368_v33 = vpop.f32.mrf.mxu0  ;;  %v5386_v15 = vld [vmem:[%s7883_s3 + $0x168] sm:$0xff] }
0x1378   : > { %6409 = vmatprep.mubr.msk.f32.mxu1 %vm6564_vm0, %v6563_v1  ;;  %6391 = vmatpush3.msra.mxu0 %v5386_v15 }
0x1379   : > { %6392 = vmatprep.subr.mxu0 %v6563_v1 }
0x137a   : > { %6393 = vmatpush3.msra.mxu0 %v5385_v39 }
0x137b   : > { %6395 = vmatmul.mubr.msk.f32.vlgmr.msra.gmra.mxu0 %vm337_vm1, %v7340_v10  ;;  %6418 = vmatprep.subr.mxu0 %v6563_v1  ;;  %v3827_v10 = vadd.f32 %v7622_v21, %v7676_v59 }
0x137c   : > { %6397 = vmatprep.mubr.msk.f32.mxu0 %vm6564_vm0, %v6563_v1 }
0x137f   : > { %6398 = vmatmul.mubr.msk.f32.gmra.mxu0 %vm337_vm1, %v7349_v5 }
0x1380   : > { %6400 = vmatprep.mubr.msk.f32.mxu0 %vm6564_vm0, %v6563_v1 }
0x1383   : > { %6401 = vmatmul.mubr.msk.f32.gmra.mxu0 %vm337_vm1, %v7356_v3  ;;  %v3837_v3 = vadd.f32 %v7634_v53, %v7680_v4 }
0x1384   : > { %6424 = vmatprep.mubr.msk.f32.mxu0 %vm6564_vm0, %v6563_v1 }
0x1423   : > { %v4392_v40 = vpop.f32.mrf.mxu1 }
0x1424   : > { %v7813_v17 = vadd.f32 %v4392_v40, %v3827_v10 }
0x1425   : > { %v6345_v11 = vpop.f32.mrf.mxu1 }
0x1427   : > { %v4397_v5 = vpop.f32.mrf.mxu1 }
0x1428   : > { %v7817_v41 = vadd.f32 %v4397_v5, %v3832_v13 }
0x1429   : > { %v6348_v19 = vpop.f32.mrf.mxu1 }
0x142b   : > { %v4402_v42 = vpop.f32.mrf.mxu1 }
0x142c   : > { %v7821_v43 = vadd.f32 %v4402_v42, %v3837_v3 }
0x142d   : > { %v6351_v44 = vpop.f32.mrf.mxu1 }
0x142f   : > { %v4563_v20 = vpop.f32.mrf.mxu1 }
0x1431   : > { %v6379_v21 = vpop.f32.mrf.mxu1 }
0x1433   : > { %v4568_v59 = vpop.f32.mrf.mxu1 }
0x1435   : > { %v6382_v46 = vpop.f32.mrf.mxu1 }
0x1437   : > { %v4573_v6 = vpop.f32.mrf.mxu1 }
0x1438   : > { %6404 = vmatpush3.xpose.msk.msra.mxu1 %vm615_vm2, %v4573_v6 }
0x1439   : > { %v6385_v47 = vpop.f32.mrf.mxu1  ;;  %6405 = vmatprep.subr.mxu1 %v6563_v1 }
0x143b   : > { %v4647_v49 = vpop.f32.mrf.mxu0 }
0x143c   : > { %6406 = vmatpush3.xpose.msk.msra.mxu1 %vm615_vm2, %v4568_v59 }
0x143d   : > { %6407 = vmatprep.subr.mxu1 %v6563_v1  ;;  %v6396_v53 = vpop.f32.mrf.mxu0 }
0x143f   : > { %v4652_v0 = vpop.f32.mrf.mxu0 }
0x1440   : > { %6408 = vmatpush3.xpose.msk.msra.mxu1 %vm615_vm2, %v4563_v20 }
0x1441   : > { %6433 = vmatprep.subr.mxu1 %v6563_v1  ;;  %v6399_v4 = vpop.f32.mrf.mxu0 }
0x1443   : > { %6410 = vmatmul.mubr.msk.f32.vlgmr.msra.gmra.mxu1 %vm615_vm2, %v4479_v48  ;;  %v4657_v50 = vpop.f32.mrf.mxu0 }
0x1444   : > { %6412 = vmatprep.mubr.msk.f32.mxu1 %vm6564_vm0, %v6563_v1  ;;  %6419 = vmatpush3.msk.msra.mxu0 %vm756_vm3, %v4657_v50 }
0x1445   : > { %6420 = vmatprep.subr.mxu0 %v6563_v1  ;;  %v6402_v7 = vpop.f32.mrf.mxu0  ;;  %6434 = vmatpush3.msra.mxu1 %v5402_v63 }
0x1446   : > { %6421 = vmatpush3.msra.mxu0 %v4652_v0 }
0x1447   : > { %6413 = vmatmul.mubr.msk.f32.gmra.mxu1 %vm615_vm2, %v4484_v32  ;;  %6422 = vmatprep.subr.mxu0 %v6563_v1 }
0x1448   : > { %6415 = vmatprep.mubr.msk.f32.mxu1 %vm6564_vm0, %v6563_v1  ;;  %6423 = vmatpush3.msra.mxu0 %v4647_v49 }
0x144b   : > { %6416 = vmatmul.mubr.msk.f32.gmra.mxu1 %vm615_vm2, %v4489_v55 }
0x144c   : > { %6435 = vmatprep.mubr.msk.f32.mxu1 %vm6564_vm0, %v6563_v1 }
0x1503   : > { %v4745_v34 = vpop.f32.mrf.mxu1 }
0x1504   : > { %v4759_v51 = vsel %vm714_vm4, %v4745_v34, -inf }
0x1505   : > { %4760 = vmax.xlane.f32.xlu0 %v4759_v51  ;;  %v6411_v52 = vpop.f32.mrf.mxu1 }
0x1507   : > { %v4750_v54 = vpop.f32.mrf.mxu1 }
0x1508   : > { %v4762_v56 = vsel %vm714_vm4, %v4750_v54, -inf }
0x1509   : > { %4763 = vmax.xlane.f32.xlu1 %v4762_v56  ;;  %v6414_v35 = vpop.f32.mrf.mxu1 }
0x150b   : > { %v4755_v37 = vpop.f32.mrf.mxu1 }
0x150c   : > { %v4765_v58 = vsel %vm721_vm5, %v4755_v37, -inf }
0x150d   : > { %4766 = vmax.xlane.f32.xlu0 %v4765_v58  ;;  %v6417_v60 = vpop.f32.mrf.mxu1 }
0x158e   : > { %v4761_v61 = vpop.xlane.xlu0 %4760 }
0x158f   : > { %v4768_v62 = vsub.f32 %v4745_v34, %v4761_v61 }
0x1591   : > { %v4771_v12 = vmul.f32 1.442695, %v4768_v62 }
0x1592   : > { %v4764_v8 = vpop.xlane.xlu1 %4763 }
0x1593   : > { %6539 = vpow2.f32 %v4771_v12  ;;  %v4769_v16 = vsub.f32 %v4750_v54, %v4764_v8 }
0x1595   : > { %v4773_v18 = vmul.f32 1.442695, %v4769_v16 }
0x1596   : > { %v4767_v14 = vpop.xlane.xlu0 %4766 }
0x1597   : > { %6541 = vpow2.f32 %v4773_v18  ;;  %v4770_v22 = vsub.f32 %v4755_v37, %v4767_v14 }
0x1599   : > { %v4775_v24 = vmul.f32 1.442695, %v4770_v22 }
0x159b   : > { %6543 = vpow2.f32 %v4775_v24 }
0x15a0   : > { %v6540_v26 = vpop.eup %6539 }
0x15a1   : > { %6425 = vmatmul.mubr.msk.f32.vlgmr.msra.gmra.mxu0 %vm714_vm4, %v6540_v26  ;;  %v4777_v31 = vsel %vm714_vm4, %v6540_v26, 0.0 }
0x15a2   : > { %4778 = vadd.xlane.f32.xlu1 %v4777_v31  ;;  %6427 = vmatprep.mubr.msk.f32.mxu0 %vm6564_vm0, %v6563_v1 }
0x15a4   : > { %v6542_v23 = vpop.eup %6541 }
0x15a5   : > { %6428 = vmatmul.mubr.msk.f32.gmra.mxu0 %vm714_vm4, %v6542_v23  ;;  %v4780_v36 = vsel %vm714_vm4, %v6542_v23, 0.0 }
0x15a6   : > { %4781 = vadd.xlane.f32.xlu0 %v4780_v36  ;;  %6430 = vmatprep.mubr.msk.f32.mxu0 %vm6564_vm0, %v6563_v1 }
0x15a8   : > { %v6544_v25 = vpop.eup %6543 }
0x15a9   : > { %6431 = vmatmul.mubr.msk.f32.gmra.mxu0 %vm714_vm4, %v6544_v25  ;;  %v4783_v28 = vsel %vm721_vm5, %v6544_v25, 0.0 }
0x15aa   : > { %4784 = vadd.xlane.f32.xlu1 %v4783_v28 }
0x162b   : > { %v4779_v27 = vpop.xlane.xlu1 %4778 }
0x162c   : > { %6545 = vrcp.f32 %v4779_v27 }
0x162f   : > { %v4782_v32 = vpop.xlane.xlu0 %4781 }
0x1630   : > { %6547 = vrcp.f32 %v4782_v32 }
0x1633   : > { %v4785_v9 = vpop.xlane.xlu1 %4784 }
0x1634   : > { %6549 = vrcp.f32 %v4785_v9 }
0x1639   : > { %v6546_v30 = vpop.eup %6545 }
0x163a   : > { %v4789_v45 = vmul.f32 %v6546_v30, %v6540_v26 }
0x163c   : > { %v4989_v48 = vrot.slane %v4789_v45, 5 }
0x163d   : > { %v6548_v57 = vpop.eup %6547 }
0x163e   : > { %v4993_v29 = vsel %vm2665_vm7, %v7744_v2, %v4989_v48 }
0x163f   : > { %5409 = vst.msk [vmem:[%s7273_s13 + $0x4] sm:$0xf] %vm2667_vm8, %v4993_v29 }
0x1641   : > { %v6550_v10 = vpop.eup %6549 }
0x1661   : > { %v4868_v55 = vpop.f32.mrf.mxu0 }
0x1662   : > { %v4882_v33 = vmul.f32 %v6546_v30, %v4868_v55 }
0x1663   : > { %v6426_v38 = vpop.f32.mrf.mxu0 }
0x1664   : > { %6436 = vmatmul.mubr.msk.f32.vlgmr.msra.gmra.mxu1 %vm615_vm2, %v4882_v33 }
0x1665   : > { %v4873_v15 = vpop.f32.mrf.mxu0  ;;  %6438 = vmatprep.mubr.msk.f32.mxu1 %vm6564_vm0, %v6563_v1 }
0x1666   : > { %v4883_v39 = vmul.f32 %v6548_v57, %v4873_v15 }
0x1667   : > { %v6429_v2 = vpop.f32.mrf.mxu0 }
0x1668   : > { %6439 = vmatmul.mubr.msk.f32.gmra.mxu1 %vm615_vm2, %v4883_v39 }
0x1669   : > { %v4878_v40 = vpop.f32.mrf.mxu0  ;;  %6441 = vmatprep.mubr.msk.f32.mxu1 %vm6564_vm0, %v6563_v1 }
0x166a   : > { %v4884_v11 = vmul.f32 %v6550_v10, %v4878_v40 }
0x166b   : > { %v6432_v13 = vpop.f32.mrf.mxu0 }
0x166c   : > { %6442 = vmatmul.mubr.msk.f32.gmra.mxu1 %vm615_vm2, %v4884_v11 }
0x1724   : > { %v4961_v5 = vpop.f32.mrf.mxu1 }
0x1725   : > { %v4975_v19 = vadd.f32 %v4961_v5, %v7813_v17 }
0x1726   : > { %v6437_v3 = vpop.f32.mrf.mxu1 }
0x1727   : > { %5406 = vst.msk [vmem:[%s7366_s12 + $0x18] sm:$0xff] %vm337_vm1, %v4975_v19 }
0x1728   : > { %v4966_v42 = vpop.f32.mrf.mxu1 }
0x1729   : > { %v4976_v44 = vadd.f32 %v4966_v42, %v7817_v41 }
0x172a   : > { %v6440_v20 = vpop.f32.mrf.mxu1 }
0x172b   : > { %5407 = vst.msk [vmem:[%s7366_s12 + $0x20] sm:$0xff] %vm337_vm1, %v4976_v44 }
0x172c   : > { %v4971_v21 = vpop.f32.mrf.mxu1 }
0x172d   : > { %v4977_v59 = vadd.f32 %v4971_v21, %v7821_v43 }
0x172e   : > { %v6443_v1 = vpop.f32.mrf.mxu1 }
0x172f   : > { %5408 = vst.msk [vmem:[%s7366_s12 + $0x28] sm:$0x1] %vm2651_vm9, %v4977_v59 }
0x1730 PF: > { %s17_s21 = sadd.s32 1, %s6561_s21  }
0x1731   : > { %p14_p4 = scmp.ge.s32.totalorder %s17_s21, 4  }
0x1733   :  { %16 = sbr.rel (!%p14_p4) target bundleno = 1 (0x1), region = 107 }

</bundles_post_ra>
